<compile_context>
chip_gen: v7x
topology: tpu7x:2x2x1
jax: 0.10.0
libtpu: 0.0.40
codegen_flags: <defaults>
</compile_context>

<pallas_src>
import numpy as np
import jax
import jax.numpy as jnp
from jax.experimental import pallas as pl
from jax.experimental.pallas import tpu as pltpu

NEG_SLOPE = 0.2
EPS = 1e-5
OUT_PAD = 128          # lane-dense output width; wrapper slices back to P
N_CONV = 16            # init + 3 (plain resblock) + 3 downs * 4 convs


def _lrelu(v):
    return jnp.where(v >= 0, v, NEG_SLOPE * v)


# ----------------------------------------------------------------------------
# Fused generator kernel: one batch tile (Bt samples) per grid step.
# ----------------------------------------------------------------------------
def _make_generator_kernel(L, base, Bt):
    C = [base, base * 2, base * 4, base * 8]
    Ls = [L >> r for r in range(4)]
    Ms = [Bt * l for l in Ls]
    L3 = Ls[3]
    bf16 = jnp.bfloat16

    def kernel(*refs):
        x_ref = refs[0]
        aff_refs = refs[1:4]                       # per-row CIN alpha/beta slabs
        cw = refs[4:4 + N_CONV]                    # conv weights (K, Cin, Cout) bf16
        (bias_ref, cmask_ref, pm1_ref, pm2_ref, pm3_ref,
         apack_ref, spack_ref, w2_ref, dmask_ref, rpp_ref) = refs[4 + N_CONV:14 + N_CONV]
        o_ref = refs[14 + N_CONV]
        pm_refs = (pm1_ref, pm2_ref, pm3_ref)

        conv_idx = [0]
        bias_idx = [0]

        def wnext():
            w = cw[conv_idx[0]]
            conv_idx[0] += 1
            return w

        def bnext(width):
            i = bias_idx[0]
            bias_idx[0] += 1
            return bias_ref[i:i + 1, :width]       # (1, width) f32

        def conv3(h, res, cout):
            # 'same' K=3 conv on the folded (M, Cin) slab: 3 accumulating per-tap
            # MXU matmuls; shifted taps are masked at per-sample boundaries with
            # precomputed (M, 1) masks (no lane-axis im2col concat).
            w = wnext()
            b = bnext(cout)
            M, cin = h.shape
            mprev = cmask_ref[res][:M, 0:1].astype(bf16)   # 0 at first row of sample
            mnext = cmask_ref[res][:M, 1:2].astype(bf16)   # 0 at last  row of sample
            hb = h.astype(bf16)
            zrow = jnp.zeros((1, cin), bf16)
            prev = jnp.concatenate([zrow, hb[:M - 1, :]], axis=0) * mprev
            nxt = jnp.concatenate([hb[1:, :], zrow], axis=0) * mnext
            acc = jnp.dot(prev, w[0], preferred_element_type=jnp.float32)
            acc = acc + jnp.dot(hb, w[1], preferred_element_type=jnp.float32)
            acc = acc + jnp.dot(nxt, w[2], preferred_element_type=jnp.float32)
            return acc + b

        def conv1(h, cout):
            w = wnext()
            b = bnext(cout)
            return jnp.dot(h.astype(bf16), w[0],
                           preferred_element_type=jnp.float32) + b

        def cin(h, d, alpha_rows, beta_rows):
            # InstanceNorm over each sample's L_d rows via tiny f32 matmuls with
            # precomputed per-sample averaging (A: 1/L_d) / broadcast (S: 0/1)
            # matrices; alpha/beta arrive pre-expanded per row from the wrapper.
            M = Ms[d]
            A = apack_ref[d - 1][:, :M]            # (Bt, M)
            S = spack_ref[d - 1][:M, :]            # (M, Bt)
            mean = jnp.dot(A, h, preferred_element_type=jnp.float32)
            cen = h - jnp.dot(S, mean, preferred_element_type=jnp.float32)
            var = jnp.dot(A, cen * cen, preferred_element_type=jnp.float32)
            varr = jnp.dot(S, var, preferred_element_type=jnp.float32)
            return alpha_rows * (cen * jax.lax.rsqrt(varr + EPS)) + beta_rows

        # ---- init conv + LeakyReLU ----
        h = _lrelu(conv3(x_ref[...], 0, C[0]))

        # ---- plain ResBlock (no norm) ----
        c1 = conv1(h, C[0])
        t = _lrelu(conv3(_lrelu(h), 0, C[0]))
        h = conv3(t, 0, C[0]) + c1

        # ---- 3 x Conditional_Down ----
        for d in (1, 2, 3):
            cd = C[d]
            t = _lrelu(conv3(h, d - 1, cd))
            # AvgPool1d(2,2) as one matmul with the precomputed pooling matrix.
            h = jnp.dot(pm_refs[d - 1][...], t, preferred_element_type=jnp.float32)
            aff = aff_refs[d - 1][...]             # (M_d, 4*C_d)
            a1, b1 = aff[:, 0:cd], aff[:, cd:2 * cd]
            a2, b2 = aff[:, 2 * cd:3 * cd], aff[:, 3 * cd:4 * cd]
            p1 = cin(h, d, a1, b1)
            c1 = conv1(p1, cd)
            p2 = cin(_lrelu(p1), d, a2, b2)
            t = _lrelu(conv3(p2, d, cd))
            h = conv3(t, d, cd) + c1

        # ---- flatten (PyTorch (B,C,L) order) + dense: 3 lane-dense matmuls ----
        #   T[m, l*P+p]  = sum_c h[m, c] * Wd[c*L3 + l, p]
        #   R[m, p]      = T[m, (m % L3)*P + p]            (mask + column-collapse)
        #   out[b, p]    = sum_{m in sample b} R[m, p]      (segment sum via A3*L3)
        T = jnp.dot(h.astype(bf16), w2_ref[...], preferred_element_type=jnp.float32)
        R = jnp.dot(T * dmask_ref[...], rpp_ref[...],
                    preferred_element_type=jnp.float32)     # (M3, OUT_PAD)
        A3 = apack_ref[2][:, :Ms[3]]
        out = jnp.dot(A3, R, preferred_element_type=jnp.float32) * float(L3)
        out = out + bias_ref[N_CONV:N_CONV + 1, :OUT_PAD]
        o_ref[0] = out.astype(o_ref.dtype)

    return kernel


# ----------------------------------------------------------------------------
# Host-side constant builders (pool matrices, conv boundary masks, instance-norm
# averaging/broadcast matrices, dense-layer helpers).
# ----------------------------------------------------------------------------
def _np_constants(L, Bt, P):
    f32 = np.float32
    Ls = [L >> r for r in range(4)]
    Ms = [Bt * l for l in Ls]

    pools = []
    for r in (1, 2, 3):
        pm = np.zeros((Ms[r], Ms[r - 1]), f32)
        j = np.arange(Ms[r])
        pm[j, 2 * j] = 0.5
        pm[j, 2 * j + 1] = 0.5
        pools.append(pm)

    cmask = np.zeros((4, Ms[0], 2), f32)
    for r in range(4):
        loc = np.arange(Ms[r]) % Ls[r]
        cmask[r, :Ms[r], 0] = (loc != 0).astype(f32)
        cmask[r, :Ms[r], 1] = (loc != Ls[r] - 1).astype(f32)

    apack = np.zeros((3, Bt, Ms[1]), f32)
    spack = np.zeros((3, Ms[1], Bt), f32)
    for r in (1, 2, 3):
        for b in range(Bt):
            apack[r - 1, b, b * Ls[r]:(b + 1) * Ls[r]] = 1.0 / Ls[r]
            spack[r - 1, b * Ls[r]:(b + 1) * Ls[r], b] = 1.0

    L3, M3 = Ls[3], Ms[3]
    loc3 = np.arange(M3) % L3
    dmask = np.repeat(np.eye(L3, dtype=f32)[loc3], P, axis=1)          # (M3, L3*P)
    rpp = np.zeros((L3 * P, OUT_PAD), f32)
    rpp[np.arange(L3 * P), np.tile(np.arange(P), L3)] = 1.0            # (L3*P, OUT_PAD)
    return pools, cmask, apack, spack, dmask, rpp


def _prep_weights(params):
    convs, biases = [], []

    def add(w, b):
        convs.append(w.astype(jnp.bfloat16))
        biases.append(b)

    add(params["init"]["w"], params["init"]["b"])
    rb = params["rb0"]
    for nm in ("1", "2", "3"):
        add(rb["w" + nm], rb["b" + nm])
    for name in ("down1", "down2", "down3"):
        d = params[name]
        add(d["w"], d["b"])
        r = d["rb"]
        for nm in ("1", "2", "3"):
            add(r["w" + nm], r["b" + nm])
    return convs, biases


def _pick_batch_tile(B, L):
    # Prefer >=2 grid steps (v7x megacore) while keeping per-row block dims
    # 8-aligned at the coarsest resolution (Bt*L/8 divisible by 8).
    cands = [d for d in (8, 4, 2, 1) if B % d == 0]
    multi = [d for d in cands if B // d >= 2 and (d * L) % 64 == 0]
    if multi:
        return max(multi)
    return B        # single tile: every block equals the full array dims


def generator_pallas(params, x, z):
    # x: (B, L, Cin) channel-last ; z: (B, NL)
    B, L, Cin = x.shape
    base = params["init"]["w"].shape[2]
    P = params["dense"]["w"].shape[1]
    assert L % 8 == 0, "length must be divisible by 8 (three /2 pools + flatten)"
    assert P <= OUT_PAD

    Bt = _pick_batch_tile(B, L)
    G = B // Bt
    C = [base, base * 2, base * 4, base * 8]
    Ls = [L >> r for r in range(4)]
    L3 = Ls[3]

    convs, biases = _prep_weights(params)

    # Pack all small bias rows (16 conv biases + dense bias) into one f32 slab.
    W = max(C[3], OUT_PAD)
    bias_rows = [jnp.pad(b, ((0, 0), (0, W - b.shape[1]))) for b in biases]
    bias_rows.append(jnp.pad(params["dense"]["b"], ((0, 0), (0, W - P))))
    bias_pack = jnp.concatenate(bias_rows, axis=0)                     # (17, W)

    # Dense weight -> (C3, L3*P); nn.Flatten's (B, C, L) ordering folded in.
    wd = params["dense"]["w"]                                          # row = c*L3 + l
    w2 = wd.reshape(C[3], L3, P).reshape(C[3], L3 * P).astype(jnp.bfloat16)

    # CIN alpha/beta depend only on z: compute (batched) here and expand per-row.
    affs = []
    for d, name in enumerate(("down1", "down2", "down3"), start=1):
        r = params[name]["rb"]
        cols = []
        for cn in ("cin1", "cin2"):
            q = r[cn]
            alpha = z @ q["wa"] + q["ba"]                              # (B, C_d)
            beta = z @ q["wb"] + q["bb"]
            cols.append(jnp.repeat(alpha, Ls[d], axis=0))
            cols.append(jnp.repeat(beta, Ls[d], axis=0))
        affs.append(jnp.concatenate(cols, axis=1))                     # (B*L_d, 4*C_d)

    pools, cmask, apack, spack, dmask, rpp = _np_constants(L, Bt, P)

    x_folded = x.reshape(B * L, Cin)                                   # batch folded into rows

    def const_spec(a):
        return pl.BlockSpec(a.shape, lambda b, _n=a.ndim: (0,) * _n)

    in_specs = [pl.BlockSpec((Bt * L, Cin), lambda b: (b, 0))]
    in_specs += [pl.BlockSpec((Bt * Ls[d], 4 * C[d]), lambda b: (b, 0)) for d in (1, 2, 3)]
    args = [x_folded] + affs

    for w in convs:
        in_specs.append(const_spec(w))
        args.append(w)
    tail = [bias_pack, jnp.asarray(cmask), jnp.asarray(pools[0]), jnp.asarray(pools[1]),
            jnp.asarray(pools[2]), jnp.asarray(apack), jnp.asarray(spack),
            w2, jnp.asarray(dmask), jnp.asarray(rpp)]
    for a in tail:
        in_specs.append(const_spec(a))
        args.append(a)

    out = pl.pallas_call(
        _make_generator_kernel(L, base, Bt),
        out_shape=jax.ShapeDtypeStruct((G, Bt, OUT_PAD), jnp.float32),
        grid=(G,),
        in_specs=in_specs,
        out_specs=pl.BlockSpec((1, Bt, OUT_PAD), lambda b: (b, 0, 0)),
        compiler_params=pltpu.CompilerParams(
            dimension_semantics=("parallel",),
            vmem_limit_bytes=32 * 1024 * 1024,
        ),
        # TODO(synk): on v7x, single-buffering the constant-weight inputs
        # (pipeline_mode=pl.Buffered(1)) would halve their VMEM; skipped here to
        # stay on the most portable BlockSpec path.
    )(*args)
    return out.reshape(B, OUT_PAD)[:, :P]


# ----------------------------------------------------------------------------
# Pure-JAX reference (mirrors the PyTorch graph) for correctness checking.
# ----------------------------------------------------------------------------
def _ref_conv(x, w, b):
    K, _, Cout = w.shape
    pad = (K - 1) // 2
    B, L, _ = x.shape
    xp = jnp.pad(x, ((0, 0), (pad, pad), (0, 0)))
    acc = jnp.zeros((B, L, Cout), jnp.float32)
    for k in range(K):
        acc = acc + jnp.einsum("blc,cd->bld", xp[:, k:k + L, :], w[k])
    return acc + b


def _ref_cin(x, z, q):
    mean = jnp.mean(x, axis=1, keepdims=True)
    var = jnp.mean((x - mean) ** 2, axis=1, keepdims=True)
    xn = (x - mean) / jnp.sqrt(var + EPS)
    alpha = (z @ q["wa"] + q["ba"])[:, None, :]
    beta = (z @ q["wb"] + q["bb"])[:, None, :]
    return alpha * xn + beta


def _ref_pool(x):
    return 0.5 * (x[:, 0::2, :] + x[:, 1::2, :])


def generator_reference(params, x, z):
    h = _lrelu(_ref_conv(x, params["init"]["w"], params["init"]["b"]))
    rb = params["rb0"]
    c1 = _ref_conv(h, rb["w1"], rb["b1"])
    c2 = _lrelu(_ref_conv(_lrelu(h), rb["w2"], rb["b2"]))
    h = _ref_conv(c2, rb["w3"], rb["b3"]) + c1
    for name in ("down1", "down2", "down3"):
        d = params[name]
        h = _ref_pool(_lrelu(_ref_conv(h, d["w"], d["b"])))
        r = d["rb"]
        p1 = _ref_cin(h, z, r["cin1"])
        c1 = _ref_conv(p1, r["w1"], r["b1"])
        p2 = _ref_cin(_lrelu(p1), z, r["cin2"])
        c2 = _lrelu(_ref_conv(p2, r["w2"], r["b2"]))
        h = _ref_conv(c2, r["w3"], r["b3"]) + c1
    B, L8, C8 = h.shape
    flat = jnp.transpose(h, (0, 2, 1)).reshape(B, C8 * L8)   # nn.Flatten on (B, C, L)
    return flat @ params["dense"]["w"] + params["dense"]["b"]


# ----------------------------------------------------------------------------
# Deterministic parameter init (shapes follow the PyTorch module __init__).
# Conv/dense weights are stored bf16-representable so the kernel's bf16 MXU path
# and the f32 reference share identical weights.
# ----------------------------------------------------------------------------
def init_params(key, in_channels, num_latent, length, base, num_parameters):
    keys = iter(jax.random.split(key, 64))

    def _q(w):
        return w.astype(jnp.bfloat16).astype(jnp.float32)

    def conv_p(cin, cout, k):
        w = _q(jax.random.normal(next(keys), (k, cin, cout), jnp.float32) / np.sqrt(cin * k))
        b = jax.random.normal(next(keys), (1, cout), jnp.float32) * 0.1
        return {"w": w, "b": b}

    def cin_p(nl, c):
        wa = jax.random.normal(next(keys), (nl, c), jnp.float32) / np.sqrt(nl)
        ba = 1.0 + 0.05 * jax.random.normal(next(keys), (1, c), jnp.float32)
        wb = jax.random.normal(next(keys), (nl, c), jnp.float32) / np.sqrt(nl)
        bb = 0.05 * jax.random.normal(next(keys), (1, c), jnp.float32)
        return {"wa": wa, "ba": ba, "wb": wb, "bb": bb}

    def rb_p(cin, cout):
        a = conv_p(cin, cout, 1)
        b = conv_p(cout, cout, 3)
        c = conv_p(cout, cout, 3)
        return {"w1": a["w"], "b1": a["b"], "w2": b["w"], "b2": b["b"],
                "w3": c["w"], "b3": c["b"]}

    def crb_p(c, nl):
        d = rb_p(c, c)
        d["cin1"] = cin_p(nl, c)
        d["cin2"] = cin_p(nl, c)
        return d

    def down_p(cin, cout, nl):
        cp = conv_p(cin, cout, 3)
        return {"w": cp["w"], "b": cp["b"], "rb": crb_p(cout, nl)}

    return {
        "init": conv_p(in_channels, base, 3),
        "rb0": rb_p(base, base),
        "down1": down_p(base, base * 2, num_latent),
        "down2": down_p(base * 2, base * 4, num_latent),
        "down3": down_p(base * 4, base * 8, num_latent),
        "dense": {
            "w": _q(jax.random.normal(next(keys), (length * base, num_parameters),
                                      jnp.float32) / np.sqrt(length * base)),
            "b": jax.random.normal(next(keys), (1, num_parameters), jnp.float32) * 0.1,
        },
    }


if __name__ == "__main__":
    # Small config consistent with Generator(in_channels, num_latent_variables,
    # length, base_channels, num_parameters).
    B, Cin, NL, L = 4, 4, 8, 64
    base, P = 8, 3

    key = jax.random.PRNGKey(0)
    kx, kz, kp = jax.random.split(key, 3)
    x_ncl = jax.random.normal(kx, (B, Cin, L), jnp.float32)   # PyTorch (B, C, L)
    z_nc1 = jax.random.normal(kz, (B, NL, 1), jnp.float32)    # PyTorch (B, NL, 1)

    x = jnp.transpose(x_ncl, (0, 2, 1))   # (B, L, Cin)  channel-last
    z = z_nc1[:, :, 0]                    # (B, NL)

    params = init_params(kp, Cin, NL, L, base, P)

    out = jax.block_until_ready(jax.jit(generator_pallas)(params, x, z))
    ref = jax.block_until_ready(generator_reference(params, x, z))

    assert out.shape == (B, P), out.shape
    np.testing.assert_allclose(np.asarray(out), np.asarray(ref), rtol=2e-2, atol=2e-2)
    print("KERNEL_OK")
</pallas_src>

<mosaic_0001>
module attributes {stable_mosaic.version = 11 : i64} {
  func.func @kernel(%arg0: i32, %arg1: memref<128x4xf32, #tpu.memory_space<vmem>>, %arg2: memref<64x64xf32, #tpu.memory_space<vmem>>, %arg3: memref<32x128xf32, #tpu.memory_space<vmem>>, %arg4: memref<16x256xf32, #tpu.memory_space<vmem>>, %arg5: memref<3x4x8xbf16, #tpu.memory_space<vmem>>, %arg6: memref<1x8x8xbf16, #tpu.memory_space<vmem>>, %arg7: memref<3x8x8xbf16, #tpu.memory_space<vmem>>, %arg8: memref<3x8x8xbf16, #tpu.memory_space<vmem>>, %arg9: memref<3x8x16xbf16, #tpu.memory_space<vmem>>, %arg10: memref<1x16x16xbf16, #tpu.memory_space<vmem>>, %arg11: memref<3x16x16xbf16, #tpu.memory_space<vmem>>, %arg12: memref<3x16x16xbf16, #tpu.memory_space<vmem>>, %arg13: memref<3x16x32xbf16, #tpu.memory_space<vmem>>, %arg14: memref<1x32x32xbf16, #tpu.memory_space<vmem>>, %arg15: memref<3x32x32xbf16, #tpu.memory_space<vmem>>, %arg16: memref<3x32x32xbf16, #tpu.memory_space<vmem>>, %arg17: memref<3x32x64xbf16, #tpu.memory_space<vmem>>, %arg18: memref<1x64x64xbf16, #tpu.memory_space<vmem>>, %arg19: memref<3x64x64xbf16, #tpu.memory_space<vmem>>, %arg20: memref<3x64x64xbf16, #tpu.memory_space<vmem>>, %arg21: memref<17x128xf32, #tpu.memory_space<vmem>>, %arg22: memref<4x128x2xf32, #tpu.memory_space<vmem>>, %arg23: memref<64x128xf32, #tpu.memory_space<vmem>>, %arg24: memref<32x64xf32, #tpu.memory_space<vmem>>, %arg25: memref<16x32xf32, #tpu.memory_space<vmem>>, %arg26: memref<3x2x64xf32, #tpu.memory_space<vmem>>, %arg27: memref<3x64x2xf32, #tpu.memory_space<vmem>>, %arg28: memref<64x24xbf16, #tpu.memory_space<vmem>>, %arg29: memref<16x24xf32, #tpu.memory_space<vmem>>, %arg30: memref<24x128xf32, #tpu.memory_space<vmem>>, %arg31: memref<1x2x128xf32, #tpu.memory_space<vmem>>) attributes {dimension_semantics = [#tpu.dimension_semantics<parallel>], iteration_bounds = array<i64: 2>, scalar_prefetch = 0 : i64, scratch_operands = 0 : i64, tpu.core_type = #tpu.core_type<tc>, window_params = [{transform_indices = @transform_0, window_bounds = array<i64: 128, 4>}, {transform_indices = @transform_1, window_bounds = array<i64: 64, 64>}, {transform_indices = @transform_2, window_bounds = array<i64: 32, 128>}, {transform_indices = @transform_3, window_bounds = array<i64: 16, 256>}, {pipeline_mode = #tpu.pipeline_mode<synchronous>, transform_indices = @transform_4, window_bounds = array<i64: 3, 4, 8>}, {pipeline_mode = #tpu.pipeline_mode<synchronous>, transform_indices = @transform_5, window_bounds = array<i64: 1, 8, 8>}, {pipeline_mode = #tpu.pipeline_mode<synchronous>, transform_indices = @transform_6, window_bounds = array<i64: 3, 8, 8>}, {pipeline_mode = #tpu.pipeline_mode<synchronous>, transform_indices = @transform_7, window_bounds = array<i64: 3, 8, 8>}, {pipeline_mode = #tpu.pipeline_mode<synchronous>, transform_indices = @transform_8, window_bounds = array<i64: 3, 8, 16>}, {pipeline_mode = #tpu.pipeline_mode<synchronous>, transform_indices = @transform_9, window_bounds = array<i64: 1, 16, 16>}, {pipeline_mode = #tpu.pipeline_mode<synchronous>, transform_indices = @transform_10, window_bounds = array<i64: 3, 16, 16>}, {pipeline_mode = #tpu.pipeline_mode<synchronous>, transform_indices = @transform_11, window_bounds = array<i64: 3, 16, 16>}, {pipeline_mode = #tpu.pipeline_mode<synchronous>, transform_indices = @transform_12, window_bounds = array<i64: 3, 16, 32>}, {pipeline_mode = #tpu.pipeline_mode<synchronous>, transform_indices = @transform_13, window_bounds = array<i64: 1, 32, 32>}, {pipeline_mode = #tpu.pipeline_mode<synchronous>, transform_indices = @transform_14, window_bounds = array<i64: 3, 32, 32>}, {pipeline_mode = #tpu.pipeline_mode<synchronous>, transform_indices = @transform_15, window_bounds = array<i64: 3, 32, 32>}, {pipeline_mode = #tpu.pipeline_mode<synchronous>, transform_indices = @transform_16, window_bounds = array<i64: 3, 32, 64>}, {pipeline_mode = #tpu.pipeline_mode<synchronous>, transform_indices = @transform_17, window_bounds = array<i64: 1, 64, 64>}, {pipeline_mode = #tpu.pipeline_mode<synchronous>, transform_indices = @transform_18, window_bounds = array<i64: 3, 64, 64>}, {pipeline_mode = #tpu.pipeline_mode<synchronous>, transform_indices = @transform_19, window_bounds = array<i64: 3, 64, 64>}, {pipeline_mode = #tpu.pipeline_mode<synchronous>, transform_indices = @transform_20, window_bounds = array<i64: 17, 128>}, {pipeline_mode = #tpu.pipeline_mode<synchronous>, transform_indices = @transform_21, window_bounds = array<i64: 4, 128, 2>}, {pipeline_mode = #tpu.pipeline_mode<synchronous>, transform_indices = @transform_22, window_bounds = array<i64: 64, 128>}, {pipeline_mode = #tpu.pipeline_mode<synchronous>, transform_indices = @transform_23, window_bounds = array<i64: 32, 64>}, {pipeline_mode = #tpu.pipeline_mode<synchronous>, transform_indices = @transform_24, window_bounds = array<i64: 16, 32>}, {pipeline_mode = #tpu.pipeline_mode<synchronous>, transform_indices = @transform_25, window_bounds = array<i64: 3, 2, 64>}, {pipeline_mode = #tpu.pipeline_mode<synchronous>, transform_indices = @transform_26, window_bounds = array<i64: 3, 64, 2>}, {pipeline_mode = #tpu.pipeline_mode<synchronous>, transform_indices = @transform_27, window_bounds = array<i64: 64, 24>}, {pipeline_mode = #tpu.pipeline_mode<synchronous>, transform_indices = @transform_28, window_bounds = array<i64: 16, 24>}, {pipeline_mode = #tpu.pipeline_mode<synchronous>, transform_indices = @transform_29, window_bounds = array<i64: 24, 128>}, {transform_indices = @transform_30, window_bounds = array<i64: 1, 2, 128>}]} {
    %c0 = arith.constant 0 : index
    %c0_0 = arith.constant 0 : index
    %0 = vector.load %arg1[%c0, %c0_0] : memref<128x4xf32, #tpu.memory_space<vmem>>, vector<128x4xf32>
    %c0_1 = arith.constant 0 : index
    %c0_2 = arith.constant 0 : index
    %1 = vector.load %arg21[%c0_1, %c0_2] : memref<17x128xf32, #tpu.memory_space<vmem>>, vector<1x8xf32>
    %c0_3 = arith.constant 0 : index
    %c0_4 = arith.constant 0 : index
    %c0_5 = arith.constant 0 : index
    %2 = vector.load %arg22[%c0_3, %c0_4, %c0_5] : memref<4x128x2xf32, #tpu.memory_space<vmem>>, vector<1x128x2xf32>
    %3 = vector.shape_cast %2 : vector<1x128x2xf32> to vector<128x2xf32>
    %4 = vector.extract_strided_slice %3 {offsets = [0, 0], sizes = [128, 1], strides = [1, 1]} : vector<128x2xf32> to vector<128x1xf32>
    %5 = arith.truncf %4 : vector<128x1xf32> to vector<128x1xbf16>
    %c0_6 = arith.constant 0 : index
    %c0_7 = arith.constant 0 : index
    %c0_8 = arith.constant 0 : index
    %6 = vector.load %arg22[%c0_6, %c0_7, %c0_8] : memref<4x128x2xf32, #tpu.memory_space<vmem>>, vector<1x128x2xf32>
    %7 = vector.shape_cast %6 : vector<1x128x2xf32> to vector<128x2xf32>
    %8 = vector.extract_strided_slice %7 {offsets = [0, 1], sizes = [128, 1], strides = [1, 1]} : vector<128x2xf32> to vector<128x1xf32>
    %9 = arith.truncf %8 : vector<128x1xf32> to vector<128x1xbf16>
    %10 = arith.truncf %0 : vector<128x4xf32> to vector<128x4xbf16>
    %cst = arith.constant 0.000000e+00 : bf16
    %11 = vector.broadcast %cst : bf16 to vector<1x4xbf16>
    %12 = vector.extract_strided_slice %10 {offsets = [0, 0], sizes = [127, 4], strides = [1, 1]} : vector<128x4xbf16> to vector<127x4xbf16>
    %13 = tpu.concatenate %11, %12 in 0 : vector<1x4xbf16>, vector<127x4xbf16> -> vector<128x4xbf16>
    %14 = vector.broadcast %5 : vector<128x1xbf16> to vector<128x4xbf16>
    %15 = arith.mulf %13, %14 : vector<128x4xbf16>
    %16 = vector.extract_strided_slice %10 {offsets = [1, 0], sizes = [127, 4], strides = [1, 1]} : vector<128x4xbf16> to vector<127x4xbf16>
    %17 = tpu.concatenate %16, %11 in 0 : vector<127x4xbf16>, vector<1x4xbf16> -> vector<128x4xbf16>
    %18 = vector.broadcast %9 : vector<128x1xbf16> to vector<128x4xbf16>
    %19 = arith.mulf %17, %18 : vector<128x4xbf16>
    %c0_9 = arith.constant 0 : index
    %c0_10 = arith.constant 0 : index
    %c0_11 = arith.constant 0 : index
    %20 = vector.load %arg5[%c0_9, %c0_10, %c0_11] : memref<3x4x8xbf16, #tpu.memory_space<vmem>>, vector<1x4x8xbf16>
    %21 = vector.shape_cast %20 : vector<1x4x8xbf16> to vector<4x8xbf16>
    %cst_12 = arith.constant dense<0.000000e+00> : vector<128x8xf32>
    %22 = tpu.matmul %15, %21, %cst_12 {dimension_numbers = #tpu.dot_dimension_numbers<[1], [0], [0], [1], [0, 0, 1, 1], [], []>} : vector<128x4xbf16>, vector<4x8xbf16>, vector<128x8xf32> -> vector<128x8xf32>
    %c1 = arith.constant 1 : index
    %c0_13 = arith.constant 0 : index
    %c0_14 = arith.constant 0 : index
    %23 = vector.load %arg5[%c1, %c0_13, %c0_14] : memref<3x4x8xbf16, #tpu.memory_space<vmem>>, vector<1x4x8xbf16>
    %24 = vector.shape_cast %23 : vector<1x4x8xbf16> to vector<4x8xbf16>
    %cst_15 = arith.constant dense<0.000000e+00> : vector<128x8xf32>
    %25 = tpu.matmul %10, %24, %cst_15 {dimension_numbers = #tpu.dot_dimension_numbers<[1], [0], [0], [1], [0, 0, 1, 1], [], []>} : vector<128x4xbf16>, vector<4x8xbf16>, vector<128x8xf32> -> vector<128x8xf32>
    %26 = arith.addf %22, %25 : vector<128x8xf32>
    %c2 = arith.constant 2 : index
    %c0_16 = arith.constant 0 : index
    %c0_17 = arith.constant 0 : index
    %27 = vector.load %arg5[%c2, %c0_16, %c0_17] : memref<3x4x8xbf16, #tpu.memory_space<vmem>>, vector<1x4x8xbf16>
    %28 = vector.shape_cast %27 : vector<1x4x8xbf16> to vector<4x8xbf16>
    %cst_18 = arith.constant dense<0.000000e+00> : vector<128x8xf32>
    %29 = tpu.matmul %19, %28, %cst_18 {dimension_numbers = #tpu.dot_dimension_numbers<[1], [0], [0], [1], [0, 0, 1, 1], [], []>} : vector<128x4xbf16>, vector<4x8xbf16>, vector<128x8xf32> -> vector<128x8xf32>
    %30 = arith.addf %26, %29 : vector<128x8xf32>
    %31 = vector.broadcast %1 : vector<1x8xf32> to vector<128x8xf32>
    %32 = arith.addf %30, %31 : vector<128x8xf32>
    %cst_19 = arith.constant 0.000000e+00 : f32
    %33 = vector.broadcast %cst_19 : f32 to vector<128x8xf32>
    %34 = arith.cmpf oge, %32, %33 : vector<128x8xf32>
    %cst_20 = arith.constant 2.000000e-01 : f32
    %35 = vector.broadcast %cst_20 : f32 to vector<128x8xf32>
    %36 = arith.mulf %35, %32 : vector<128x8xf32>
    %37 = arith.select %34, %32, %36 : vector<128x8xi1>, vector<128x8xf32>
    %c1_21 = arith.constant 1 : index
    %c0_22 = arith.constant 0 : index
    %38 = vector.load %arg21[%c1_21, %c0_22] : memref<17x128xf32, #tpu.memory_space<vmem>>, vector<1x8xf32>
    %39 = arith.truncf %37 : vector<128x8xf32> to vector<128x8xbf16>
    %c0_23 = arith.constant 0 : index
    %c0_24 = arith.constant 0 : index
    %c0_25 = arith.constant 0 : index
    %40 = vector.load %arg6[%c0_23, %c0_24, %c0_25] : memref<1x8x8xbf16, #tpu.memory_space<vmem>>, vector<1x8x8xbf16>
    %41 = vector.shape_cast %40 : vector<1x8x8xbf16> to vector<8x8xbf16>
    %cst_26 = arith.constant dense<0.000000e+00> : vector<128x8xf32>
    %42 = tpu.matmul %39, %41, %cst_26 {dimension_numbers = #tpu.dot_dimension_numbers<[1], [0], [0], [1], [0, 0, 1, 1], [], []>} : vector<128x8xbf16>, vector<8x8xbf16>, vector<128x8xf32> -> vector<128x8xf32>
    %43 = vector.broadcast %38 : vector<1x8xf32> to vector<128x8xf32>
    %44 = arith.addf %42, %43 : vector<128x8xf32>
    %cst_27 = arith.constant 0.000000e+00 : f32
    %45 = vector.broadcast %cst_27 : f32 to vector<128x8xf32>
    %46 = arith.cmpf oge, %37, %45 : vector<128x8xf32>
    %cst_28 = arith.constant 2.000000e-01 : f32
    %47 = vector.broadcast %cst_28 : f32 to vector<128x8xf32>
    %48 = arith.mulf %47, %37 : vector<128x8xf32>
    %49 = arith.select %46, %37, %48 : vector<128x8xi1>, vector<128x8xf32>
    %c2_29 = arith.constant 2 : index
    %c0_30 = arith.constant 0 : index
    %50 = vector.load %arg21[%c2_29, %c0_30] : memref<17x128xf32, #tpu.memory_space<vmem>>, vector<1x8xf32>
    %c0_31 = arith.constant 0 : index
    %c0_32 = arith.constant 0 : index
    %c0_33 = arith.constant 0 : index
    %51 = vector.load %arg22[%c0_31, %c0_32, %c0_33] : memref<4x128x2xf32, #tpu.memory_space<vmem>>, vector<1x128x2xf32>
    %52 = vector.shape_cast %51 : vector<1x128x2xf32> to vector<128x2xf32>
    %53 = vector.extract_strided_slice %52 {offsets = [0, 0], sizes = [128, 1], strides = [1, 1]} : vector<128x2xf32> to vector<128x1xf32>
    %54 = arith.truncf %53 : vector<128x1xf32> to vector<128x1xbf16>
    %c0_34 = arith.constant 0 : index
    %c0_35 = arith.constant 0 : index
    %c0_36 = arith.constant 0 : index
    %55 = vector.load %arg22[%c0_34, %c0_35, %c0_36] : memref<4x128x2xf32, #tpu.memory_space<vmem>>, vector<1x128x2xf32>
    %56 = vector.shape_cast %55 : vector<1x128x2xf32> to vector<128x2xf32>
    %57 = vector.extract_strided_slice %56 {offsets = [0, 1], sizes = [128, 1], strides = [1, 1]} : vector<128x2xf32> to vector<128x1xf32>
    %58 = arith.truncf %57 : vector<128x1xf32> to vector<128x1xbf16>
    %59 = arith.truncf %49 : vector<128x8xf32> to vector<128x8xbf16>
    %cst_37 = arith.constant 0.000000e+00 : bf16
    %60 = vector.broadcast %cst_37 : bf16 to vector<1x8xbf16>
    %61 = vector.extract_strided_slice %59 {offsets = [0, 0], sizes = [127, 8], strides = [1, 1]} : vector<128x8xbf16> to vector<127x8xbf16>
    %62 = tpu.concatenate %60, %61 in 0 : vector<1x8xbf16>, vector<127x8xbf16> -> vector<128x8xbf16>
    %63 = vector.broadcast %54 : vector<128x1xbf16> to vector<128x8xbf16>
    %64 = arith.mulf %62, %63 : vector<128x8xbf16>
    %65 = vector.extract_strided_slice %59 {offsets = [1, 0], sizes = [127, 8], strides = [1, 1]} : vector<128x8xbf16> to vector<127x8xbf16>
    %66 = tpu.concatenate %65, %60 in 0 : vector<127x8xbf16>, vector<1x8xbf16> -> vector<128x8xbf16>
    %67 = vector.broadcast %58 : vector<128x1xbf16> to vector<128x8xbf16>
    %68 = arith.mulf %66, %67 : vector<128x8xbf16>
    %c0_38 = arith.constant 0 : index
    %c0_39 = arith.constant 0 : index
    %c0_40 = arith.constant 0 : index
    %69 = vector.load %arg7[%c0_38, %c0_39, %c0_40] : memref<3x8x8xbf16, #tpu.memory_space<vmem>>, vector<1x8x8xbf16>
    %70 = vector.shape_cast %69 : vector<1x8x8xbf16> to vector<8x8xbf16>
    %cst_41 = arith.constant dense<0.000000e+00> : vector<128x8xf32>
    %71 = tpu.matmul %64, %70, %cst_41 {dimension_numbers = #tpu.dot_dimension_numbers<[1], [0], [0], [1], [0, 0, 1, 1], [], []>} : vector<128x8xbf16>, vector<8x8xbf16>, vector<128x8xf32> -> vector<128x8xf32>
    %c1_42 = arith.constant 1 : index
    %c0_43 = arith.constant 0 : index
    %c0_44 = arith.constant 0 : index
    %72 = vector.load %arg7[%c1_42, %c0_43, %c0_44] : memref<3x8x8xbf16, #tpu.memory_space<vmem>>, vector<1x8x8xbf16>
    %73 = vector.shape_cast %72 : vector<1x8x8xbf16> to vector<8x8xbf16>
    %cst_45 = arith.constant dense<0.000000e+00> : vector<128x8xf32>
    %74 = tpu.matmul %59, %73, %cst_45 {dimension_numbers = #tpu.dot_dimension_numbers<[1], [0], [0], [1], [0, 0, 1, 1], [], []>} : vector<128x8xbf16>, vector<8x8xbf16>, vector<128x8xf32> -> vector<128x8xf32>
    %75 = arith.addf %71, %74 : vector<128x8xf32>
    %c2_46 = arith.constant 2 : index
    %c0_47 = arith.constant 0 : index
    %c0_48 = arith.constant 0 : index
    %76 = vector.load %arg7[%c2_46, %c0_47, %c0_48] : memref<3x8x8xbf16, #tpu.memory_space<vmem>>, vector<1x8x8xbf16>
    %77 = vector.shape_cast %76 : vector<1x8x8xbf16> to vector<8x8xbf16>
    %cst_49 = arith.constant dense<0.000000e+00> : vector<128x8xf32>
    %78 = tpu.matmul %68, %77, %cst_49 {dimension_numbers = #tpu.dot_dimension_numbers<[1], [0], [0], [1], [0, 0, 1, 1], [], []>} : vector<128x8xbf16>, vector<8x8xbf16>, vector<128x8xf32> -> vector<128x8xf32>
    %79 = arith.addf %75, %78 : vector<128x8xf32>
    %80 = vector.broadcast %50 : vector<1x8xf32> to vector<128x8xf32>
    %81 = arith.addf %79, %80 : vector<128x8xf32>
    %cst_50 = arith.constant 0.000000e+00 : f32
    %82 = vector.broadcast %cst_50 : f32 to vector<128x8xf32>
    %83 = arith.cmpf oge, %81, %82 : vector<128x8xf32>
    %cst_51 = arith.constant 2.000000e-01 : f32
    %84 = vector.broadcast %cst_51 : f32 to vector<128x8xf32>
    %85 = arith.mulf %84, %81 : vector<128x8xf32>
    %86 = arith.select %83, %81, %85 : vector<128x8xi1>, vector<128x8xf32>
    %c3 = arith.constant 3 : index
    %c0_52 = arith.constant 0 : index
    %87 = vector.load %arg21[%c3, %c0_52] : memref<17x128xf32, #tpu.memory_space<vmem>>, vector<1x8xf32>
    %c0_53 = arith.constant 0 : index
    %c0_54 = arith.constant 0 : index
    %c0_55 = arith.constant 0 : index
    %88 = vector.load %arg22[%c0_53, %c0_54, %c0_55] : memref<4x128x2xf32, #tpu.memory_space<vmem>>, vector<1x128x2xf32>
    %89 = vector.shape_cast %88 : vector<1x128x2xf32> to vector<128x2xf32>
    %90 = vector.extract_strided_slice %89 {offsets = [0, 0], sizes = [128, 1], strides = [1, 1]} : vector<128x2xf32> to vector<128x1xf32>
    %91 = arith.truncf %90 : vector<128x1xf32> to vector<128x1xbf16>
    %c0_56 = arith.constant 0 : index
    %c0_57 = arith.constant 0 : index
    %c0_58 = arith.constant 0 : index
    %92 = vector.load %arg22[%c0_56, %c0_57, %c0_58] : memref<4x128x2xf32, #tpu.memory_space<vmem>>, vector<1x128x2xf32>
    %93 = vector.shape_cast %92 : vector<1x128x2xf32> to vector<128x2xf32>
    %94 = vector.extract_strided_slice %93 {offsets = [0, 1], sizes = [128, 1], strides = [1, 1]} : vector<128x2xf32> to vector<128x1xf32>
    %95 = arith.truncf %94 : vector<128x1xf32> to vector<128x1xbf16>
    %96 = arith.truncf %86 : vector<128x8xf32> to vector<128x8xbf16>
    %cst_59 = arith.constant 0.000000e+00 : bf16
    %97 = vector.broadcast %cst_59 : bf16 to vector<1x8xbf16>
    %98 = vector.extract_strided_slice %96 {offsets = [0, 0], sizes = [127, 8], strides = [1, 1]} : vector<128x8xbf16> to vector<127x8xbf16>
    %99 = tpu.concatenate %97, %98 in 0 : vector<1x8xbf16>, vector<127x8xbf16> -> vector<128x8xbf16>
    %100 = vector.broadcast %91 : vector<128x1xbf16> to vector<128x8xbf16>
    %101 = arith.mulf %99, %100 : vector<128x8xbf16>
    %102 = vector.extract_strided_slice %96 {offsets = [1, 0], sizes = [127, 8], strides = [1, 1]} : vector<128x8xbf16> to vector<127x8xbf16>
    %103 = tpu.concatenate %102, %97 in 0 : vector<127x8xbf16>, vector<1x8xbf16> -> vector<128x8xbf16>
    %104 = vector.broadcast %95 : vector<128x1xbf16> to vector<128x8xbf16>
    %105 = arith.mulf %103, %104 : vector<128x8xbf16>
    %c0_60 = arith.constant 0 : index
    %c0_61 = arith.constant 0 : index
    %c0_62 = arith.constant 0 : index
    %106 = vector.load %arg8[%c0_60, %c0_61, %c0_62] : memref<3x8x8xbf16, #tpu.memory_space<vmem>>, vector<1x8x8xbf16>
    %107 = vector.shape_cast %106 : vector<1x8x8xbf16> to vector<8x8xbf16>
    %cst_63 = arith.constant dense<0.000000e+00> : vector<128x8xf32>
    %108 = tpu.matmul %101, %107, %cst_63 {dimension_numbers = #tpu.dot_dimension_numbers<[1], [0], [0], [1], [0, 0, 1, 1], [], []>} : vector<128x8xbf16>, vector<8x8xbf16>, vector<128x8xf32> -> vector<128x8xf32>
    %c1_64 = arith.constant 1 : index
    %c0_65 = arith.constant 0 : index
    %c0_66 = arith.constant 0 : index
    %109 = vector.load %arg8[%c1_64, %c0_65, %c0_66] : memref<3x8x8xbf16, #tpu.memory_space<vmem>>, vector<1x8x8xbf16>
    %110 = vector.shape_cast %109 : vector<1x8x8xbf16> to vector<8x8xbf16>
    %cst_67 = arith.constant dense<0.000000e+00> : vector<128x8xf32>
    %111 = tpu.matmul %96, %110, %cst_67 {dimension_numbers = #tpu.dot_dimension_numbers<[1], [0], [0], [1], [0, 0, 1, 1], [], []>} : vector<128x8xbf16>, vector<8x8xbf16>, vector<128x8xf32> -> vector<128x8xf32>
    %112 = arith.addf %108, %111 : vector<128x8xf32>
    %c2_68 = arith.constant 2 : index
    %c0_69 = arith.constant 0 : index
    %c0_70 = arith.constant 0 : index
    %113 = vector.load %arg8[%c2_68, %c0_69, %c0_70] : memref<3x8x8xbf16, #tpu.memory_space<vmem>>, vector<1x8x8xbf16>
    %114 = vector.shape_cast %113 : vector<1x8x8xbf16> to vector<8x8xbf16>
    %cst_71 = arith.constant dense<0.000000e+00> : vector<128x8xf32>
    %115 = tpu.matmul %105, %114, %cst_71 {dimension_numbers = #tpu.dot_dimension_numbers<[1], [0], [0], [1], [0, 0, 1, 1], [], []>} : vector<128x8xbf16>, vector<8x8xbf16>, vector<128x8xf32> -> vector<128x8xf32>
    %116 = arith.addf %112, %115 : vector<128x8xf32>
    %117 = vector.broadcast %87 : vector<1x8xf32> to vector<128x8xf32>
    %118 = arith.addf %116, %117 : vector<128x8xf32>
    %119 = arith.addf %118, %44 : vector<128x8xf32>
    %c4 = arith.constant 4 : index
    %c0_72 = arith.constant 0 : index
    %120 = vector.load %arg21[%c4, %c0_72] : memref<17x128xf32, #tpu.memory_space<vmem>>, vector<1x16xf32>
    %c0_73 = arith.constant 0 : index
    %c0_74 = arith.constant 0 : index
    %c0_75 = arith.constant 0 : index
    %121 = vector.load %arg22[%c0_73, %c0_74, %c0_75] : memref<4x128x2xf32, #tpu.memory_space<vmem>>, vector<1x128x2xf32>
    %122 = vector.shape_cast %121 : vector<1x128x2xf32> to vector<128x2xf32>
    %123 = vector.extract_strided_slice %122 {offsets = [0, 0], sizes = [128, 1], strides = [1, 1]} : vector<128x2xf32> to vector<128x1xf32>
    %124 = arith.truncf %123 : vector<128x1xf32> to vector<128x1xbf16>
    %c0_76 = arith.constant 0 : index
    %c0_77 = arith.constant 0 : index
    %c0_78 = arith.constant 0 : index
    %125 = vector.load %arg22[%c0_76, %c0_77, %c0_78] : memref<4x128x2xf32, #tpu.memory_space<vmem>>, vector<1x128x2xf32>
    %126 = vector.shape_cast %125 : vector<1x128x2xf32> to vector<128x2xf32>
    %127 = vector.extract_strided_slice %126 {offsets = [0, 1], sizes = [128, 1], strides = [1, 1]} : vector<128x2xf32> to vector<128x1xf32>
    %128 = arith.truncf %127 : vector<128x1xf32> to vector<128x1xbf16>
    %129 = arith.truncf %119 : vector<128x8xf32> to vector<128x8xbf16>
    %cst_79 = arith.constant 0.000000e+00 : bf16
    %130 = vector.broadcast %cst_79 : bf16 to vector<1x8xbf16>
    %131 = vector.extract_strided_slice %129 {offsets = [0, 0], sizes = [127, 8], strides = [1, 1]} : vector<128x8xbf16> to vector<127x8xbf16>
    %132 = tpu.concatenate %130, %131 in 0 : vector<1x8xbf16>, vector<127x8xbf16> -> vector<128x8xbf16>
    %133 = vector.broadcast %124 : vector<128x1xbf16> to vector<128x8xbf16>
    %134 = arith.mulf %132, %133 : vector<128x8xbf16>
    %135 = vector.extract_strided_slice %129 {offsets = [1, 0], sizes = [127, 8], strides = [1, 1]} : vector<128x8xbf16> to vector<127x8xbf16>
    %136 = tpu.concatenate %135, %130 in 0 : vector<127x8xbf16>, vector<1x8xbf16> -> vector<128x8xbf16>
    %137 = vector.broadcast %128 : vector<128x1xbf16> to vector<128x8xbf16>
    %138 = arith.mulf %136, %137 : vector<128x8xbf16>
    %c0_80 = arith.constant 0 : index
    %c0_81 = arith.constant 0 : index
    %c0_82 = arith.constant 0 : index
    %139 = vector.load %arg9[%c0_80, %c0_81, %c0_82] : memref<3x8x16xbf16, #tpu.memory_space<vmem>>, vector<1x8x16xbf16>
    %140 = vector.shape_cast %139 : vector<1x8x16xbf16> to vector<8x16xbf16>
    %cst_83 = arith.constant dense<0.000000e+00> : vector<128x16xf32>
    %141 = tpu.matmul %134, %140, %cst_83 {dimension_numbers = #tpu.dot_dimension_numbers<[1], [0], [0], [1], [0, 0, 1, 1], [], []>} : vector<128x8xbf16>, vector<8x16xbf16>, vector<128x16xf32> -> vector<128x16xf32>
    %c1_84 = arith.constant 1 : index
    %c0_85 = arith.constant 0 : index
    %c0_86 = arith.constant 0 : index
    %142 = vector.load %arg9[%c1_84, %c0_85, %c0_86] : memref<3x8x16xbf16, #tpu.memory_space<vmem>>, vector<1x8x16xbf16>
    %143 = vector.shape_cast %142 : vector<1x8x16xbf16> to vector<8x16xbf16>
    %cst_87 = arith.constant dense<0.000000e+00> : vector<128x16xf32>
    %144 = tpu.matmul %129, %143, %cst_87 {dimension_numbers = #tpu.dot_dimension_numbers<[1], [0], [0], [1], [0, 0, 1, 1], [], []>} : vector<128x8xbf16>, vector<8x16xbf16>, vector<128x16xf32> -> vector<128x16xf32>
    %145 = arith.addf %141, %144 : vector<128x16xf32>
    %c2_88 = arith.constant 2 : index
    %c0_89 = arith.constant 0 : index
    %c0_90 = arith.constant 0 : index
    %146 = vector.load %arg9[%c2_88, %c0_89, %c0_90] : memref<3x8x16xbf16, #tpu.memory_space<vmem>>, vector<1x8x16xbf16>
    %147 = vector.shape_cast %146 : vector<1x8x16xbf16> to vector<8x16xbf16>
    %cst_91 = arith.constant dense<0.000000e+00> : vector<128x16xf32>
    %148 = tpu.matmul %138, %147, %cst_91 {dimension_numbers = #tpu.dot_dimension_numbers<[1], [0], [0], [1], [0, 0, 1, 1], [], []>} : vector<128x8xbf16>, vector<8x16xbf16>, vector<128x16xf32> -> vector<128x16xf32>
    %149 = arith.addf %145, %148 : vector<128x16xf32>
    %150 = vector.broadcast %120 : vector<1x16xf32> to vector<128x16xf32>
    %151 = arith.addf %149, %150 : vector<128x16xf32>
    %cst_92 = arith.constant 0.000000e+00 : f32
    %152 = vector.broadcast %cst_92 : f32 to vector<128x16xf32>
    %153 = arith.cmpf oge, %151, %152 : vector<128x16xf32>
    %cst_93 = arith.constant 2.000000e-01 : f32
    %154 = vector.broadcast %cst_93 : f32 to vector<128x16xf32>
    %155 = arith.mulf %154, %151 : vector<128x16xf32>
    %156 = arith.select %153, %151, %155 : vector<128x16xi1>, vector<128x16xf32>
    %c0_94 = arith.constant 0 : index
    %c0_95 = arith.constant 0 : index
    %157 = vector.load %arg23[%c0_94, %c0_95] : memref<64x128xf32, #tpu.memory_space<vmem>>, vector<64x128xf32>
    %cst_96 = arith.constant dense<0.000000e+00> : vector<64x16xf32>
    %158 = tpu.matmul %157, %156, %cst_96 {dimension_numbers = #tpu.dot_dimension_numbers<[1], [0], [0], [1], [0, 0, 1, 1], [], []>} : vector<64x128xf32>, vector<128x16xf32>, vector<64x16xf32> -> vector<64x16xf32>
    %c0_97 = arith.constant 0 : index
    %c0_98 = arith.constant 0 : index
    %159 = vector.load %arg2[%c0_97, %c0_98] : memref<64x64xf32, #tpu.memory_space<vmem>>, vector<64x64xf32>
    %160 = vector.extract_strided_slice %159 {offsets = [0, 0], sizes = [64, 16], strides = [1, 1]} : vector<64x64xf32> to vector<64x16xf32>
    %161 = vector.extract_strided_slice %159 {offsets = [0, 16], sizes = [64, 16], strides = [1, 1]} : vector<64x64xf32> to vector<64x16xf32>
    %162 = vector.extract_strided_slice %159 {offsets = [0, 32], sizes = [64, 16], strides = [1, 1]} : vector<64x64xf32> to vector<64x16xf32>
    %163 = vector.extract_strided_slice %159 {offsets = [0, 48], sizes = [64, 16], strides = [1, 1]} : vector<64x64xf32> to vector<64x16xf32>
    %c0_99 = arith.constant 0 : index
    %c0_100 = arith.constant 0 : index
    %c0_101 = arith.constant 0 : index
    %164 = vector.load %arg26[%c0_99, %c0_100, %c0_101] : memref<3x2x64xf32, #tpu.memory_space<vmem>>, vector<1x2x64xf32>
    %165 = vector.shape_cast %164 : vector<1x2x64xf32> to vector<2x64xf32>
    %c0_102 = arith.constant 0 : index
    %c0_103 = arith.constant 0 : index
    %c0_104 = arith.constant 0 : index
    %166 = vector.load %arg27[%c0_102, %c0_103, %c0_104] : memref<3x64x2xf32, #tpu.memory_space<vmem>>, vector<1x64x2xf32>
    %167 = vector.shape_cast %166 : vector<1x64x2xf32> to vector<64x2xf32>
    %cst_105 = arith.constant dense<0.000000e+00> : vector<2x16xf32>
    %168 = tpu.matmul %165, %158, %cst_105 {dimension_numbers = #tpu.dot_dimension_numbers<[1], [0], [0], [1], [0, 0, 1, 1], [], []>} : vector<2x64xf32>, vector<64x16xf32>, vector<2x16xf32> -> vector<2x16xf32>
    %cst_106 = arith.constant dense<0.000000e+00> : vector<64x16xf32>
    %169 = tpu.matmul %167, %168, %cst_106 {dimension_numbers = #tpu.dot_dimension_numbers<[1], [0], [0], [1], [0, 0, 1, 1], [], []>} : vector<64x2xf32>, vector<2x16xf32>, vector<64x16xf32> -> vector<64x16xf32>
    %170 = arith.subf %158, %169 : vector<64x16xf32>
    %171 = arith.mulf %170, %170 : vector<64x16xf32>
    %cst_107 = arith.constant dense<0.000000e+00> : vector<2x16xf32>
    %172 = tpu.matmul %165, %171, %cst_107 {dimension_numbers = #tpu.dot_dimension_numbers<[1], [0], [0], [1], [0, 0, 1, 1], [], []>} : vector<2x64xf32>, vector<64x16xf32>, vector<2x16xf32> -> vector<2x16xf32>
    %cst_108 = arith.constant dense<0.000000e+00> : vector<64x16xf32>
    %173 = tpu.matmul %167, %172, %cst_108 {dimension_numbers = #tpu.dot_dimension_numbers<[1], [0], [0], [1], [0, 0, 1, 1], [], []>} : vector<64x2xf32>, vector<2x16xf32>, vector<64x16xf32> -> vector<64x16xf32>
    %cst_109 = arith.constant 9.99999974E-6 : f32
    %174 = vector.broadcast %cst_109 : f32 to vector<64x16xf32>
    %175 = arith.addf %173, %174 : vector<64x16xf32>
    %176 = math.rsqrt %175 : vector<64x16xf32>
    %177 = arith.mulf %170, %176 : vector<64x16xf32>
    %178 = arith.mulf %160, %177 : vector<64x16xf32>
    %179 = arith.addf %178, %161 : vector<64x16xf32>
    %c5 = arith.constant 5 : index
    %c0_110 = arith.constant 0 : index
    %180 = vector.load %arg21[%c5, %c0_110] : memref<17x128xf32, #tpu.memory_space<vmem>>, vector<1x16xf32>
    %181 = arith.truncf %179 : vector<64x16xf32> to vector<64x16xbf16>
    %c0_111 = arith.constant 0 : index
    %c0_112 = arith.constant 0 : index
    %c0_113 = arith.constant 0 : index
    %182 = vector.load %arg10[%c0_111, %c0_112, %c0_113] : memref<1x16x16xbf16, #tpu.memory_space<vmem>>, vector<1x16x16xbf16>
    %183 = vector.shape_cast %182 : vector<1x16x16xbf16> to vector<16x16xbf16>
    %cst_114 = arith.constant dense<0.000000e+00> : vector<64x16xf32>
    %184 = tpu.matmul %181, %183, %cst_114 {dimension_numbers = #tpu.dot_dimension_numbers<[1], [0], [0], [1], [0, 0, 1, 1], [], []>} : vector<64x16xbf16>, vector<16x16xbf16>, vector<64x16xf32> -> vector<64x16xf32>
    %185 = vector.broadcast %180 : vector<1x16xf32> to vector<64x16xf32>
    %186 = arith.addf %184, %185 : vector<64x16xf32>
    %cst_115 = arith.constant 0.000000e+00 : f32
    %187 = vector.broadcast %cst_115 : f32 to vector<64x16xf32>
    %188 = arith.cmpf oge, %179, %187 : vector<64x16xf32>
    %cst_116 = arith.constant 2.000000e-01 : f32
    %189 = vector.broadcast %cst_116 : f32 to vector<64x16xf32>
    %190 = arith.mulf %189, %179 : vector<64x16xf32>
    %191 = arith.select %188, %179, %190 : vector<64x16xi1>, vector<64x16xf32>
    %c0_117 = arith.constant 0 : index
    %c0_118 = arith.constant 0 : index
    %c0_119 = arith.constant 0 : index
    %192 = vector.load %arg26[%c0_117, %c0_118, %c0_119] : memref<3x2x64xf32, #tpu.memory_space<vmem>>, vector<1x2x64xf32>
    %193 = vector.shape_cast %192 : vector<1x2x64xf32> to vector<2x64xf32>
    %c0_120 = arith.constant 0 : index
    %c0_121 = arith.constant 0 : index
    %c0_122 = arith.constant 0 : index
    %194 = vector.load %arg27[%c0_120, %c0_121, %c0_122] : memref<3x64x2xf32, #tpu.memory_space<vmem>>, vector<1x64x2xf32>
    %195 = vector.shape_cast %194 : vector<1x64x2xf32> to vector<64x2xf32>
    %cst_123 = arith.constant dense<0.000000e+00> : vector<2x16xf32>
    %196 = tpu.matmul %193, %191, %cst_123 {dimension_numbers = #tpu.dot_dimension_numbers<[1], [0], [0], [1], [0, 0, 1, 1], [], []>} : vector<2x64xf32>, vector<64x16xf32>, vector<2x16xf32> -> vector<2x16xf32>
    %cst_124 = arith.constant dense<0.000000e+00> : vector<64x16xf32>
    %197 = tpu.matmul %195, %196, %cst_124 {dimension_numbers = #tpu.dot_dimension_numbers<[1], [0], [0], [1], [0, 0, 1, 1], [], []>} : vector<64x2xf32>, vector<2x16xf32>, vector<64x16xf32> -> vector<64x16xf32>
    %198 = arith.subf %191, %197 : vector<64x16xf32>
    %199 = arith.mulf %198, %198 : vector<64x16xf32>
    %cst_125 = arith.constant dense<0.000000e+00> : vector<2x16xf32>
    %200 = tpu.matmul %193, %199, %cst_125 {dimension_numbers = #tpu.dot_dimension_numbers<[1], [0], [0], [1], [0, 0, 1, 1], [], []>} : vector<2x64xf32>, vector<64x16xf32>, vector<2x16xf32> -> vector<2x16xf32>
    %cst_126 = arith.constant dense<0.000000e+00> : vector<64x16xf32>
    %201 = tpu.matmul %195, %200, %cst_126 {dimension_numbers = #tpu.dot_dimension_numbers<[1], [0], [0], [1], [0, 0, 1, 1], [], []>} : vector<64x2xf32>, vector<2x16xf32>, vector<64x16xf32> -> vector<64x16xf32>
    %cst_127 = arith.constant 9.99999974E-6 : f32
    %202 = vector.broadcast %cst_127 : f32 to vector<64x16xf32>
    %203 = arith.addf %201, %202 : vector<64x16xf32>
    %204 = math.rsqrt %203 : vector<64x16xf32>
    %205 = arith.mulf %198, %204 : vector<64x16xf32>
    %206 = arith.mulf %162, %205 : vector<64x16xf32>
    %207 = arith.addf %206, %163 : vector<64x16xf32>
    %c6 = arith.constant 6 : index
    %c0_128 = arith.constant 0 : index
    %208 = vector.load %arg21[%c6, %c0_128] : memref<17x128xf32, #tpu.memory_space<vmem>>, vector<1x16xf32>
    %c1_129 = arith.constant 1 : index
    %c0_130 = arith.constant 0 : index
    %c0_131 = arith.constant 0 : index
    %209 = vector.load %arg22[%c1_129, %c0_130, %c0_131] : memref<4x128x2xf32, #tpu.memory_space<vmem>>, vector<1x128x2xf32>
    %210 = vector.shape_cast %209 : vector<1x128x2xf32> to vector<128x2xf32>
    %211 = vector.extract_strided_slice %210 {offsets = [0, 0], sizes = [64, 1], strides = [1, 1]} : vector<128x2xf32> to vector<64x1xf32>
    %212 = arith.truncf %211 : vector<64x1xf32> to vector<64x1xbf16>
    %c1_132 = arith.constant 1 : index
    %c0_133 = arith.constant 0 : index
    %c0_134 = arith.constant 0 : index
    %213 = vector.load %arg22[%c1_132, %c0_133, %c0_134] : memref<4x128x2xf32, #tpu.memory_space<vmem>>, vector<1x128x2xf32>
    %214 = vector.shape_cast %213 : vector<1x128x2xf32> to vector<128x2xf32>
    %215 = vector.extract_strided_slice %214 {offsets = [0, 1], sizes = [64, 1], strides = [1, 1]} : vector<128x2xf32> to vector<64x1xf32>
    %216 = arith.truncf %215 : vector<64x1xf32> to vector<64x1xbf16>
    %217 = arith.truncf %207 : vector<64x16xf32> to vector<64x16xbf16>
    %cst_135 = arith.constant 0.000000e+00 : bf16
    %218 = vector.broadcast %cst_135 : bf16 to vector<1x16xbf16>
    %219 = vector.extract_strided_slice %217 {offsets = [0, 0], sizes = [63, 16], strides = [1, 1]} : vector<64x16xbf16> to vector<63x16xbf16>
    %220 = tpu.concatenate %218, %219 in 0 : vector<1x16xbf16>, vector<63x16xbf16> -> vector<64x16xbf16>
    %221 = vector.broadcast %212 : vector<64x1xbf16> to vector<64x16xbf16>
    %222 = arith.mulf %220, %221 : vector<64x16xbf16>
    %223 = vector.extract_strided_slice %217 {offsets = [1, 0], sizes = [63, 16], strides = [1, 1]} : vector<64x16xbf16> to vector<63x16xbf16>
    %224 = tpu.concatenate %223, %218 in 0 : vector<63x16xbf16>, vector<1x16xbf16> -> vector<64x16xbf16>
    %225 = vector.broadcast %216 : vector<64x1xbf16> to vector<64x16xbf16>
    %226 = arith.mulf %224, %225 : vector<64x16xbf16>
    %c0_136 = arith.constant 0 : index
    %c0_137 = arith.constant 0 : index
    %c0_138 = arith.constant 0 : index
    %227 = vector.load %arg11[%c0_136, %c0_137, %c0_138] : memref<3x16x16xbf16, #tpu.memory_space<vmem>>, vector<1x16x16xbf16>
    %228 = vector.shape_cast %227 : vector<1x16x16xbf16> to vector<16x16xbf16>
    %cst_139 = arith.constant dense<0.000000e+00> : vector<64x16xf32>
    %229 = tpu.matmul %222, %228, %cst_139 {dimension_numbers = #tpu.dot_dimension_numbers<[1], [0], [0], [1], [0, 0, 1, 1], [], []>} : vector<64x16xbf16>, vector<16x16xbf16>, vector<64x16xf32> -> vector<64x16xf32>
    %c1_140 = arith.constant 1 : index
    %c0_141 = arith.constant 0 : index
    %c0_142 = arith.constant 0 : index
    %230 = vector.load %arg11[%c1_140, %c0_141, %c0_142] : memref<3x16x16xbf16, #tpu.memory_space<vmem>>, vector<1x16x16xbf16>
    %231 = vector.shape_cast %230 : vector<1x16x16xbf16> to vector<16x16xbf16>
    %cst_143 = arith.constant dense<0.000000e+00> : vector<64x16xf32>
    %232 = tpu.matmul %217, %231, %cst_143 {dimension_numbers = #tpu.dot_dimension_numbers<[1], [0], [0], [1], [0, 0, 1, 1], [], []>} : vector<64x16xbf16>, vector<16x16xbf16>, vector<64x16xf32> -> vector<64x16xf32>
    %233 = arith.addf %229, %232 : vector<64x16xf32>
    %c2_144 = arith.constant 2 : index
    %c0_145 = arith.constant 0 : index
    %c0_146 = arith.constant 0 : index
    %234 = vector.load %arg11[%c2_144, %c0_145, %c0_146] : memref<3x16x16xbf16, #tpu.memory_space<vmem>>, vector<1x16x16xbf16>
    %235 = vector.shape_cast %234 : vector<1x16x16xbf16> to vector<16x16xbf16>
    %cst_147 = arith.constant dense<0.000000e+00> : vector<64x16xf32>
    %236 = tpu.matmul %226, %235, %cst_147 {dimension_numbers = #tpu.dot_dimension_numbers<[1], [0], [0], [1], [0, 0, 1, 1], [], []>} : vector<64x16xbf16>, vector<16x16xbf16>, vector<64x16xf32> -> vector<64x16xf32>
    %237 = arith.addf %233, %236 : vector<64x16xf32>
    %238 = vector.broadcast %208 : vector<1x16xf32> to vector<64x16xf32>
    %239 = arith.addf %237, %238 : vector<64x16xf32>
    %cst_148 = arith.constant 0.000000e+00 : f32
    %240 = vector.broadcast %cst_148 : f32 to vector<64x16xf32>
    %241 = arith.cmpf oge, %239, %240 : vector<64x16xf32>
    %cst_149 = arith.constant 2.000000e-01 : f32
    %242 = vector.broadcast %cst_149 : f32 to vector<64x16xf32>
    %243 = arith.mulf %242, %239 : vector<64x16xf32>
    %244 = arith.select %241, %239, %243 : vector<64x16xi1>, vector<64x16xf32>
    %c7 = arith.constant 7 : index
    %c0_150 = arith.constant 0 : index
    %245 = vector.load %arg21[%c7, %c0_150] : memref<17x128xf32, #tpu.memory_space<vmem>>, vector<1x16xf32>
    %c1_151 = arith.constant 1 : index
    %c0_152 = arith.constant 0 : index
    %c0_153 = arith.constant 0 : index
    %246 = vector.load %arg22[%c1_151, %c0_152, %c0_153] : memref<4x128x2xf32, #tpu.memory_space<vmem>>, vector<1x128x2xf32>
    %247 = vector.shape_cast %246 : vector<1x128x2xf32> to vector<128x2xf32>
    %248 = vector.extract_strided_slice %247 {offsets = [0, 0], sizes = [64, 1], strides = [1, 1]} : vector<128x2xf32> to vector<64x1xf32>
    %249 = arith.truncf %248 : vector<64x1xf32> to vector<64x1xbf16>
    %c1_154 = arith.constant 1 : index
    %c0_155 = arith.constant 0 : index
    %c0_156 = arith.constant 0 : index
    %250 = vector.load %arg22[%c1_154, %c0_155, %c0_156] : memref<4x128x2xf32, #tpu.memory_space<vmem>>, vector<1x128x2xf32>
    %251 = vector.shape_cast %250 : vector<1x128x2xf32> to vector<128x2xf32>
    %252 = vector.extract_strided_slice %251 {offsets = [0, 1], sizes = [64, 1], strides = [1, 1]} : vector<128x2xf32> to vector<64x1xf32>
    %253 = arith.truncf %252 : vector<64x1xf32> to vector<64x1xbf16>
    %254 = arith.truncf %244 : vector<64x16xf32> to vector<64x16xbf16>
    %cst_157 = arith.constant 0.000000e+00 : bf16
    %255 = vector.broadcast %cst_157 : bf16 to vector<1x16xbf16>
    %256 = vector.extract_strided_slice %254 {offsets = [0, 0], sizes = [63, 16], strides = [1, 1]} : vector<64x16xbf16> to vector<63x16xbf16>
    %257 = tpu.concatenate %255, %256 in 0 : vector<1x16xbf16>, vector<63x16xbf16> -> vector<64x16xbf16>
    %258 = vector.broadcast %249 : vector<64x1xbf16> to vector<64x16xbf16>
    %259 = arith.mulf %257, %258 : vector<64x16xbf16>
    %260 = vector.extract_strided_slice %254 {offsets = [1, 0], sizes = [63, 16], strides = [1, 1]} : vector<64x16xbf16> to vector<63x16xbf16>
    %261 = tpu.concatenate %260, %255 in 0 : vector<63x16xbf16>, vector<1x16xbf16> -> vector<64x16xbf16>
    %262 = vector.broadcast %253 : vector<64x1xbf16> to vector<64x16xbf16>
    %263 = arith.mulf %261, %262 : vector<64x16xbf16>
    %c0_158 = arith.constant 0 : index
    %c0_159 = arith.constant 0 : index
    %c0_160 = arith.constant 0 : index
    %264 = vector.load %arg12[%c0_158, %c0_159, %c0_160] : memref<3x16x16xbf16, #tpu.memory_space<vmem>>, vector<1x16x16xbf16>
    %265 = vector.shape_cast %264 : vector<1x16x16xbf16> to vector<16x16xbf16>
    %cst_161 = arith.constant dense<0.000000e+00> : vector<64x16xf32>
    %266 = tpu.matmul %259, %265, %cst_161 {dimension_numbers = #tpu.dot_dimension_numbers<[1], [0], [0], [1], [0, 0, 1, 1], [], []>} : vector<64x16xbf16>, vector<16x16xbf16>, vector<64x16xf32> -> vector<64x16xf32>
    %c1_162 = arith.constant 1 : index
    %c0_163 = arith.constant 0 : index
    %c0_164 = arith.constant 0 : index
    %267 = vector.load %arg12[%c1_162, %c0_163, %c0_164] : memref<3x16x16xbf16, #tpu.memory_space<vmem>>, vector<1x16x16xbf16>
    %268 = vector.shape_cast %267 : vector<1x16x16xbf16> to vector<16x16xbf16>
    %cst_165 = arith.constant dense<0.000000e+00> : vector<64x16xf32>
    %269 = tpu.matmul %254, %268, %cst_165 {dimension_numbers = #tpu.dot_dimension_numbers<[1], [0], [0], [1], [0, 0, 1, 1], [], []>} : vector<64x16xbf16>, vector<16x16xbf16>, vector<64x16xf32> -> vector<64x16xf32>
    %270 = arith.addf %266, %269 : vector<64x16xf32>
    %c2_166 = arith.constant 2 : index
    %c0_167 = arith.constant 0 : index
    %c0_168 = arith.constant 0 : index
    %271 = vector.load %arg12[%c2_166, %c0_167, %c0_168] : memref<3x16x16xbf16, #tpu.memory_space<vmem>>, vector<1x16x16xbf16>
    %272 = vector.shape_cast %271 : vector<1x16x16xbf16> to vector<16x16xbf16>
    %cst_169 = arith.constant dense<0.000000e+00> : vector<64x16xf32>
    %273 = tpu.matmul %263, %272, %cst_169 {dimension_numbers = #tpu.dot_dimension_numbers<[1], [0], [0], [1], [0, 0, 1, 1], [], []>} : vector<64x16xbf16>, vector<16x16xbf16>, vector<64x16xf32> -> vector<64x16xf32>
    %274 = arith.addf %270, %273 : vector<64x16xf32>
    %275 = vector.broadcast %245 : vector<1x16xf32> to vector<64x16xf32>
    %276 = arith.addf %274, %275 : vector<64x16xf32>
    %277 = arith.addf %276, %186 : vector<64x16xf32>
    %c8 = arith.constant 8 : index
    %c0_170 = arith.constant 0 : index
    %278 = vector.load %arg21[%c8, %c0_170] : memref<17x128xf32, #tpu.memory_space<vmem>>, vector<1x32xf32>
    %c1_171 = arith.constant 1 : index
    %c0_172 = arith.constant 0 : index
    %c0_173 = arith.constant 0 : index
    %279 = vector.load %arg22[%c1_171, %c0_172, %c0_173] : memref<4x128x2xf32, #tpu.memory_space<vmem>>, vector<1x128x2xf32>
    %280 = vector.shape_cast %279 : vector<1x128x2xf32> to vector<128x2xf32>
    %281 = vector.extract_strided_slice %280 {offsets = [0, 0], sizes = [64, 1], strides = [1, 1]} : vector<128x2xf32> to vector<64x1xf32>
    %282 = arith.truncf %281 : vector<64x1xf32> to vector<64x1xbf16>
    %c1_174 = arith.constant 1 : index
    %c0_175 = arith.constant 0 : index
    %c0_176 = arith.constant 0 : index
    %283 = vector.load %arg22[%c1_174, %c0_175, %c0_176] : memref<4x128x2xf32, #tpu.memory_space<vmem>>, vector<1x128x2xf32>
    %284 = vector.shape_cast %283 : vector<1x128x2xf32> to vector<128x2xf32>
    %285 = vector.extract_strided_slice %284 {offsets = [0, 1], sizes = [64, 1], strides = [1, 1]} : vector<128x2xf32> to vector<64x1xf32>
    %286 = arith.truncf %285 : vector<64x1xf32> to vector<64x1xbf16>
    %287 = arith.truncf %277 : vector<64x16xf32> to vector<64x16xbf16>
    %cst_177 = arith.constant 0.000000e+00 : bf16
    %288 = vector.broadcast %cst_177 : bf16 to vector<1x16xbf16>
    %289 = vector.extract_strided_slice %287 {offsets = [0, 0], sizes = [63, 16], strides = [1, 1]} : vector<64x16xbf16> to vector<63x16xbf16>
    %290 = tpu.concatenate %288, %289 in 0 : vector<1x16xbf16>, vector<63x16xbf16> -> vector<64x16xbf16>
    %291 = vector.broadcast %282 : vector<64x1xbf16> to vector<64x16xbf16>
    %292 = arith.mulf %290, %291 : vector<64x16xbf16>
    %293 = vector.extract_strided_slice %287 {offsets = [1, 0], sizes = [63, 16], strides = [1, 1]} : vector<64x16xbf16> to vector<63x16xbf16>
    %294 = tpu.concatenate %293, %288 in 0 : vector<63x16xbf16>, vector<1x16xbf16> -> vector<64x16xbf16>
    %295 = vector.broadcast %286 : vector<64x1xbf16> to vector<64x16xbf16>
    %296 = arith.mulf %294, %295 : vector<64x16xbf16>
    %c0_178 = arith.constant 0 : index
    %c0_179 = arith.constant 0 : index
    %c0_180 = arith.constant 0 : index
    %297 = vector.load %arg13[%c0_178, %c0_179, %c0_180] : memref<3x16x32xbf16, #tpu.memory_space<vmem>>, vector<1x16x32xbf16>
    %298 = vector.shape_cast %297 : vector<1x16x32xbf16> to vector<16x32xbf16>
    %cst_181 = arith.constant dense<0.000000e+00> : vector<64x32xf32>
    %299 = tpu.matmul %292, %298, %cst_181 {dimension_numbers = #tpu.dot_dimension_numbers<[1], [0], [0], [1], [0, 0, 1, 1], [], []>} : vector<64x16xbf16>, vector<16x32xbf16>, vector<64x32xf32> -> vector<64x32xf32>
    %c1_182 = arith.constant 1 : index
    %c0_183 = arith.constant 0 : index
    %c0_184 = arith.constant 0 : index
    %300 = vector.load %arg13[%c1_182, %c0_183, %c0_184] : memref<3x16x32xbf16, #tpu.memory_space<vmem>>, vector<1x16x32xbf16>
    %301 = vector.shape_cast %300 : vector<1x16x32xbf16> to vector<16x32xbf16>
    %cst_185 = arith.constant dense<0.000000e+00> : vector<64x32xf32>
    %302 = tpu.matmul %287, %301, %cst_185 {dimension_numbers = #tpu.dot_dimension_numbers<[1], [0], [0], [1], [0, 0, 1, 1], [], []>} : vector<64x16xbf16>, vector<16x32xbf16>, vector<64x32xf32> -> vector<64x32xf32>
    %303 = arith.addf %299, %302 : vector<64x32xf32>
    %c2_186 = arith.constant 2 : index
    %c0_187 = arith.constant 0 : index
    %c0_188 = arith.constant 0 : index
    %304 = vector.load %arg13[%c2_186, %c0_187, %c0_188] : memref<3x16x32xbf16, #tpu.memory_space<vmem>>, vector<1x16x32xbf16>
    %305 = vector.shape_cast %304 : vector<1x16x32xbf16> to vector<16x32xbf16>
    %cst_189 = arith.constant dense<0.000000e+00> : vector<64x32xf32>
    %306 = tpu.matmul %296, %305, %cst_189 {dimension_numbers = #tpu.dot_dimension_numbers<[1], [0], [0], [1], [0, 0, 1, 1], [], []>} : vector<64x16xbf16>, vector<16x32xbf16>, vector<64x32xf32> -> vector<64x32xf32>
    %307 = arith.addf %303, %306 : vector<64x32xf32>
    %308 = vector.broadcast %278 : vector<1x32xf32> to vector<64x32xf32>
    %309 = arith.addf %307, %308 : vector<64x32xf32>
    %cst_190 = arith.constant 0.000000e+00 : f32
    %310 = vector.broadcast %cst_190 : f32 to vector<64x32xf32>
    %311 = arith.cmpf oge, %309, %310 : vector<64x32xf32>
    %cst_191 = arith.constant 2.000000e-01 : f32
    %312 = vector.broadcast %cst_191 : f32 to vector<64x32xf32>
    %313 = arith.mulf %312, %309 : vector<64x32xf32>
    %314 = arith.select %311, %309, %313 : vector<64x32xi1>, vector<64x32xf32>
    %c0_192 = arith.constant 0 : index
    %c0_193 = arith.constant 0 : index
    %315 = vector.load %arg24[%c0_192, %c0_193] : memref<32x64xf32, #tpu.memory_space<vmem>>, vector<32x64xf32>
    %cst_194 = arith.constant dense<0.000000e+00> : vector<32x32xf32>
    %316 = tpu.matmul %315, %314, %cst_194 {dimension_numbers = #tpu.dot_dimension_numbers<[1], [0], [0], [1], [0, 0, 1, 1], [], []>} : vector<32x64xf32>, vector<64x32xf32>, vector<32x32xf32> -> vector<32x32xf32>
    %c0_195 = arith.constant 0 : index
    %c0_196 = arith.constant 0 : index
    %317 = vector.load %arg3[%c0_195, %c0_196] : memref<32x128xf32, #tpu.memory_space<vmem>>, vector<32x128xf32>
    %318 = vector.extract_strided_slice %317 {offsets = [0, 0], sizes = [32, 32], strides = [1, 1]} : vector<32x128xf32> to vector<32x32xf32>
    %319 = vector.extract_strided_slice %317 {offsets = [0, 32], sizes = [32, 32], strides = [1, 1]} : vector<32x128xf32> to vector<32x32xf32>
    %320 = vector.extract_strided_slice %317 {offsets = [0, 64], sizes = [32, 32], strides = [1, 1]} : vector<32x128xf32> to vector<32x32xf32>
    %321 = vector.extract_strided_slice %317 {offsets = [0, 96], sizes = [32, 32], strides = [1, 1]} : vector<32x128xf32> to vector<32x32xf32>
    %c1_197 = arith.constant 1 : index
    %c0_198 = arith.constant 0 : index
    %c0_199 = arith.constant 0 : index
    %322 = vector.load %arg26[%c1_197, %c0_198, %c0_199] : memref<3x2x64xf32, #tpu.memory_space<vmem>>, vector<1x2x64xf32>
    %323 = vector.shape_cast %322 : vector<1x2x64xf32> to vector<2x64xf32>
    %324 = vector.extract_strided_slice %323 {offsets = [0, 0], sizes = [2, 32], strides = [1, 1]} : vector<2x64xf32> to vector<2x32xf32>
    %c1_200 = arith.constant 1 : index
    %c0_201 = arith.constant 0 : index
    %c0_202 = arith.constant 0 : index
    %325 = vector.load %arg27[%c1_200, %c0_201, %c0_202] : memref<3x64x2xf32, #tpu.memory_space<vmem>>, vector<1x64x2xf32>
    %326 = vector.shape_cast %325 : vector<1x64x2xf32> to vector<64x2xf32>
    %327 = vector.extract_strided_slice %326 {offsets = [0, 0], sizes = [32, 2], strides = [1, 1]} : vector<64x2xf32> to vector<32x2xf32>
    %cst_203 = arith.constant dense<0.000000e+00> : vector<2x32xf32>
    %328 = tpu.matmul %324, %316, %cst_203 {dimension_numbers = #tpu.dot_dimension_numbers<[1], [0], [0], [1], [0, 0, 1, 1], [], []>} : vector<2x32xf32>, vector<32x32xf32>, vector<2x32xf32> -> vector<2x32xf32>
    %cst_204 = arith.constant dense<0.000000e+00> : vector<32x32xf32>
    %329 = tpu.matmul %327, %328, %cst_204 {dimension_numbers = #tpu.dot_dimension_numbers<[1], [0], [0], [1], [0, 0, 1, 1], [], []>} : vector<32x2xf32>, vector<2x32xf32>, vector<32x32xf32> -> vector<32x32xf32>
    %330 = arith.subf %316, %329 : vector<32x32xf32>
    %331 = arith.mulf %330, %330 : vector<32x32xf32>
    %cst_205 = arith.constant dense<0.000000e+00> : vector<2x32xf32>
    %332 = tpu.matmul %324, %331, %cst_205 {dimension_numbers = #tpu.dot_dimension_numbers<[1], [0], [0], [1], [0, 0, 1, 1], [], []>} : vector<2x32xf32>, vector<32x32xf32>, vector<2x32xf32> -> vector<2x32xf32>
    %cst_206 = arith.constant dense<0.000000e+00> : vector<32x32xf32>
    %333 = tpu.matmul %327, %332, %cst_206 {dimension_numbers = #tpu.dot_dimension_numbers<[1], [0], [0], [1], [0, 0, 1, 1], [], []>} : vector<32x2xf32>, vector<2x32xf32>, vector<32x32xf32> -> vector<32x32xf32>
    %cst_207 = arith.constant 9.99999974E-6 : f32
    %334 = vector.broadcast %cst_207 : f32 to vector<32x32xf32>
    %335 = arith.addf %333, %334 : vector<32x32xf32>
    %336 = math.rsqrt %335 : vector<32x32xf32>
    %337 = arith.mulf %330, %336 : vector<32x32xf32>
    %338 = arith.mulf %318, %337 : vector<32x32xf32>
    %339 = arith.addf %338, %319 : vector<32x32xf32>
    %c9 = arith.constant 9 : index
    %c0_208 = arith.constant 0 : index
    %340 = vector.load %arg21[%c9, %c0_208] : memref<17x128xf32, #tpu.memory_space<vmem>>, vector<1x32xf32>
    %341 = arith.truncf %339 : vector<32x32xf32> to vector<32x32xbf16>
    %c0_209 = arith.constant 0 : index
    %c0_210 = arith.constant 0 : index
    %c0_211 = arith.constant 0 : index
    %342 = vector.load %arg14[%c0_209, %c0_210, %c0_211] : memref<1x32x32xbf16, #tpu.memory_space<vmem>>, vector<1x32x32xbf16>
    %343 = vector.shape_cast %342 : vector<1x32x32xbf16> to vector<32x32xbf16>
    %cst_212 = arith.constant dense<0.000000e+00> : vector<32x32xf32>
    %344 = tpu.matmul %341, %343, %cst_212 {dimension_numbers = #tpu.dot_dimension_numbers<[1], [0], [0], [1], [0, 0, 1, 1], [], []>} : vector<32x32xbf16>, vector<32x32xbf16>, vector<32x32xf32> -> vector<32x32xf32>
    %345 = vector.broadcast %340 : vector<1x32xf32> to vector<32x32xf32>
    %346 = arith.addf %344, %345 : vector<32x32xf32>
    %cst_213 = arith.constant 0.000000e+00 : f32
    %347 = vector.broadcast %cst_213 : f32 to vector<32x32xf32>
    %348 = arith.cmpf oge, %339, %347 : vector<32x32xf32>
    %cst_214 = arith.constant 2.000000e-01 : f32
    %349 = vector.broadcast %cst_214 : f32 to vector<32x32xf32>
    %350 = arith.mulf %349, %339 : vector<32x32xf32>
    %351 = arith.select %348, %339, %350 : vector<32x32xi1>, vector<32x32xf32>
    %c1_215 = arith.constant 1 : index
    %c0_216 = arith.constant 0 : index
    %c0_217 = arith.constant 0 : index
    %352 = vector.load %arg26[%c1_215, %c0_216, %c0_217] : memref<3x2x64xf32, #tpu.memory_space<vmem>>, vector<1x2x64xf32>
    %353 = vector.shape_cast %352 : vector<1x2x64xf32> to vector<2x64xf32>
    %354 = vector.extract_strided_slice %353 {offsets = [0, 0], sizes = [2, 32], strides = [1, 1]} : vector<2x64xf32> to vector<2x32xf32>
    %c1_218 = arith.constant 1 : index
    %c0_219 = arith.constant 0 : index
    %c0_220 = arith.constant 0 : index
    %355 = vector.load %arg27[%c1_218, %c0_219, %c0_220] : memref<3x64x2xf32, #tpu.memory_space<vmem>>, vector<1x64x2xf32>
    %356 = vector.shape_cast %355 : vector<1x64x2xf32> to vector<64x2xf32>
    %357 = vector.extract_strided_slice %356 {offsets = [0, 0], sizes = [32, 2], strides = [1, 1]} : vector<64x2xf32> to vector<32x2xf32>
    %cst_221 = arith.constant dense<0.000000e+00> : vector<2x32xf32>
    %358 = tpu.matmul %354, %351, %cst_221 {dimension_numbers = #tpu.dot_dimension_numbers<[1], [0], [0], [1], [0, 0, 1, 1], [], []>} : vector<2x32xf32>, vector<32x32xf32>, vector<2x32xf32> -> vector<2x32xf32>
    %cst_222 = arith.constant dense<0.000000e+00> : vector<32x32xf32>
    %359 = tpu.matmul %357, %358, %cst_222 {dimension_numbers = #tpu.dot_dimension_numbers<[1], [0], [0], [1], [0, 0, 1, 1], [], []>} : vector<32x2xf32>, vector<2x32xf32>, vector<32x32xf32> -> vector<32x32xf32>
    %360 = arith.subf %351, %359 : vector<32x32xf32>
    %361 = arith.mulf %360, %360 : vector<32x32xf32>
    %cst_223 = arith.constant dense<0.000000e+00> : vector<2x32xf32>
    %362 = tpu.matmul %354, %361, %cst_223 {dimension_numbers = #tpu.dot_dimension_numbers<[1], [0], [0], [1], [0, 0, 1, 1], [], []>} : vector<2x32xf32>, vector<32x32xf32>, vector<2x32xf32> -> vector<2x32xf32>
    %cst_224 = arith.constant dense<0.000000e+00> : vector<32x32xf32>
    %363 = tpu.matmul %357, %362, %cst_224 {dimension_numbers = #tpu.dot_dimension_numbers<[1], [0], [0], [1], [0, 0, 1, 1], [], []>} : vector<32x2xf32>, vector<2x32xf32>, vector<32x32xf32> -> vector<32x32xf32>
    %cst_225 = arith.constant 9.99999974E-6 : f32
    %364 = vector.broadcast %cst_225 : f32 to vector<32x32xf32>
    %365 = arith.addf %363, %364 : vector<32x32xf32>
    %366 = math.rsqrt %365 : vector<32x32xf32>
    %367 = arith.mulf %360, %366 : vector<32x32xf32>
    %368 = arith.mulf %320, %367 : vector<32x32xf32>
    %369 = arith.addf %368, %321 : vector<32x32xf32>
    %c10 = arith.constant 10 : index
    %c0_226 = arith.constant 0 : index
    %370 = vector.load %arg21[%c10, %c0_226] : memref<17x128xf32, #tpu.memory_space<vmem>>, vector<1x32xf32>
    %c2_227 = arith.constant 2 : index
    %c0_228 = arith.constant 0 : index
    %c0_229 = arith.constant 0 : index
    %371 = vector.load %arg22[%c2_227, %c0_228, %c0_229] : memref<4x128x2xf32, #tpu.memory_space<vmem>>, vector<1x128x2xf32>
    %372 = vector.shape_cast %371 : vector<1x128x2xf32> to vector<128x2xf32>
    %373 = vector.extract_strided_slice %372 {offsets = [0, 0], sizes = [32, 1], strides = [1, 1]} : vector<128x2xf32> to vector<32x1xf32>
    %374 = arith.truncf %373 : vector<32x1xf32> to vector<32x1xbf16>
    %c2_230 = arith.constant 2 : index
    %c0_231 = arith.constant 0 : index
    %c0_232 = arith.constant 0 : index
    %375 = vector.load %arg22[%c2_230, %c0_231, %c0_232] : memref<4x128x2xf32, #tpu.memory_space<vmem>>, vector<1x128x2xf32>
    %376 = vector.shape_cast %375 : vector<1x128x2xf32> to vector<128x2xf32>
    %377 = vector.extract_strided_slice %376 {offsets = [0, 1], sizes = [32, 1], strides = [1, 1]} : vector<128x2xf32> to vector<32x1xf32>
    %378 = arith.truncf %377 : vector<32x1xf32> to vector<32x1xbf16>
    %379 = arith.truncf %369 : vector<32x32xf32> to vector<32x32xbf16>
    %cst_233 = arith.constant 0.000000e+00 : bf16
    %380 = vector.broadcast %cst_233 : bf16 to vector<1x32xbf16>
    %381 = vector.extract_strided_slice %379 {offsets = [0, 0], sizes = [31, 32], strides = [1, 1]} : vector<32x32xbf16> to vector<31x32xbf16>
    %382 = tpu.concatenate %380, %381 in 0 : vector<1x32xbf16>, vector<31x32xbf16> -> vector<32x32xbf16>
    %383 = vector.broadcast %374 : vector<32x1xbf16> to vector<32x32xbf16>
    %384 = arith.mulf %382, %383 : vector<32x32xbf16>
    %385 = vector.extract_strided_slice %379 {offsets = [1, 0], sizes = [31, 32], strides = [1, 1]} : vector<32x32xbf16> to vector<31x32xbf16>
    %386 = tpu.concatenate %385, %380 in 0 : vector<31x32xbf16>, vector<1x32xbf16> -> vector<32x32xbf16>
    %387 = vector.broadcast %378 : vector<32x1xbf16> to vector<32x32xbf16>
    %388 = arith.mulf %386, %387 : vector<32x32xbf16>
    %c0_234 = arith.constant 0 : index
    %c0_235 = arith.constant 0 : index
    %c0_236 = arith.constant 0 : index
    %389 = vector.load %arg15[%c0_234, %c0_235, %c0_236] : memref<3x32x32xbf16, #tpu.memory_space<vmem>>, vector<1x32x32xbf16>
    %390 = vector.shape_cast %389 : vector<1x32x32xbf16> to vector<32x32xbf16>
    %cst_237 = arith.constant dense<0.000000e+00> : vector<32x32xf32>
    %391 = tpu.matmul %384, %390, %cst_237 {dimension_numbers = #tpu.dot_dimension_numbers<[1], [0], [0], [1], [0, 0, 1, 1], [], []>} : vector<32x32xbf16>, vector<32x32xbf16>, vector<32x32xf32> -> vector<32x32xf32>
    %c1_238 = arith.constant 1 : index
    %c0_239 = arith.constant 0 : index
    %c0_240 = arith.constant 0 : index
    %392 = vector.load %arg15[%c1_238, %c0_239, %c0_240] : memref<3x32x32xbf16, #tpu.memory_space<vmem>>, vector<1x32x32xbf16>
    %393 = vector.shape_cast %392 : vector<1x32x32xbf16> to vector<32x32xbf16>
    %cst_241 = arith.constant dense<0.000000e+00> : vector<32x32xf32>
    %394 = tpu.matmul %379, %393, %cst_241 {dimension_numbers = #tpu.dot_dimension_numbers<[1], [0], [0], [1], [0, 0, 1, 1], [], []>} : vector<32x32xbf16>, vector<32x32xbf16>, vector<32x32xf32> -> vector<32x32xf32>
    %395 = arith.addf %391, %394 : vector<32x32xf32>
    %c2_242 = arith.constant 2 : index
    %c0_243 = arith.constant 0 : index
    %c0_244 = arith.constant 0 : index
    %396 = vector.load %arg15[%c2_242, %c0_243, %c0_244] : memref<3x32x32xbf16, #tpu.memory_space<vmem>>, vector<1x32x32xbf16>
    %397 = vector.shape_cast %396 : vector<1x32x32xbf16> to vector<32x32xbf16>
    %cst_245 = arith.constant dense<0.000000e+00> : vector<32x32xf32>
    %398 = tpu.matmul %388, %397, %cst_245 {dimension_numbers = #tpu.dot_dimension_numbers<[1], [0], [0], [1], [0, 0, 1, 1], [], []>} : vector<32x32xbf16>, vector<32x32xbf16>, vector<32x32xf32> -> vector<32x32xf32>
    %399 = arith.addf %395, %398 : vector<32x32xf32>
    %400 = vector.broadcast %370 : vector<1x32xf32> to vector<32x32xf32>
    %401 = arith.addf %399, %400 : vector<32x32xf32>
    %cst_246 = arith.constant 0.000000e+00 : f32
    %402 = vector.broadcast %cst_246 : f32 to vector<32x32xf32>
    %403 = arith.cmpf oge, %401, %402 : vector<32x32xf32>
    %cst_247 = arith.constant 2.000000e-01 : f32
    %404 = vector.broadcast %cst_247 : f32 to vector<32x32xf32>
    %405 = arith.mulf %404, %401 : vector<32x32xf32>
    %406 = arith.select %403, %401, %405 : vector<32x32xi1>, vector<32x32xf32>
    %c11 = arith.constant 11 : index
    %c0_248 = arith.constant 0 : index
    %407 = vector.load %arg21[%c11, %c0_248] : memref<17x128xf32, #tpu.memory_space<vmem>>, vector<1x32xf32>
    %c2_249 = arith.constant 2 : index
    %c0_250 = arith.constant 0 : index
    %c0_251 = arith.constant 0 : index
    %408 = vector.load %arg22[%c2_249, %c0_250, %c0_251] : memref<4x128x2xf32, #tpu.memory_space<vmem>>, vector<1x128x2xf32>
    %409 = vector.shape_cast %408 : vector<1x128x2xf32> to vector<128x2xf32>
    %410 = vector.extract_strided_slice %409 {offsets = [0, 0], sizes = [32, 1], strides = [1, 1]} : vector<128x2xf32> to vector<32x1xf32>
    %411 = arith.truncf %410 : vector<32x1xf32> to vector<32x1xbf16>
    %c2_252 = arith.constant 2 : index
    %c0_253 = arith.constant 0 : index
    %c0_254 = arith.constant 0 : index
    %412 = vector.load %arg22[%c2_252, %c0_253, %c0_254] : memref<4x128x2xf32, #tpu.memory_space<vmem>>, vector<1x128x2xf32>
    %413 = vector.shape_cast %412 : vector<1x128x2xf32> to vector<128x2xf32>
    %414 = vector.extract_strided_slice %413 {offsets = [0, 1], sizes = [32, 1], strides = [1, 1]} : vector<128x2xf32> to vector<32x1xf32>
    %415 = arith.truncf %414 : vector<32x1xf32> to vector<32x1xbf16>
    %416 = arith.truncf %406 : vector<32x32xf32> to vector<32x32xbf16>
    %cst_255 = arith.constant 0.000000e+00 : bf16
    %417 = vector.broadcast %cst_255 : bf16 to vector<1x32xbf16>
    %418 = vector.extract_strided_slice %416 {offsets = [0, 0], sizes = [31, 32], strides = [1, 1]} : vector<32x32xbf16> to vector<31x32xbf16>
    %419 = tpu.concatenate %417, %418 in 0 : vector<1x32xbf16>, vector<31x32xbf16> -> vector<32x32xbf16>
    %420 = vector.broadcast %411 : vector<32x1xbf16> to vector<32x32xbf16>
    %421 = arith.mulf %419, %420 : vector<32x32xbf16>
    %422 = vector.extract_strided_slice %416 {offsets = [1, 0], sizes = [31, 32], strides = [1, 1]} : vector<32x32xbf16> to vector<31x32xbf16>
    %423 = tpu.concatenate %422, %417 in 0 : vector<31x32xbf16>, vector<1x32xbf16> -> vector<32x32xbf16>
    %424 = vector.broadcast %415 : vector<32x1xbf16> to vector<32x32xbf16>
    %425 = arith.mulf %423, %424 : vector<32x32xbf16>
    %c0_256 = arith.constant 0 : index
    %c0_257 = arith.constant 0 : index
    %c0_258 = arith.constant 0 : index
    %426 = vector.load %arg16[%c0_256, %c0_257, %c0_258] : memref<3x32x32xbf16, #tpu.memory_space<vmem>>, vector<1x32x32xbf16>
    %427 = vector.shape_cast %426 : vector<1x32x32xbf16> to vector<32x32xbf16>
    %cst_259 = arith.constant dense<0.000000e+00> : vector<32x32xf32>
    %428 = tpu.matmul %421, %427, %cst_259 {dimension_numbers = #tpu.dot_dimension_numbers<[1], [0], [0], [1], [0, 0, 1, 1], [], []>} : vector<32x32xbf16>, vector<32x32xbf16>, vector<32x32xf32> -> vector<32x32xf32>
    %c1_260 = arith.constant 1 : index
    %c0_261 = arith.constant 0 : index
    %c0_262 = arith.constant 0 : index
    %429 = vector.load %arg16[%c1_260, %c0_261, %c0_262] : memref<3x32x32xbf16, #tpu.memory_space<vmem>>, vector<1x32x32xbf16>
    %430 = vector.shape_cast %429 : vector<1x32x32xbf16> to vector<32x32xbf16>
    %cst_263 = arith.constant dense<0.000000e+00> : vector<32x32xf32>
    %431 = tpu.matmul %416, %430, %cst_263 {dimension_numbers = #tpu.dot_dimension_numbers<[1], [0], [0], [1], [0, 0, 1, 1], [], []>} : vector<32x32xbf16>, vector<32x32xbf16>, vector<32x32xf32> -> vector<32x32xf32>
    %432 = arith.addf %428, %431 : vector<32x32xf32>
    %c2_264 = arith.constant 2 : index
    %c0_265 = arith.constant 0 : index
    %c0_266 = arith.constant 0 : index
    %433 = vector.load %arg16[%c2_264, %c0_265, %c0_266] : memref<3x32x32xbf16, #tpu.memory_space<vmem>>, vector<1x32x32xbf16>
    %434 = vector.shape_cast %433 : vector<1x32x32xbf16> to vector<32x32xbf16>
    %cst_267 = arith.constant dense<0.000000e+00> : vector<32x32xf32>
    %435 = tpu.matmul %425, %434, %cst_267 {dimension_numbers = #tpu.dot_dimension_numbers<[1], [0], [0], [1], [0, 0, 1, 1], [], []>} : vector<32x32xbf16>, vector<32x32xbf16>, vector<32x32xf32> -> vector<32x32xf32>
    %436 = arith.addf %432, %435 : vector<32x32xf32>
    %437 = vector.broadcast %407 : vector<1x32xf32> to vector<32x32xf32>
    %438 = arith.addf %436, %437 : vector<32x32xf32>
    %439 = arith.addf %438, %346 : vector<32x32xf32>
    %c12 = arith.constant 12 : index
    %c0_268 = arith.constant 0 : index
    %440 = vector.load %arg21[%c12, %c0_268] : memref<17x128xf32, #tpu.memory_space<vmem>>, vector<1x64xf32>
    %c2_269 = arith.constant 2 : index
    %c0_270 = arith.constant 0 : index
    %c0_271 = arith.constant 0 : index
    %441 = vector.load %arg22[%c2_269, %c0_270, %c0_271] : memref<4x128x2xf32, #tpu.memory_space<vmem>>, vector<1x128x2xf32>
    %442 = vector.shape_cast %441 : vector<1x128x2xf32> to vector<128x2xf32>
    %443 = vector.extract_strided_slice %442 {offsets = [0, 0], sizes = [32, 1], strides = [1, 1]} : vector<128x2xf32> to vector<32x1xf32>
    %444 = arith.truncf %443 : vector<32x1xf32> to vector<32x1xbf16>
    %c2_272 = arith.constant 2 : index
    %c0_273 = arith.constant 0 : index
    %c0_274 = arith.constant 0 : index
    %445 = vector.load %arg22[%c2_272, %c0_273, %c0_274] : memref<4x128x2xf32, #tpu.memory_space<vmem>>, vector<1x128x2xf32>
    %446 = vector.shape_cast %445 : vector<1x128x2xf32> to vector<128x2xf32>
    %447 = vector.extract_strided_slice %446 {offsets = [0, 1], sizes = [32, 1], strides = [1, 1]} : vector<128x2xf32> to vector<32x1xf32>
    %448 = arith.truncf %447 : vector<32x1xf32> to vector<32x1xbf16>
    %449 = arith.truncf %439 : vector<32x32xf32> to vector<32x32xbf16>
    %cst_275 = arith.constant 0.000000e+00 : bf16
    %450 = vector.broadcast %cst_275 : bf16 to vector<1x32xbf16>
    %451 = vector.extract_strided_slice %449 {offsets = [0, 0], sizes = [31, 32], strides = [1, 1]} : vector<32x32xbf16> to vector<31x32xbf16>
    %452 = tpu.concatenate %450, %451 in 0 : vector<1x32xbf16>, vector<31x32xbf16> -> vector<32x32xbf16>
    %453 = vector.broadcast %444 : vector<32x1xbf16> to vector<32x32xbf16>
    %454 = arith.mulf %452, %453 : vector<32x32xbf16>
    %455 = vector.extract_strided_slice %449 {offsets = [1, 0], sizes = [31, 32], strides = [1, 1]} : vector<32x32xbf16> to vector<31x32xbf16>
    %456 = tpu.concatenate %455, %450 in 0 : vector<31x32xbf16>, vector<1x32xbf16> -> vector<32x32xbf16>
    %457 = vector.broadcast %448 : vector<32x1xbf16> to vector<32x32xbf16>
    %458 = arith.mulf %456, %457 : vector<32x32xbf16>
    %c0_276 = arith.constant 0 : index
    %c0_277 = arith.constant 0 : index
    %c0_278 = arith.constant 0 : index
    %459 = vector.load %arg17[%c0_276, %c0_277, %c0_278] : memref<3x32x64xbf16, #tpu.memory_space<vmem>>, vector<1x32x64xbf16>
    %460 = vector.shape_cast %459 : vector<1x32x64xbf16> to vector<32x64xbf16>
    %cst_279 = arith.constant dense<0.000000e+00> : vector<32x64xf32>
    %461 = tpu.matmul %454, %460, %cst_279 {dimension_numbers = #tpu.dot_dimension_numbers<[1], [0], [0], [1], [0, 0, 1, 1], [], []>} : vector<32x32xbf16>, vector<32x64xbf16>, vector<32x64xf32> -> vector<32x64xf32>
    %c1_280 = arith.constant 1 : index
    %c0_281 = arith.constant 0 : index
    %c0_282 = arith.constant 0 : index
    %462 = vector.load %arg17[%c1_280, %c0_281, %c0_282] : memref<3x32x64xbf16, #tpu.memory_space<vmem>>, vector<1x32x64xbf16>
    %463 = vector.shape_cast %462 : vector<1x32x64xbf16> to vector<32x64xbf16>
    %cst_283 = arith.constant dense<0.000000e+00> : vector<32x64xf32>
    %464 = tpu.matmul %449, %463, %cst_283 {dimension_numbers = #tpu.dot_dimension_numbers<[1], [0], [0], [1], [0, 0, 1, 1], [], []>} : vector<32x32xbf16>, vector<32x64xbf16>, vector<32x64xf32> -> vector<32x64xf32>
    %465 = arith.addf %461, %464 : vector<32x64xf32>
    %c2_284 = arith.constant 2 : index
    %c0_285 = arith.constant 0 : index
    %c0_286 = arith.constant 0 : index
    %466 = vector.load %arg17[%c2_284, %c0_285, %c0_286] : memref<3x32x64xbf16, #tpu.memory_space<vmem>>, vector<1x32x64xbf16>
    %467 = vector.shape_cast %466 : vector<1x32x64xbf16> to vector<32x64xbf16>
    %cst_287 = arith.constant dense<0.000000e+00> : vector<32x64xf32>
    %468 = tpu.matmul %458, %467, %cst_287 {dimension_numbers = #tpu.dot_dimension_numbers<[1], [0], [0], [1], [0, 0, 1, 1], [], []>} : vector<32x32xbf16>, vector<32x64xbf16>, vector<32x64xf32> -> vector<32x64xf32>
    %469 = arith.addf %465, %468 : vector<32x64xf32>
    %470 = vector.broadcast %440 : vector<1x64xf32> to vector<32x64xf32>
    %471 = arith.addf %469, %470 : vector<32x64xf32>
    %cst_288 = arith.constant 0.000000e+00 : f32
    %472 = vector.broadcast %cst_288 : f32 to vector<32x64xf32>
    %473 = arith.cmpf oge, %471, %472 : vector<32x64xf32>
    %cst_289 = arith.constant 2.000000e-01 : f32
    %474 = vector.broadcast %cst_289 : f32 to vector<32x64xf32>
    %475 = arith.mulf %474, %471 : vector<32x64xf32>
    %476 = arith.select %473, %471, %475 : vector<32x64xi1>, vector<32x64xf32>
    %c0_290 = arith.constant 0 : index
    %c0_291 = arith.constant 0 : index
    %477 = vector.load %arg25[%c0_290, %c0_291] : memref<16x32xf32, #tpu.memory_space<vmem>>, vector<16x32xf32>
    %cst_292 = arith.constant dense<0.000000e+00> : vector<16x64xf32>
    %478 = tpu.matmul %477, %476, %cst_292 {dimension_numbers = #tpu.dot_dimension_numbers<[1], [0], [0], [1], [0, 0, 1, 1], [], []>} : vector<16x32xf32>, vector<32x64xf32>, vector<16x64xf32> -> vector<16x64xf32>
    %c0_293 = arith.constant 0 : index
    %c0_294 = arith.constant 0 : index
    %479 = vector.load %arg4[%c0_293, %c0_294] : memref<16x256xf32, #tpu.memory_space<vmem>>, vector<16x256xf32>
    %480 = vector.extract_strided_slice %479 {offsets = [0, 0], sizes = [16, 64], strides = [1, 1]} : vector<16x256xf32> to vector<16x64xf32>
    %481 = vector.extract_strided_slice %479 {offsets = [0, 64], sizes = [16, 64], strides = [1, 1]} : vector<16x256xf32> to vector<16x64xf32>
    %482 = vector.extract_strided_slice %479 {offsets = [0, 128], sizes = [16, 64], strides = [1, 1]} : vector<16x256xf32> to vector<16x64xf32>
    %483 = vector.extract_strided_slice %479 {offsets = [0, 192], sizes = [16, 64], strides = [1, 1]} : vector<16x256xf32> to vector<16x64xf32>
    %c2_295 = arith.constant 2 : index
    %c0_296 = arith.constant 0 : index
    %c0_297 = arith.constant 0 : index
    %484 = vector.load %arg26[%c2_295, %c0_296, %c0_297] : memref<3x2x64xf32, #tpu.memory_space<vmem>>, vector<1x2x64xf32>
    %485 = vector.shape_cast %484 : vector<1x2x64xf32> to vector<2x64xf32>
    %486 = vector.extract_strided_slice %485 {offsets = [0, 0], sizes = [2, 16], strides = [1, 1]} : vector<2x64xf32> to vector<2x16xf32>
    %c2_298 = arith.constant 2 : index
    %c0_299 = arith.constant 0 : index
    %c0_300 = arith.constant 0 : index
    %487 = vector.load %arg27[%c2_298, %c0_299, %c0_300] : memref<3x64x2xf32, #tpu.memory_space<vmem>>, vector<1x64x2xf32>
    %488 = vector.shape_cast %487 : vector<1x64x2xf32> to vector<64x2xf32>
    %489 = vector.extract_strided_slice %488 {offsets = [0, 0], sizes = [16, 2], strides = [1, 1]} : vector<64x2xf32> to vector<16x2xf32>
    %cst_301 = arith.constant dense<0.000000e+00> : vector<2x64xf32>
    %490 = tpu.matmul %486, %478, %cst_301 {dimension_numbers = #tpu.dot_dimension_numbers<[1], [0], [0], [1], [0, 0, 1, 1], [], []>} : vector<2x16xf32>, vector<16x64xf32>, vector<2x64xf32> -> vector<2x64xf32>
    %cst_302 = arith.constant dense<0.000000e+00> : vector<16x64xf32>
    %491 = tpu.matmul %489, %490, %cst_302 {dimension_numbers = #tpu.dot_dimension_numbers<[1], [0], [0], [1], [0, 0, 1, 1], [], []>} : vector<16x2xf32>, vector<2x64xf32>, vector<16x64xf32> -> vector<16x64xf32>
    %492 = arith.subf %478, %491 : vector<16x64xf32>
    %493 = arith.mulf %492, %492 : vector<16x64xf32>
    %cst_303 = arith.constant dense<0.000000e+00> : vector<2x64xf32>
    %494 = tpu.matmul %486, %493, %cst_303 {dimension_numbers = #tpu.dot_dimension_numbers<[1], [0], [0], [1], [0, 0, 1, 1], [], []>} : vector<2x16xf32>, vector<16x64xf32>, vector<2x64xf32> -> vector<2x64xf32>
    %cst_304 = arith.constant dense<0.000000e+00> : vector<16x64xf32>
    %495 = tpu.matmul %489, %494, %cst_304 {dimension_numbers = #tpu.dot_dimension_numbers<[1], [0], [0], [1], [0, 0, 1, 1], [], []>} : vector<16x2xf32>, vector<2x64xf32>, vector<16x64xf32> -> vector<16x64xf32>
    %cst_305 = arith.constant 9.99999974E-6 : f32
    %496 = vector.broadcast %cst_305 : f32 to vector<16x64xf32>
    %497 = arith.addf %495, %496 : vector<16x64xf32>
    %498 = math.rsqrt %497 : vector<16x64xf32>
    %499 = arith.mulf %492, %498 : vector<16x64xf32>
    %500 = arith.mulf %480, %499 : vector<16x64xf32>
    %501 = arith.addf %500, %481 : vector<16x64xf32>
    %c13 = arith.constant 13 : index
    %c0_306 = arith.constant 0 : index
    %502 = vector.load %arg21[%c13, %c0_306] : memref<17x128xf32, #tpu.memory_space<vmem>>, vector<1x64xf32>
    %503 = arith.truncf %501 : vector<16x64xf32> to vector<16x64xbf16>
    %c0_307 = arith.constant 0 : index
    %c0_308 = arith.constant 0 : index
    %c0_309 = arith.constant 0 : index
    %504 = vector.load %arg18[%c0_307, %c0_308, %c0_309] : memref<1x64x64xbf16, #tpu.memory_space<vmem>>, vector<1x64x64xbf16>
    %505 = vector.shape_cast %504 : vector<1x64x64xbf16> to vector<64x64xbf16>
    %cst_310 = arith.constant dense<0.000000e+00> : vector<16x64xf32>
    %506 = tpu.matmul %503, %505, %cst_310 {dimension_numbers = #tpu.dot_dimension_numbers<[1], [0], [0], [1], [0, 0, 1, 1], [], []>} : vector<16x64xbf16>, vector<64x64xbf16>, vector<16x64xf32> -> vector<16x64xf32>
    %507 = vector.broadcast %502 : vector<1x64xf32> to vector<16x64xf32>
    %508 = arith.addf %506, %507 : vector<16x64xf32>
    %cst_311 = arith.constant 0.000000e+00 : f32
    %509 = vector.broadcast %cst_311 : f32 to vector<16x64xf32>
    %510 = arith.cmpf oge, %501, %509 : vector<16x64xf32>
    %cst_312 = arith.constant 2.000000e-01 : f32
    %511 = vector.broadcast %cst_312 : f32 to vector<16x64xf32>
    %512 = arith.mulf %511, %501 : vector<16x64xf32>
    %513 = arith.select %510, %501, %512 : vector<16x64xi1>, vector<16x64xf32>
    %c2_313 = arith.constant 2 : index
    %c0_314 = arith.constant 0 : index
    %c0_315 = arith.constant 0 : index
    %514 = vector.load %arg26[%c2_313, %c0_314, %c0_315] : memref<3x2x64xf32, #tpu.memory_space<vmem>>, vector<1x2x64xf32>
    %515 = vector.shape_cast %514 : vector<1x2x64xf32> to vector<2x64xf32>
    %516 = vector.extract_strided_slice %515 {offsets = [0, 0], sizes = [2, 16], strides = [1, 1]} : vector<2x64xf32> to vector<2x16xf32>
    %c2_316 = arith.constant 2 : index
    %c0_317 = arith.constant 0 : index
    %c0_318 = arith.constant 0 : index
    %517 = vector.load %arg27[%c2_316, %c0_317, %c0_318] : memref<3x64x2xf32, #tpu.memory_space<vmem>>, vector<1x64x2xf32>
    %518 = vector.shape_cast %517 : vector<1x64x2xf32> to vector<64x2xf32>
    %519 = vector.extract_strided_slice %518 {offsets = [0, 0], sizes = [16, 2], strides = [1, 1]} : vector<64x2xf32> to vector<16x2xf32>
    %cst_319 = arith.constant dense<0.000000e+00> : vector<2x64xf32>
    %520 = tpu.matmul %516, %513, %cst_319 {dimension_numbers = #tpu.dot_dimension_numbers<[1], [0], [0], [1], [0, 0, 1, 1], [], []>} : vector<2x16xf32>, vector<16x64xf32>, vector<2x64xf32> -> vector<2x64xf32>
    %cst_320 = arith.constant dense<0.000000e+00> : vector<16x64xf32>
    %521 = tpu.matmul %519, %520, %cst_320 {dimension_numbers = #tpu.dot_dimension_numbers<[1], [0], [0], [1], [0, 0, 1, 1], [], []>} : vector<16x2xf32>, vector<2x64xf32>, vector<16x64xf32> -> vector<16x64xf32>
    %522 = arith.subf %513, %521 : vector<16x64xf32>
    %523 = arith.mulf %522, %522 : vector<16x64xf32>
    %cst_321 = arith.constant dense<0.000000e+00> : vector<2x64xf32>
    %524 = tpu.matmul %516, %523, %cst_321 {dimension_numbers = #tpu.dot_dimension_numbers<[1], [0], [0], [1], [0, 0, 1, 1], [], []>} : vector<2x16xf32>, vector<16x64xf32>, vector<2x64xf32> -> vector<2x64xf32>
    %cst_322 = arith.constant dense<0.000000e+00> : vector<16x64xf32>
    %525 = tpu.matmul %519, %524, %cst_322 {dimension_numbers = #tpu.dot_dimension_numbers<[1], [0], [0], [1], [0, 0, 1, 1], [], []>} : vector<16x2xf32>, vector<2x64xf32>, vector<16x64xf32> -> vector<16x64xf32>
    %cst_323 = arith.constant 9.99999974E-6 : f32
    %526 = vector.broadcast %cst_323 : f32 to vector<16x64xf32>
    %527 = arith.addf %525, %526 : vector<16x64xf32>
    %528 = math.rsqrt %527 : vector<16x64xf32>
    %529 = arith.mulf %522, %528 : vector<16x64xf32>
    %530 = arith.mulf %482, %529 : vector<16x64xf32>
    %531 = arith.addf %530, %483 : vector<16x64xf32>
    %c14 = arith.constant 14 : index
    %c0_324 = arith.constant 0 : index
    %532 = vector.load %arg21[%c14, %c0_324] : memref<17x128xf32, #tpu.memory_space<vmem>>, vector<1x64xf32>
    %c3_325 = arith.constant 3 : index
    %c0_326 = arith.constant 0 : index
    %c0_327 = arith.constant 0 : index
    %533 = vector.load %arg22[%c3_325, %c0_326, %c0_327] : memref<4x128x2xf32, #tpu.memory_space<vmem>>, vector<1x128x2xf32>
    %534 = vector.shape_cast %533 : vector<1x128x2xf32> to vector<128x2xf32>
    %535 = vector.extract_strided_slice %534 {offsets = [0, 0], sizes = [16, 1], strides = [1, 1]} : vector<128x2xf32> to vector<16x1xf32>
    %536 = arith.truncf %535 : vector<16x1xf32> to vector<16x1xbf16>
    %c3_328 = arith.constant 3 : index
    %c0_329 = arith.constant 0 : index
    %c0_330 = arith.constant 0 : index
    %537 = vector.load %arg22[%c3_328, %c0_329, %c0_330] : memref<4x128x2xf32, #tpu.memory_space<vmem>>, vector<1x128x2xf32>
    %538 = vector.shape_cast %537 : vector<1x128x2xf32> to vector<128x2xf32>
    %539 = vector.extract_strided_slice %538 {offsets = [0, 1], sizes = [16, 1], strides = [1, 1]} : vector<128x2xf32> to vector<16x1xf32>
    %540 = arith.truncf %539 : vector<16x1xf32> to vector<16x1xbf16>
    %541 = arith.truncf %531 : vector<16x64xf32> to vector<16x64xbf16>
    %cst_331 = arith.constant 0.000000e+00 : bf16
    %542 = vector.broadcast %cst_331 : bf16 to vector<1x64xbf16>
    %543 = vector.extract_strided_slice %541 {offsets = [0, 0], sizes = [15, 64], strides = [1, 1]} : vector<16x64xbf16> to vector<15x64xbf16>
    %544 = tpu.concatenate %542, %543 in 0 : vector<1x64xbf16>, vector<15x64xbf16> -> vector<16x64xbf16>
    %545 = vector.broadcast %536 : vector<16x1xbf16> to vector<16x64xbf16>
    %546 = arith.mulf %544, %545 : vector<16x64xbf16>
    %547 = vector.extract_strided_slice %541 {offsets = [1, 0], sizes = [15, 64], strides = [1, 1]} : vector<16x64xbf16> to vector<15x64xbf16>
    %548 = tpu.concatenate %547, %542 in 0 : vector<15x64xbf16>, vector<1x64xbf16> -> vector<16x64xbf16>
    %549 = vector.broadcast %540 : vector<16x1xbf16> to vector<16x64xbf16>
    %550 = arith.mulf %548, %549 : vector<16x64xbf16>
    %c0_332 = arith.constant 0 : index
    %c0_333 = arith.constant 0 : index
    %c0_334 = arith.constant 0 : index
    %551 = vector.load %arg19[%c0_332, %c0_333, %c0_334] : memref<3x64x64xbf16, #tpu.memory_space<vmem>>, vector<1x64x64xbf16>
    %552 = vector.shape_cast %551 : vector<1x64x64xbf16> to vector<64x64xbf16>
    %cst_335 = arith.constant dense<0.000000e+00> : vector<16x64xf32>
    %553 = tpu.matmul %546, %552, %cst_335 {dimension_numbers = #tpu.dot_dimension_numbers<[1], [0], [0], [1], [0, 0, 1, 1], [], []>} : vector<16x64xbf16>, vector<64x64xbf16>, vector<16x64xf32> -> vector<16x64xf32>
    %c1_336 = arith.constant 1 : index
    %c0_337 = arith.constant 0 : index
    %c0_338 = arith.constant 0 : index
    %554 = vector.load %arg19[%c1_336, %c0_337, %c0_338] : memref<3x64x64xbf16, #tpu.memory_space<vmem>>, vector<1x64x64xbf16>
    %555 = vector.shape_cast %554 : vector<1x64x64xbf16> to vector<64x64xbf16>
    %cst_339 = arith.constant dense<0.000000e+00> : vector<16x64xf32>
    %556 = tpu.matmul %541, %555, %cst_339 {dimension_numbers = #tpu.dot_dimension_numbers<[1], [0], [0], [1], [0, 0, 1, 1], [], []>} : vector<16x64xbf16>, vector<64x64xbf16>, vector<16x64xf32> -> vector<16x64xf32>
    %557 = arith.addf %553, %556 : vector<16x64xf32>
    %c2_340 = arith.constant 2 : index
    %c0_341 = arith.constant 0 : index
    %c0_342 = arith.constant 0 : index
    %558 = vector.load %arg19[%c2_340, %c0_341, %c0_342] : memref<3x64x64xbf16, #tpu.memory_space<vmem>>, vector<1x64x64xbf16>
    %559 = vector.shape_cast %558 : vector<1x64x64xbf16> to vector<64x64xbf16>
    %cst_343 = arith.constant dense<0.000000e+00> : vector<16x64xf32>
    %560 = tpu.matmul %550, %559, %cst_343 {dimension_numbers = #tpu.dot_dimension_numbers<[1], [0], [0], [1], [0, 0, 1, 1], [], []>} : vector<16x64xbf16>, vector<64x64xbf16>, vector<16x64xf32> -> vector<16x64xf32>
    %561 = arith.addf %557, %560 : vector<16x64xf32>
    %562 = vector.broadcast %532 : vector<1x64xf32> to vector<16x64xf32>
    %563 = arith.addf %561, %562 : vector<16x64xf32>
    %cst_344 = arith.constant 0.000000e+00 : f32
    %564 = vector.broadcast %cst_344 : f32 to vector<16x64xf32>
    %565 = arith.cmpf oge, %563, %564 : vector<16x64xf32>
    %cst_345 = arith.constant 2.000000e-01 : f32
    %566 = vector.broadcast %cst_345 : f32 to vector<16x64xf32>
    %567 = arith.mulf %566, %563 : vector<16x64xf32>
    %568 = arith.select %565, %563, %567 : vector<16x64xi1>, vector<16x64xf32>
    %c15 = arith.constant 15 : index
    %c0_346 = arith.constant 0 : index
    %569 = vector.load %arg21[%c15, %c0_346] : memref<17x128xf32, #tpu.memory_space<vmem>>, vector<1x64xf32>
    %c3_347 = arith.constant 3 : index
    %c0_348 = arith.constant 0 : index
    %c0_349 = arith.constant 0 : index
    %570 = vector.load %arg22[%c3_347, %c0_348, %c0_349] : memref<4x128x2xf32, #tpu.memory_space<vmem>>, vector<1x128x2xf32>
    %571 = vector.shape_cast %570 : vector<1x128x2xf32> to vector<128x2xf32>
    %572 = vector.extract_strided_slice %571 {offsets = [0, 0], sizes = [16, 1], strides = [1, 1]} : vector<128x2xf32> to vector<16x1xf32>
    %573 = arith.truncf %572 : vector<16x1xf32> to vector<16x1xbf16>
    %c3_350 = arith.constant 3 : index
    %c0_351 = arith.constant 0 : index
    %c0_352 = arith.constant 0 : index
    %574 = vector.load %arg22[%c3_350, %c0_351, %c0_352] : memref<4x128x2xf32, #tpu.memory_space<vmem>>, vector<1x128x2xf32>
    %575 = vector.shape_cast %574 : vector<1x128x2xf32> to vector<128x2xf32>
    %576 = vector.extract_strided_slice %575 {offsets = [0, 1], sizes = [16, 1], strides = [1, 1]} : vector<128x2xf32> to vector<16x1xf32>
    %577 = arith.truncf %576 : vector<16x1xf32> to vector<16x1xbf16>
    %578 = arith.truncf %568 : vector<16x64xf32> to vector<16x64xbf16>
    %cst_353 = arith.constant 0.000000e+00 : bf16
    %579 = vector.broadcast %cst_353 : bf16 to vector<1x64xbf16>
    %580 = vector.extract_strided_slice %578 {offsets = [0, 0], sizes = [15, 64], strides = [1, 1]} : vector<16x64xbf16> to vector<15x64xbf16>
    %581 = tpu.concatenate %579, %580 in 0 : vector<1x64xbf16>, vector<15x64xbf16> -> vector<16x64xbf16>
    %582 = vector.broadcast %573 : vector<16x1xbf16> to vector<16x64xbf16>
    %583 = arith.mulf %581, %582 : vector<16x64xbf16>
    %584 = vector.extract_strided_slice %578 {offsets = [1, 0], sizes = [15, 64], strides = [1, 1]} : vector<16x64xbf16> to vector<15x64xbf16>
    %585 = tpu.concatenate %584, %579 in 0 : vector<15x64xbf16>, vector<1x64xbf16> -> vector<16x64xbf16>
    %586 = vector.broadcast %577 : vector<16x1xbf16> to vector<16x64xbf16>
    %587 = arith.mulf %585, %586 : vector<16x64xbf16>
    %c0_354 = arith.constant 0 : index
    %c0_355 = arith.constant 0 : index
    %c0_356 = arith.constant 0 : index
    %588 = vector.load %arg20[%c0_354, %c0_355, %c0_356] : memref<3x64x64xbf16, #tpu.memory_space<vmem>>, vector<1x64x64xbf16>
    %589 = vector.shape_cast %588 : vector<1x64x64xbf16> to vector<64x64xbf16>
    %cst_357 = arith.constant dense<0.000000e+00> : vector<16x64xf32>
    %590 = tpu.matmul %583, %589, %cst_357 {dimension_numbers = #tpu.dot_dimension_numbers<[1], [0], [0], [1], [0, 0, 1, 1], [], []>} : vector<16x64xbf16>, vector<64x64xbf16>, vector<16x64xf32> -> vector<16x64xf32>
    %c1_358 = arith.constant 1 : index
    %c0_359 = arith.constant 0 : index
    %c0_360 = arith.constant 0 : index
    %591 = vector.load %arg20[%c1_358, %c0_359, %c0_360] : memref<3x64x64xbf16, #tpu.memory_space<vmem>>, vector<1x64x64xbf16>
    %592 = vector.shape_cast %591 : vector<1x64x64xbf16> to vector<64x64xbf16>
    %cst_361 = arith.constant dense<0.000000e+00> : vector<16x64xf32>
    %593 = tpu.matmul %578, %592, %cst_361 {dimension_numbers = #tpu.dot_dimension_numbers<[1], [0], [0], [1], [0, 0, 1, 1], [], []>} : vector<16x64xbf16>, vector<64x64xbf16>, vector<16x64xf32> -> vector<16x64xf32>
    %594 = arith.addf %590, %593 : vector<16x64xf32>
    %c2_362 = arith.constant 2 : index
    %c0_363 = arith.constant 0 : index
    %c0_364 = arith.constant 0 : index
    %595 = vector.load %arg20[%c2_362, %c0_363, %c0_364] : memref<3x64x64xbf16, #tpu.memory_space<vmem>>, vector<1x64x64xbf16>
    %596 = vector.shape_cast %595 : vector<1x64x64xbf16> to vector<64x64xbf16>
    %cst_365 = arith.constant dense<0.000000e+00> : vector<16x64xf32>
    %597 = tpu.matmul %587, %596, %cst_365 {dimension_numbers = #tpu.dot_dimension_numbers<[1], [0], [0], [1], [0, 0, 1, 1], [], []>} : vector<16x64xbf16>, vector<64x64xbf16>, vector<16x64xf32> -> vector<16x64xf32>
    %598 = arith.addf %594, %597 : vector<16x64xf32>
    %599 = vector.broadcast %569 : vector<1x64xf32> to vector<16x64xf32>
    %600 = arith.addf %598, %599 : vector<16x64xf32>
    %601 = arith.addf %600, %508 : vector<16x64xf32>
    %602 = arith.truncf %601 : vector<16x64xf32> to vector<16x64xbf16>
    %c0_366 = arith.constant 0 : index
    %c0_367 = arith.constant 0 : index
    %603 = vector.load %arg28[%c0_366, %c0_367] : memref<64x24xbf16, #tpu.memory_space<vmem>>, vector<64x24xbf16>
    %cst_368 = arith.constant dense<0.000000e+00> : vector<16x24xf32>
    %604 = tpu.matmul %602, %603, %cst_368 {dimension_numbers = #tpu.dot_dimension_numbers<[1], [0], [0], [1], [0, 0, 1, 1], [], []>} : vector<16x64xbf16>, vector<64x24xbf16>, vector<16x24xf32> -> vector<16x24xf32>
    %c0_369 = arith.constant 0 : index
    %c0_370 = arith.constant 0 : index
    %605 = vector.load %arg29[%c0_369, %c0_370] : memref<16x24xf32, #tpu.memory_space<vmem>>, vector<16x24xf32>
    %606 = arith.mulf %604, %605 : vector<16x24xf32>
    %c0_371 = arith.constant 0 : index
    %c0_372 = arith.constant 0 : index
    %607 = vector.load %arg30[%c0_371, %c0_372] : memref<24x128xf32, #tpu.memory_space<vmem>>, vector<24x128xf32>
    %cst_373 = arith.constant dense<0.000000e+00> : vector<16x128xf32>
    %608 = tpu.matmul %606, %607, %cst_373 {dimension_numbers = #tpu.dot_dimension_numbers<[1], [0], [0], [1], [0, 0, 1, 1], [], []>} : vector<16x24xf32>, vector<24x128xf32>, vector<16x128xf32> -> vector<16x128xf32>
    %c2_374 = arith.constant 2 : index
    %c0_375 = arith.constant 0 : index
    %c0_376 = arith.constant 0 : index
    %609 = vector.load %arg26[%c2_374, %c0_375, %c0_376] : memref<3x2x64xf32, #tpu.memory_space<vmem>>, vector<1x2x64xf32>
    %610 = vector.shape_cast %609 : vector<1x2x64xf32> to vector<2x64xf32>
    %611 = vector.extract_strided_slice %610 {offsets = [0, 0], sizes = [2, 16], strides = [1, 1]} : vector<2x64xf32> to vector<2x16xf32>
    %cst_377 = arith.constant dense<0.000000e+00> : vector<2x128xf32>
    %612 = tpu.matmul %611, %608, %cst_377 {dimension_numbers = #tpu.dot_dimension_numbers<[1], [0], [0], [1], [0, 0, 1, 1], [], []>} : vector<2x16xf32>, vector<16x128xf32>, vector<2x128xf32> -> vector<2x128xf32>
    %cst_378 = arith.constant 8.000000e+00 : f32
    %613 = vector.broadcast %cst_378 : f32 to vector<2x128xf32>
    %614 = arith.mulf %612, %613 : vector<2x128xf32>
    %c16 = arith.constant 16 : index
    %c0_379 = arith.constant 0 : index
    %615 = vector.load %arg21[%c16, %c0_379] : memref<17x128xf32, #tpu.memory_space<vmem>>, vector<1x128xf32>
    %616 = vector.broadcast %615 : vector<1x128xf32> to vector<2x128xf32>
    %617 = arith.addf %614, %616 : vector<2x128xf32>
    %c0_380 = arith.constant 0 : index
    %c0_381 = arith.constant 0 : index
    %c0_382 = arith.constant 0 : index
    %618 = vector.load %arg31[%c0_380, %c0_381, %c0_382] : memref<1x2x128xf32, #tpu.memory_space<vmem>>, vector<1x2x128xf32>
    %619 = vector.shape_cast %618 : vector<1x2x128xf32> to vector<2x128xf32>
    %620 = vector.shape_cast %617 : vector<2x128xf32> to vector<1x2x128xf32>
    tpu.vector_store %arg31[%c0_380, %c0_381, %c0_382], %620 {strides = array<i32>} : memref<1x2x128xf32, #tpu.memory_space<vmem>>, vector<1x2x128xf32>,
    return
  }
  func.func @transform_0(%arg0: i32) -> (i32, i32) {
    %c0_i32 = arith.constant 0 : i32
    %c0_i32_0 = arith.constant 0 : i32
    return %arg0, %c0_i32 : i32, i32
  }
  func.func @transform_1(%arg0: i32) -> (i32, i32) {
    %c0_i32 = arith.constant 0 : i32
    %c0_i32_0 = arith.constant 0 : i32
    return %arg0, %c0_i32 : i32, i32
  }
  func.func @transform_2(%arg0: i32) -> (i32, i32) {
    %c0_i32 = arith.constant 0 : i32
    %c0_i32_0 = arith.constant 0 : i32
    return %arg0, %c0_i32 : i32, i32
  }
  func.func @transform_3(%arg0: i32) -> (i32, i32) {
    %c0_i32 = arith.constant 0 : i32
    %c0_i32_0 = arith.constant 0 : i32
    return %arg0, %c0_i32 : i32, i32
  }
  func.func @transform_4(%arg0: i32) -> (i32, i32, i32) {
    %c0_i32 = arith.constant 0 : i32
    %c0_i32_0 = arith.constant 0 : i32
    %c0_i32_1 = arith.constant 0 : i32
    %c0_i32_2 = arith.constant 0 : i32
    return %c0_i32, %c0_i32_0, %c0_i32_1 : i32, i32, i32
  }
  func.func @transform_5(%arg0: i32) -> (i32, i32, i32) {
    %c0_i32 = arith.constant 0 : i32
    %c0_i32_0 = arith.constant 0 : i32
    %c0_i32_1 = arith.constant 0 : i32
    %c0_i32_2 = arith.constant 0 : i32
    return %c0_i32, %c0_i32_0, %c0_i32_1 : i32, i32, i32
  }
  func.func @transform_6(%arg0: i32) -> (i32, i32, i32) {
    %c0_i32 = arith.constant 0 : i32
    %c0_i32_0 = arith.constant 0 : i32
    %c0_i32_1 = arith.constant 0 : i32
    %c0_i32_2 = arith.constant 0 : i32
    return %c0_i32, %c0_i32_0, %c0_i32_1 : i32, i32, i32
  }
  func.func @transform_7(%arg0: i32) -> (i32, i32, i32) {
    %c0_i32 = arith.constant 0 : i32
    %c0_i32_0 = arith.constant 0 : i32
    %c0_i32_1 = arith.constant 0 : i32
    %c0_i32_2 = arith.constant 0 : i32
    return %c0_i32, %c0_i32_0, %c0_i32_1 : i32, i32, i32
  }
  func.func @transform_8(%arg0: i32) -> (i32, i32, i32) {
    %c0_i32 = arith.constant 0 : i32
    %c0_i32_0 = arith.constant 0 : i32
    %c0_i32_1 = arith.constant 0 : i32
    %c0_i32_2 = arith.constant 0 : i32
    return %c0_i32, %c0_i32_0, %c0_i32_1 : i32, i32, i32
  }
  func.func @transform_9(%arg0: i32) -> (i32, i32, i32) {
    %c0_i32 = arith.constant 0 : i32
    %c0_i32_0 = arith.constant 0 : i32
    %c0_i32_1 = arith.constant 0 : i32
    %c0_i32_2 = arith.constant 0 : i32
    return %c0_i32, %c0_i32_0, %c0_i32_1 : i32, i32, i32
  }
  func.func @transform_10(%arg0: i32) -> (i32, i32, i32) {
    %c0_i32 = arith.constant 0 : i32
    %c0_i32_0 = arith.constant 0 : i32
    %c0_i32_1 = arith.constant 0 : i32
    %c0_i32_2 = arith.constant 0 : i32
    return %c0_i32, %c0_i32_0, %c0_i32_1 : i32, i32, i32
  }
  func.func @transform_11(%arg0: i32) -> (i32, i32, i32) {
    %c0_i32 = arith.constant 0 : i32
    %c0_i32_0 = arith.constant 0 : i32
    %c0_i32_1 = arith.constant 0 : i32
    %c0_i32_2 = arith.constant 0 : i32
    return %c0_i32, %c0_i32_0, %c0_i32_1 : i32, i32, i32
  }
  func.func @transform_12(%arg0: i32) -> (i32, i32, i32) {
    %c0_i32 = arith.constant 0 : i32
    %c0_i32_0 = arith.constant 0 : i32
    %c0_i32_1 = arith.constant 0 : i32
    %c0_i32_2 = arith.constant 0 : i32
    return %c0_i32, %c0_i32_0, %c0_i32_1 : i32, i32, i32
  }
  func.func @transform_13(%arg0: i32) -> (i32, i32, i32) {
    %c0_i32 = arith.constant 0 : i32
    %c0_i32_0 = arith.constant 0 : i32
    %c0_i32_1 = arith.constant 0 : i32
    %c0_i32_2 = arith.constant 0 : i32
    return %c0_i32, %c0_i32_0, %c0_i32_1 : i32, i32, i32
  }
  func.func @transform_14(%arg0: i32) -> (i32, i32, i32) {
    %c0_i32 = arith.constant 0 : i32
    %c0_i32_0 = arith.constant 0 : i32
    %c0_i32_1 = arith.constant 0 : i32
    %c0_i32_2 = arith.constant 0 : i32
    return %c0_i32, %c0_i32_0, %c0_i32_1 : i32, i32, i32
  }
  func.func @transform_15(%arg0: i32) -> (i32, i32, i32) {
    %c0_i32 = arith.constant 0 : i32
    %c0_i32_0 = arith.constant 0 : i32
    %c0_i32_1 = arith.constant 0 : i32
    %c0_i32_2 = arith.constant 0 : i32
    return %c0_i32, %c0_i32_0, %c0_i32_1 : i32, i32, i32
  }
  func.func @transform_16(%arg0: i32) -> (i32, i32, i32) {
    %c0_i32 = arith.constant 0 : i32
    %c0_i32_0 = arith.constant 0 : i32
    %c0_i32_1 = arith.constant 0 : i32
    %c0_i32_2 = arith.constant 0 : i32
    return %c0_i32, %c0_i32_0, %c0_i32_1 : i32, i32, i32
  }
  func.func @transform_17(%arg0: i32) -> (i32, i32, i32) {
    %c0_i32 = arith.constant 0 : i32
    %c0_i32_0 = arith.constant 0 : i32
    %c0_i32_1 = arith.constant 0 : i32
    %c0_i32_2 = arith.constant 0 : i32
    return %c0_i32, %c0_i32_0, %c0_i32_1 : i32, i32, i32
  }
  func.func @transform_18(%arg0: i32) -> (i32, i32, i32) {
    %c0_i32 = arith.constant 0 : i32
    %c0_i32_0 = arith.constant 0 : i32
    %c0_i32_1 = arith.constant 0 : i32
    %c0_i32_2 = arith.constant 0 : i32
    return %c0_i32, %c0_i32_0, %c0_i32_1 : i32, i32, i32
  }
  func.func @transform_19(%arg0: i32) -> (i32, i32, i32) {
    %c0_i32 = arith.constant 0 : i32
    %c0_i32_0 = arith.constant 0 : i32
    %c0_i32_1 = arith.constant 0 : i32
    %c0_i32_2 = arith.constant 0 : i32
    return %c0_i32, %c0_i32_0, %c0_i32_1 : i32, i32, i32
  }
  func.func @transform_20(%arg0: i32) -> (i32, i32) {
    %c0_i32 = arith.constant 0 : i32
    %c0_i32_0 = arith.constant 0 : i32
    %c0_i32_1 = arith.constant 0 : i32
    return %c0_i32, %c0_i32_0 : i32, i32
  }
  func.func @transform_21(%arg0: i32) -> (i32, i32, i32) {
    %c0_i32 = arith.constant 0 : i32
    %c0_i32_0 = arith.constant 0 : i32
    %c0_i32_1 = arith.constant 0 : i32
    %c0_i32_2 = arith.constant 0 : i32
    return %c0_i32, %c0_i32_0, %c0_i32_1 : i32, i32, i32
  }
  func.func @transform_22(%arg0: i32) -> (i32, i32) {
    %c0_i32 = arith.constant 0 : i32
    %c0_i32_0 = arith.constant 0 : i32
    %c0_i32_1 = arith.constant 0 : i32
    return %c0_i32, %c0_i32_0 : i32, i32
  }
  func.func @transform_23(%arg0: i32) -> (i32, i32) {
    %c0_i32 = arith.constant 0 : i32
    %c0_i32_0 = arith.constant 0 : i32
    %c0_i32_1 = arith.constant 0 : i32
    return %c0_i32, %c0_i32_0 : i32, i32
  }
  func.func @transform_24(%arg0: i32) -> (i32, i32) {
    %c0_i32 = arith.constant 0 : i32
    %c0_i32_0 = arith.constant 0 : i32
    %c0_i32_1 = arith.constant 0 : i32
    return %c0_i32, %c0_i32_0 : i32, i32
  }
  func.func @transform_25(%arg0: i32) -> (i32, i32, i32) {
    %c0_i32 = arith.constant 0 : i32
    %c0_i32_0 = arith.constant 0 : i32
    %c0_i32_1 = arith.constant 0 : i32
    %c0_i32_2 = arith.constant 0 : i32
    return %c0_i32, %c0_i32_0, %c0_i32_1 : i32, i32, i32
  }
  func.func @transform_26(%arg0: i32) -> (i32, i32, i32) {
    %c0_i32 = arith.constant 0 : i32
    %c0_i32_0 = arith.constant 0 : i32
    %c0_i32_1 = arith.constant 0 : i32
    %c0_i32_2 = arith.constant 0 : i32
    return %c0_i32, %c0_i32_0, %c0_i32_1 : i32, i32, i32
  }
  func.func @transform_27(%arg0: i32) -> (i32, i32) {
    %c0_i32 = arith.constant 0 : i32
    %c0_i32_0 = arith.constant 0 : i32
    %c0_i32_1 = arith.constant 0 : i32
    return %c0_i32, %c0_i32_0 : i32, i32
  }
  func.func @transform_28(%arg0: i32) -> (i32, i32) {
    %c0_i32 = arith.constant 0 : i32
    %c0_i32_0 = arith.constant 0 : i32
    %c0_i32_1 = arith.constant 0 : i32
    return %c0_i32, %c0_i32_0 : i32, i32
  }
  func.func @transform_29(%arg0: i32) -> (i32, i32) {
    %c0_i32 = arith.constant 0 : i32
    %c0_i32_0 = arith.constant 0 : i32
    %c0_i32_1 = arith.constant 0 : i32
    return %c0_i32, %c0_i32_0 : i32, i32
  }
  func.func @transform_30(%arg0: i32) -> (i32, i32, i32) {
    %c0_i32 = arith.constant 0 : i32
    %c0_i32_0 = arith.constant 0 : i32
    %c0_i32_1 = arith.constant 0 : i32
    return %arg0, %c0_i32, %c0_i32_0 : i32, i32, i32
  }
}

</mosaic_0001>

<bundles_post_ra>
// kernel: generator_pallas.1
= control target key start
LH: loop header
LB: loop body
LE: loop exit
PB: predicated region body
PF: predicated region fallthrough
CT: control target
= control target key end

     0   :  { %s11902_s6 = smov 1   ;;  %s11903_s10 = smov 2   ;;  %s13804_s0 = inlined_call_operand.smem [shape: u32[31], index: -1, kind: input, shape index: {}] }
   0x1   :  { %s11950_s5 = sld [smem:[%s13804_s0]]   ;;  %s11904_s14 = smov 3  }
   0x2   :  { %s11955_s9 = sld [smem:[%s13804_s0 + %s11902_s6]]   ;;  %s11905_s18 = smov 4  }
   0x3   :  { %s11960_s13 = sld [smem:[%s13804_s0 + %s11903_s10]]   ;;  %s11906_s22 = smov 5  }
   0x4   :  { %s11965_s17 = sld [smem:[%s13804_s0 + %s11904_s14]]   ;;  %s11907_s26 = smov 6  }
   0x5   :  { %s11970_s21 = sld [smem:[%s13804_s0 + %s11905_s18]]   ;;  %s11908_s30 = smov 7  }
   0x6   :  { %s11975_s25 = sld [smem:[%s13804_s0 + %s11906_s22]]   ;;  %s11909_s4 = smov 8  }
   0x7   :  { %13838 = sst [smem:[#allocation5_spill]] %s11950_s5  ;;  %s11910_s10 = smov 9  }
   0x8   :  { %13839 = sst [smem:[#allocation6_spill]] %s11955_s9  ;;  %s11911_s15 = smov 10  }
   0x9   :  { %13840 = sst [smem:[#allocation7_spill]] %s11960_s13  ;;  %s11912_s20 = smov 11  }
   0xa   :  { %13841 = sst [smem:[#allocation8_spill]] %s11965_s17  ;;  %s11914_s1 = smov 13  }
   0xb   :  { %s11980_s29 = sld [smem:[%s13804_s0 + %s11907_s26]]   ;;  %s11913_s26 = smov 12  }
   0xc   :  { %s11985_s3 = sld [smem:[%s13804_s0 + %s11908_s30]]   ;;  %s11915_s7 = smov 14  }
   0xd   :  { %s11990_s8 = sld [smem:[%s13804_s0 + %s11909_s4]]   ;;  %s11917_s22 = smov 16  }
   0xe   :  { %s11995_s14 = sld [smem:[%s13804_s0 + %s11910_s10]]   ;;  %s11918_s28 = smov 17  }
   0xf   :  { %s12000_s19 = sld [smem:[%s13804_s0 + %s11911_s15]]   ;;  %s11916_s15 = smov 15  }
  0x10   :  { %s12005_s24 = sld [smem:[%s13804_s0 + %s11912_s20]]  }
  0x11   :  { %s12010_s30 = sld [smem:[%s13804_s0 + %s11913_s26]]  }
  0x12   :  { %13842 = sst [smem:[#allocation9_spill]] %s11985_s3 }
  0x13   :  { %13843 = sst [smem:[#allocation10_spill]] %s11990_s8 }
  0x14   :  { %s12015_s6 = sld [smem:[%s13804_s0 + %s11914_s1]]  }
  0x15   :  { %s12020_s12 = sld [smem:[%s13804_s0 + %s11915_s7]]   ;;  %s11919_s7 = smov 18  }
  0x16   :  { %13844 = sst [smem:[#allocation11_spill]] %s12005_s24 }
  0x17   :  { %13845 = sst [smem:[#allocation12_spill]] %s12010_s30 }
  0x18   :  { %s12025_s20 = sld [smem:[%s13804_s0 + %s11916_s15]]   ;;  %s11920_s15 = smov 19  }
  0x19   :  { %s12030_s27 = sld [smem:[%s13804_s0 + %s11917_s22]]   ;;  %s11921_s22 = smov 20  }
  0x1a   :  { %13846 = sst [smem:[#allocation13_spill]] %s12015_s6 }
  0x1b   :  { %13847 = sst [smem:[#allocation14_spill]] %s12020_s12 }
  0x1c   :  { %s12035_s4 = sld [smem:[%s13804_s0 + %s11918_s28]]   ;;  %s11922_s28 = smov 21  }
  0x1d   :  { %s12040_s17 = sld [smem:[%s13804_s0 + %s11919_s7]]   ;;  %s11923_s7 = smov 22  }
  0x1e   :  { %13848 = sst [smem:[#allocation15_spill]] %s12025_s20 }
  0x1f   :  { %13849 = sst [smem:[#allocation16_spill]] %s12030_s27 }
  0x20   :  { %s12045_s20 = sld [smem:[%s13804_s0 + %s11920_s15]]   ;;  %s11924_s15 = smov 23  }
  0x21   :  { %s12050_s27 = sld [smem:[%s13804_s0 + %s11921_s22]]   ;;  %s11925_s22 = smov 24  }
  0x22   :  { %13850 = sst [smem:[#allocation17_spill]] %s12035_s4 }
  0x23   :  { %13851 = sst [smem:[#allocation18_spill]] %s12040_s17 }
  0x24   :  { %s12055_s4 = sld [smem:[%s13804_s0 + %s11922_s28]]   ;;  %s11926_s28 = smov 25  }
  0x25   :  { %s12060_s17 = sld [smem:[%s13804_s0 + %s11923_s7]]   ;;  %s11927_s7 = smov 26  }
  0x26   :  { %13852 = sst [smem:[#allocation19_spill]] %s12045_s20 }
  0x27   :  { %s12065_s20 = sld [smem:[%s13804_s0 + %s11924_s15]]   ;;  %s11928_s15 = smov 27  }
  0x28   :  { %s12070_s12 = sld [smem:[%s13804_s0 + %s11925_s22]]   ;;  %s11929_s22 = smov 28  }
  0x29   :  { %s12075_s6 = sld [smem:[%s13804_s0 + %s11926_s28]]   ;;  %s11930_s28 = smov 29  }
  0x2a   :  { %13853 = sst [smem:[#allocation20_spill]] %s12055_s4 }
  0x2b   :  { %s12080_s13 = sld [smem:[%s13804_s0 + %s11927_s7]]   ;;  %s11931_s7 = smov 30  }
  0x2c   :  { %s12095_s30 = sld [smem:[%s13804_s0 + %s11930_s28]]  }
  0x2d   :  { %13854 = sst [smem:[#allocation21_spill]] %s12065_s20 }
  0x2e   :  { %13855 = sst [smem:[#allocation22_spill]] %s12070_s12 }
  0x2f   :  { %13856 = sst [smem:[#allocation23_spill]] %s12075_s6 }
  0x30   :  { %s12085_s20 = sld [smem:[%s13804_s0 + %s11928_s15]]  }
  0x31   :  { %s12090_s12 = sld [smem:[%s13804_s0 + %s11929_s22]]  }
  0x32   :  { %s12100_s24 = sld [smem:[%s13804_s0 + %s11931_s7]]  }
  0x37   :  { %13857 = sst [smem:[#allocation24_spill]] %s12090_s12 }
  0x38   :  { %66 = vsyncpa [#allocation3], 0 }
  0x39   :  { %68 = vsyncpa [#allocation3 + $0x1], 0  ;;  %s12102_s15 = smov 0   ;;  %s12104_s16 = smov 0  }
  0x3a   :  { %s12106_s18 = smov 0   ;;  %s12108_s22 = smov 0  }
  0x3b LB: > { %s13858_s12 = sld [smem:[#allocation24_spill]]  ;;  %s13859_s6 = sld [smem:[#allocation23_spill]]  ;;  %s11888_s15 = sphi %s12102_s15, %s13888_s15   ;;  %s11900_s22 = sphi %s12108_s22, %s13891_s22   ;;  %s11896_s18 = sphi %s12106_s18, %s13890_s18   ;;  %s11892_s16 = sphi %s12104_s16, %s13889_s16  }
  0x3c   : > { %s13860_s4 = sld [smem:[#allocation20_spill]]  ;;  %s13861_s8 = sld [smem:[#allocation10_spill]] }
  0x3d   : > { %s13862_s3 = sld [smem:[#allocation9_spill]]  ;;  %s12123_s0 = sadd.s32 4294967295, %s11900_s22  }
  0x3e   : > { %s9418_s23 = sadd.s32 4294967294, %s11900_s22   ;;  %s12127_s26 = sadd.s32 1, %s11900_s22  }
  0x3f   : > { %s731_s28 = sadd.s32 1, %s11896_s18  ;;  %s728_s1 = ssub.s32 %s11900_s22, %s12127_s26 }
  0x40   : > { %p741_p0 = scmp.ne.s32.totalorder %s11896_s18, %s11892_s16  ;;  %p729_p1 = scmp.eq.s32.totalorder %s728_s1, 0 }
  0x41   : > { %p742_p2 = scmp.eq.s32.totalorder %s12123_s0, 1  ;;  %p747_p3 = scmp.ne.s32.totalorder %s11892_s16, %s11888_s15 }
  0x42   : > { %p748_p4 = scmp.eq.s32.totalorder %s9418_s23, 1  ;;  %p9421_p7 = scmp.ge.s32.totalorder %s11900_s22, 1 }
  0x43   : > { %s12138_s2 = scalar_select %p729_p1, %s11896_s18, %s731_s28  }
  0x44   : > { %p12140_p5 = por %p742_p2, %p741_p0  ;;  %p12144_p6 = por %p748_p4, %p747_p3 }
  0x45   : > { %p881_p8 = scmp.lt.s32.totalorder %s11900_s22, 3 }
  0x47   : > { %p882_p9 = pnand %p9421_p7, %p881_p8 }
  0x48   : > { %v1022_v0 = vld [vmem:[%s13860_s4 + $0x20] sm:$0xff] (!%p882_p9)  ;;  %v1023_v1 = vld [vmem:[%s13860_s4 + $0x28] sm:$0xff] (!%p882_p9)  ;;  %v13818_v3 = vmov (!%p882_p9), 0   ;;  %v1024_v6 = vld [vmem:[%s13860_s4 + $0x30] sm:$0xff] (!%p882_p9)  ;;  %s9423_s11 = sshll.u32 (!%p882_p9), %s12123_s0, 4  ;;  %vm1268_vm0 = vcmask (!%p882_p9), 1041408  }
  0x49   : > { %885 = sbr.rel (%p882_p9) target bundleno = 10598 (0x2966), region = 140  ;;  %v1018_v2 = vld [vmem:[%s13860_s4] sm:$0xff] (!%p882_p9)  ;;  %11709 = vset.pattern.permute.xlu1 (!%p882_p9), %v13818_v3  ;;  %11708 = vset.pattern.permute.xlu0 (!%p882_p9), %v13818_v3  ;;  %v12155_v4 = vpack.c.bf16 (!%p882_p9), %v1023_v1, %v1022_v0  ;;  %v1019_v5 = vld [vmem:[%s13860_s4 + $0x8] sm:$0xff] (!%p882_p9)  ;;  %v1025_v7 = vld [vmem:[%s13860_s4 + $0x38] sm:$0xff] (!%p882_p9)  ;;  %p976_p10 = scmp.lt.s32.totalorder (!%p882_p9), %s9423_s11, 31  ;;  %vm1251_vm1 = vcmask (!%p882_p9), 31744  }
  0x4a   : > { %v12161_v8 = vpack.c.bf16 (!%p882_p9), %v1019_v5, %v1018_v2  ;;  %v1020_v9 = vld [vmem:[%s13860_s4 + $0x10] sm:$0xff] (!%p882_p9)  ;;  %v1021_v10 = vld [vmem:[%s13860_s4 + $0x18] sm:$0xff] (!%p882_p9)  ;;  %v12166_v11 = vpack.c.bf16 (!%p882_p9), %v1025_v7, %v1024_v6  ;;  %v1026_v15 = vld [vmem:[%s13860_s4 + $0x40] sm:$0xff] (!%p882_p9)  ;;  %s13865_s5 = sld [smem:[#allocation5_spill]] (!%p882_p9)  ;;  %vm1050_vm2 = vsmask.f32 (!%p882_p9), 256 }
  0x4b   : > { %1137 = vperm.xlu1 (!%p882_p9), %11709, %v12155_v4   ;;  %v1028_v12 = vld [vmem:[%s13860_s4 + $0x50] sm:$0xff] (!%p882_p9)  ;;  %v12170_v13 = vpack.c.bf16 (!%p882_p9), %v1021_v10, %v1020_v9  ;;  %v1029_v14 = vld [vmem:[%s13860_s4 + $0x58] sm:$0xff] (!%p882_p9)  ;;  %v1027_v16 = vld [vmem:[%s13860_s4 + $0x48] sm:$0xff] (!%p882_p9)  ;;  %vm1173_vm3 = vsmask.f32 (!%p882_p9), 7424  ;;  %vm1122_vm4 = vcmask (!%p882_p9), 1040384  }
  0x4c   : > { %1127 = vperm.xlu0 (!%p882_p9), %11708, %v12161_v8   ;;  %v1032_v17 = vld [vmem:[%s13860_s4 + $0x70] sm:$0xff] (!%p882_p9)  ;;  %v1033_v18 = vld [vmem:[%s13860_s4 + $0x78] sm:$0xff] (!%p882_p9)  ;;  %v9432_v19 = vld [vmem:[%s11970_s21 + $0x2] sm:$0x3] (!%p882_p9)  ;;  %v12184_v23 = vpack.c.bf16 (!%p882_p9), %v1029_v14, %v1028_v12  ;;  %v12191_v25 = vpack.c.bf16 (!%p882_p9), %v1027_v16, %v1026_v15  ;;  %vm1205_vm6 = vcmask (!%p882_p9), 1047552   ;;  %vm1742_vm8 = vcmask (!%p882_p9), 1043456  }
  0x4d   : > { %v1030_v20 = vld [vmem:[%s13860_s4 + $0x60] sm:$0xff] (!%p882_p9)  ;;  %11616 = vmatprep.subr.msk.bf16.mxu0 (!%p882_p9), %vm1268_vm0, %v9432_v19  ;;  %v1270_v21 = vsel (!%p882_p9), %vm1268_vm0, %v9432_v19, 0  ;;  %11617 = vmatprep.subr.msk.bf16.mxu1 (!%p882_p9), %vm1268_vm0, %v9432_v19  ;;  %v1031_v24 = vld [vmem:[%s13860_s4 + $0x68] sm:$0xff] (!%p882_p9)  ;;  %v12202_v33 = vpack.c.bf16 (!%p882_p9), %v1033_v18, %v1032_v17  ;;  %v13816_v18 = vmov (!%p882_p9), 1   ;;  %vm12328_vm5 = vmand (!%p882_p9), %vm1122_vm4, %vm1050_vm2  ;;  %vm1717_vm14 = vcmask (!%p882_p9), 64512   ;;  %s13870_s9 = sld [smem:[#allocation6_spill]] (!%p882_p9) }
  0x4e   : > { %v1248_v22 = vld [vmem:[%s11970_s21] sm:$0x3] (!%p882_p9)  ;;  %10309 = vmatpush3.bf16.msra.mxu0 (!%p882_p9), %v1270_v21  ;;  %11315 = vmatpush3.bf16.msra.mxu1 (!%p882_p9), %v1270_v21  ;;  %v12213_v40 = vpack.c.bf16 (!%p882_p9), %v1031_v24, %v1030_v20  ;;  %vm12400_vm7 = vmand (!%p882_p9), %vm1205_vm6, %vm1173_vm3  ;;  %s9425_s1 = sshll.u32 (!%p882_p9), %s12123_s0, 3 }
  0x4f   : > { %1142 = vperm.xlu1 (!%p882_p9), %11709, %v12166_v11   ;;  %11618 = vmatprep.subr.msk.bf16.mxu0 (!%p882_p9), %vm1268_vm0, %v1248_v22  ;;  %v1394_v38 = vsel (!%p882_p9), %vm1268_vm0, %v1248_v22, 0  ;;  %p982_p11 = scmp.lt.s32.totalorder (!%p882_p9), %s9425_s1, 15 }
  0x50   : > { %s13893_s11 = smov (!%p976_p10, %s9423_s11), 31  ;;  %1132 = vperm.xlu0 %11708, %v12170_v13  }
  0x51   : > { %s9424_s23 = sshll.u32 %s13893_s11, 3  ;;  %s13895_s1 = smov (!%p982_p11, %s9425_s1), 15 }
  0x52   : > { %s12188_s28 = scalar_lea.vmem %s13865_s5, %s9424_s23  ;;  %s9426_s11 = sshll.u32 %s13895_s1, 3 }
  0x53   : > { %v1001_v26 = vld [vmem:[%s12188_s28] sm:$0xff]  ;;  %v1002_v27 = vld [vmem:[%s12188_s28 + $0x8] sm:$0xff]  ;;  %v1003_v28 = vld [vmem:[%s12188_s28 + $0x10] sm:$0xff]  ;;  %1152 = vperm.xlu1 %11709, %v12184_v23   ;;  %s985_s23 = scalar_lea.vmem %s13870_s9, %s9426_s11  ;;  %s11938_s1 = smov 32  }
  0x54   : > { %v12197_v29 = vpack.c.bf16 %v1002_v27, %v1001_v26  ;;  %v1004_v30 = vld [vmem:[%s12188_s28 + $0x18] sm:$0xff]  ;;  %v1005_v31 = vld [vmem:[%s12188_s28 + $0x20] sm:$0xff]  ;;  %v1006_v32 = vld [vmem:[%s12188_s28 + $0x28] sm:$0xff]  ;;  %1147 = vperm.xlu0 %11708, %v12191_v25   ;;  %s13820_s11 = smov 96   ;;  %s13878_s9 = smov 96  }
  0x55   : > { %v12204_v34 = vpack.c.bf16 %v1004_v30, %v1003_v28  ;;  %v12206_v35 = vpack.c.bf16 %v1006_v32, %v1005_v31  ;;  %v1007_v36 = vld [vmem:[%s12188_s28 + $0x30] sm:$0xff]  ;;  %v1008_v37 = vld [vmem:[%s12188_s28 + $0x38] sm:$0xff]  ;;  %v1009_v39 = vld [vmem:[%s12188_s28 + $0x40] sm:$0xff] }
  0x56   : > { %v1052_v41 = vshrl.u32 %v12197_v29, 16  ;;  %v1055_v42 = vshll.u32 %v12197_v29, 16  ;;  %10310 = vmatprep.mubr.msk.bf16.mxu0 %vm1251_vm1, %v12197_v29  ;;  %v12219_v43 = vpack.c.bf16 %v1008_v37, %v1007_v36  ;;  %v1010_v44 = vld [vmem:[%s12188_s28 + $0x48] sm:$0xff]  ;;  %v1011_v45 = vld [vmem:[%s12188_s28 + $0x50] sm:$0xff]  ;;  %v1012_v46 = vld [vmem:[%s12188_s28 + $0x58] sm:$0xff] }
  0x57   : > { %v1059_v47 = vshrl.u32 %v12204_v34, 16  ;;  %v1062_v48 = vshll.u32 %v12204_v34, 16  ;;  %10311 = vmatmul.mubr.msk.bf16.vlgmr.msra.gmra.mrb[0].mxu0 %vm1251_vm1, %v12204_v34  ;;  %v1067_v49 = vshrl.u32 %v12206_v35, 16  ;;  %v1070_v50 = vshll.u32 %v12206_v35, 16  ;;  %v1013_v51 = vld [vmem:[%s12188_s28 + $0x60] sm:$0xff]  ;;  %v1014_v52 = vld [vmem:[%s12188_s28 + $0x68] sm:$0xff]  ;;  %1162 = vperm.xlu1 %11709, %v12202_v33  }
  0x58   : > { %v12233_v53 = vrot.slane %v1052_v41, 7  ;;  %v1174_v54 = vrot.slane %v1055_v42, 1  ;;  %10314 = vmatprep.mubr.msk.bf16.mxu0 %vm1251_vm1, %v12206_v35  ;;  %v1075_v55 = vshrl.u32 %v12219_v43, 16  ;;  %v1078_v56 = vshll.u32 %v12219_v43, 16  ;;  %10327 = vmatpush3.bf16.msra.mxu0 %v1394_v38  ;;  %v1015_v61 = vld [vmem:[%s12188_s28 + $0x70] sm:$0xff]  ;;  %v1016_v63 = vld [vmem:[%s12188_s28 + $0x78] sm:$0xff] }
  0x59   : > { %v1061_v57 = vrot.slane %v1059_v47, 7  ;;  %v1069_v58 = vrot.slane %v1067_v49, 7  ;;  %v12245_v59 = vpack.c.bf16 %v1010_v44, %v1009_v39  ;;  %v12247_v60 = vpack.c.bf16 %v1012_v46, %v1011_v45  ;;  %1157 = vperm.xlu0 %11708, %v12213_v40   ;;  %s11937_s28 = smov 112  }
  0x5a   : > { %v1077_v62 = vrot.slane %v1075_v55, 7  ;;  %v12254_v0 = vpack.c.bf16 %v1014_v52, %v1013_v51  ;;  %v1175_v7 = vor.u32 %v1174_v54, %v1052_v41  ;;  %v12280_v20 = vpack.c.bf16 %v1016_v63, %v1015_v61  ;;  %v9449_v41 = vld [vmem:[%s11970_s21 + $0x4] sm:$0x3] }
  0x5b   : > { %v1072_v1 = vor.u32 %v1070_v50, %v1069_v58  ;;  %v1064_v2 = vor.u32 %v1062_v48, %v1061_v57  ;;  %v1083_v5 = vshrl.u32 %v12245_v59, 16  ;;  %v1091_v6 = vshrl.u32 %v12247_v60, 16  ;;  %10318 = vmatprep.mubr.msk.bf16.mxu1 %vm1251_vm1, %v12245_v59  ;;  %11711 = vset.pattern.permute.xlu1 %v13816_v18 }
  0x5c   : > { %v1080_v9 = vor.u32 %v1078_v56, %v1077_v62  ;;  %v1094_v10 = vshll.u32 %v12247_v60, 16  ;;  %v1086_v12 = vshll.u32 %v12245_v59, 16  ;;  %10319 = vmatmul.mubr.msk.bf16.vlgmr.msra.gmra.mrb[0].mxu1 %vm1251_vm1, %v12247_v60  ;;  %v1099_v21 = vshrl.u32 %v12254_v0, 16  ;;  %1213 = vperm.xlu1 %11711, %v12170_v13  }
  0x5d   : > { %v12268_v14 = vsel %vm1050_vm2, %v1061_v57, %v1072_v1  ;;  %v12272_v15 = vsel %vm1050_vm2, %v12233_v53, %v1064_v2  ;;  %v1085_v16 = vrot.slane %v1083_v5, 7  ;;  %v1093_v17 = vrot.slane %v1091_v6, 7  ;;  %10322 = vmatprep.mubr.msk.bf16.mxu1 %vm1251_vm1, %v12254_v0  ;;  %11710 = vset.pattern.permute.xlu0 %v13816_v18 }
  0x5e   : > { %v12278_v19 = vsel %vm1050_vm2, %v1069_v58, %v1080_v9  ;;  %v1102_v22 = vshll.u32 %v12254_v0, 16  ;;  %v1176_v27 = vrot.slane %v1062_v48, 1  ;;  %1209 = vperm.xlu0 %11710, %v12161_v8   ;;  %v1101_v28 = vrot.slane %v1099_v21, 7  ;;  %11619 = vmatprep.subr.msk.bf16.mxu0 %vm1268_vm0, %v9449_v41 }
  0x5f   : > { %v1096_v24 = vor.u32 %v1094_v10, %v1093_v17  ;;  %v1088_v26 = vor.u32 %v1086_v12, %v1085_v16  ;;  %10315 = vmatmul.mubr.msk.bf16.gmra.mrb[4].mxu0 %vm1251_vm1, %v12219_v43  ;;  %v1107_v30 = vshrl.u32 %v12280_v20, 16  ;;  %v1110_v31 = vshll.u32 %v12280_v20, 16 }
  0x60   : > { %v12294_v13 = vsel %vm1173_vm3, %v1175_v7, %v1176_v27  ;;  %v1104_v38 = vor.u32 %v1102_v22, %v1101_v28  ;;  %1217 = vperm.xlu1 %11711, %v12155_v4   ;;  %v1178_v44 = vor.u32 %v1176_v27, %v1059_v47  ;;  %v1179_v45 = vrot.slane %v1070_v50, 1 }
  0x61   : > { %v1097_v32 = vsel %vm1050_vm2, %v1085_v16, %v1096_v24  ;;  %v1089_v36 = vsel %vm1050_vm2, %v1077_v62, %v1088_v26  ;;  %v1109_v37 = vrot.slane %v1107_v30, 7  ;;  %v1182_v4 = vrot.slane %v1078_v56, 1 }
  0x62   : > { %1221 = vperm.xlu0 %11710, %v12166_v11   ;;  %v1105_v39 = vsel %vm1050_vm2, %v1093_v17, %v1104_v38  ;;  %v1185_v48 = vrot.slane %v1086_v12, 1  ;;  %v1180_v11 = vsel %vm1173_vm3, %v1178_v44, %v1179_v45  ;;  %v1181_v51 = vor.u32 %v1179_v45, %v1067_v49 }
  0x63   : > { %v1112_v8 = vor.u32 %v1110_v31, %v1109_v37  ;;  %v1188_v52 = vrot.slane %v1094_v10, 1  ;;  %v1191_v54 = vrot.slane %v1102_v22, 1  ;;  %v1184_v34 = vor.u32 %v1182_v4, %v1075_v55 }
  0x64   : > { %10323 = vmatmul.mubr.msk.bf16.gmra.mrb[4].mxu1 %vm1251_vm1, %v12280_v20  ;;  %1225 = vperm.xlu1 %11711, %v12191_v25   ;;  %v1183_v47 = vsel %vm1173_vm3, %v1181_v51, %v1182_v4  ;;  %v1187_v35 = vor.u32 %v1185_v48, %v1083_v5  ;;  %v1194_v49 = vrot.slane %v1110_v31, 1  ;;  %v1057_v43 = vor.u32 %v1055_v42, %v12233_v53  ;;  %v9468_v51 = vld [vmem:[%s11980_s29 + $0x4] sm:$0xf] }
  0x65   : > { %v1113_v46 = vsel %vm1050_vm2, %v1101_v28, %v1112_v8  ;;  %v1190_v50 = vor.u32 %v1188_v52, %v1091_v6  ;;  %v1186_v56 = vsel %vm1173_vm3, %v1184_v34, %v1185_v48  ;;  %v1193_v57 = vor.u32 %v1191_v54, %v1099_v21 }
  0x66   : > { %1229 = vperm.xlu0 %11710, %v12184_v23   ;;  %v1189_v58 = vsel %vm1173_vm3, %v1187_v35, %v1188_v52  ;;  %v1520_v61 = vsel %vm1268_vm0, %v9449_v41, 0  ;;  %v12434_v52 = vld [vmem:[%s12050_s27] ss:$0 sm:$0xff] }
  0x67   : > { %v1192_v25 = vsel %vm1173_vm3, %v1190_v50, %v1191_v54  ;;  %v1195_v23 = vsel %vm1173_vm3, %v1193_v57, %v1194_v49 }
  0x68   : > { %1233 = vperm.xlu1 %11711, %v12213_v40  }
  0x6a   : > { %1237 = vperm.xlu0 %11710, %v12202_v33   ;;  %v1124_v33 = vsel %vm12328_vm5, 0, %v1057_v43 }
  0xca   : > { %v12337_v60 = vpop.permute.xlu1 %1137 }
  0xcb   : > { %v12334_v40 = vpop.permute.xlu0 %1127  ;;  %v1167_v29 = vmul.bf16 %v12337_v60, %v12268_v14 }
  0xcc   : > { %v1165_v59 = vmul.bf16 %v12334_v40, %v1124_v33 }
  0xce   : > { %10328 = vmatprep.mubr.msk.bf16.mxu0 %vm1251_vm1, %v1165_v59  ;;  %v12351_v63 = vpop.permute.xlu1 %1142 }
  0xcf   : > { %v12342_v42 = vpop.permute.xlu0 %1132  ;;  %v1168_v0 = vmul.bf16 %v12351_v63, %v12278_v19 }
  0xd0   : > { %v1166_v53 = vmul.bf16 %v12342_v42, %v12272_v15 }
  0xd2   : > { %10329 = vmatmul.mubr.msk.bf16.vlgmr.msra.gmra.mrb[0].mxu0 %vm1251_vm1, %v1166_v53  ;;  %v12358_v2 = vpop.permute.xlu1 %1152 }
  0xd3   : > { %10332 = vmatprep.mubr.msk.bf16.mxu0 %vm1251_vm1, %v1167_v29  ;;  %10345 = vmatpush3.bf16.msra.mxu0 %v1520_v61  ;;  %v12349_v62 = vpop.permute.xlu0 %1147  ;;  %v1170_v6 = vmul.bf16 %v12358_v2, %v1097_v32  ;;  %v1196_v32 = vor.u32 %v1194_v49, %v1107_v30  ;;  %v1712_v30 = vld [vmem:[%s11975_s25] sm:$0xf] }
  0xd4   : > { %v1169_v1 = vmul.bf16 %v12349_v62, %v1089_v36  ;;  %11620 = vmatprep.subr.msk.bf16.mxu1 %vm1742_vm8, %v1712_v30  ;;  %v1744_v8 = vsel %vm1742_vm8, %v1712_v30, 0 }
  0xd5   : > { %v1207_v38 = vsel %vm12400_vm7, %v1196_v32, 0  ;;  %10363 = vmatpush3.bf16.msra.mxu1 %v1744_v8  ;;  %v2020_v8 = vld [vmem:[%s11980_s29] sm:$0xf] }
  0xd6   : > { %v12366_v9 = vpop.permute.xlu1 %1162  ;;  %11621 = vmatprep.subr.msk.bf16.mxu1 %vm1742_vm8, %v9468_v51 }
  0xd7   : > { %v1172_v14 = vmul.bf16 %v12366_v9, %v1113_v46 }
  0xd8   : > { %v12360_v5 = vpop.permute.xlu0 %1157 }
  0xd9   : > { %v1171_v7 = vmul.bf16 %v12360_v5, %v1105_v39 }
  0xda   : > { %10333 = vmatmul.mubr.msk.bf16.gmra.mrb[4].mxu0 %vm1251_vm1, %v1168_v0 }
  0xdb   : > { %10336 = vmatprep.mubr.msk.bf16.mxu0 %vm1251_vm1, %v1169_v1  ;;  %v12373_v15 = vpop.permute.xlu1 %1213 }
  0xdc   : > { %v1241_v16 = vmul.bf16 %v12373_v15, %v1180_v11 }
  0xdd   : > { %v12368_v10 = vpop.permute.xlu0 %1209 }
  0xde   : > { %v1240_v12 = vmul.bf16 %v12368_v10, %v12294_v13  ;;  %v9860_v13 = vld [vmem:[%s12050_s27 + $0xf] ss:$0 sm:$0xff] }
  0xdf   : > { %v12378_v17 = vpop.permute.xlu1 %1217 }
  0xe0   : > { %v1242_v19 = vmul.bf16 %v12378_v17, %v1183_v47 }
  0xe1   : > { %v12383_v21 = vpop.permute.xlu0 %1221 }
  0xe2   : > { %10337 = vmatmul.mubr.msk.bf16.gmra.mrb[8].mxu0 %vm1251_vm1, %v1170_v6  ;;  %v1243_v22 = vmul.bf16 %v12383_v21, %v1186_v56  ;;  %v2040_v6 = vsel %vm1742_vm8, %v9468_v51, 0 }
  0xe3   : > { %10340 = vmatprep.mubr.msk.bf16.mxu0 %vm1251_vm1, %v1171_v7  ;;  %v12386_v24 = vpop.permute.xlu1 %1225 }
  0xe4   : > { %v1244_v26 = vmul.bf16 %v12386_v24, %v1189_v58 }
  0xe5   : > { %v12393_v28 = vpop.permute.xlu0 %1229 }
  0xe6   : > { %v1245_v31 = vmul.bf16 %v12393_v28, %v1192_v25 }
  0xe7   : > { %v12391_v27 = vpop.permute.xlu1 %1233 }
  0xe8   : > { %v1246_v36 = vmul.bf16 %v12391_v27, %v1195_v23 }
  0xe9   : > { %v12406_v37 = vpop.permute.xlu0 %1237 }
  0xea   : > { %10341 = vmatmul.mubr.msk.bf16.gmra.mrb[12].mxu0 %vm1251_vm1, %v1172_v14  ;;  %v1247_v20 = vmul.bf16 %v12406_v37, %v1207_v38 }
  0xeb   : > { %10346 = vmatprep.mubr.msk.bf16.mxu0 %vm1251_vm1, %v1240_v12 }
  0xf2   : > { %10347 = vmatmul.mubr.msk.bf16.vlgmr.msra.gmra.mrb[0].mxu0 %vm1251_vm1, %v1241_v16 }
  0xf3   : > { %10350 = vmatprep.mubr.msk.bf16.mxu0 %vm1251_vm1, %v1242_v19 }
  0xfa   : > { %10351 = vmatmul.mubr.msk.bf16.gmra.mrb[4].mxu0 %vm1251_vm1, %v1243_v22 }
  0xfb   : > { %10354 = vmatprep.mubr.msk.bf16.mxu0 %vm1251_vm1, %v1244_v26 }
 0x102   : > { %10355 = vmatmul.mubr.msk.bf16.gmra.mrb[8].mxu0 %vm1251_vm1, %v1245_v31 }
 0x103   : > { %10358 = vmatprep.mubr.msk.bf16.mxu0 %vm1251_vm1, %v1246_v36 }
 0x10a   : > { %10359 = vmatmul.mubr.msk.bf16.gmra.mrb[12].mxu0 %vm1251_vm1, %v1247_v20 }
 0x12f   : > { %v12415_v39 = vpop.f32.mrb[0].mxu1 }
 0x130   : > { %v12417_v41 = vpop.f32.mrb[1].mxu1 }
 0x131   : > { %v12419_v44 = vpop.f32.mrb[2].mxu1 }
 0x132   : > { %v12421_v45 = vpop.f32.mrb[3].mxu1 }
 0x137   : > { %v12423_v46 = vpop.f32.mrb[4].mxu1 }
 0x138   : > { %v12425_v4 = vpop.f32.mrb[5].mxu1 }
 0x139   : > { %v12427_v48 = vpop.f32.mrb[6].mxu1 }
 0x13a   : > { %v12429_v11 = vpop.f32.mrb[7].mxu1 }
 0x1c5   : > { %v10348_v54 = vpop.f32.mrb[0].mxu0 }
 0x1c6   : > { %v1641_v34 = vadd.f32 %v10348_v54, %v12434_v52  ;;  %v1556_v47 = vpop.f32.mrb[1].mxu0 }
 0x1c7   : > { %v1639_v50 = vadd.f32 %v12434_v52, %v1556_v47  ;;  %v10349_v56 = vpop.f32.mrb[2].mxu0 }
 0x1c8   : > { %vm1657_vm9 = vcmp.ge.f32.partialorder %v1641_v34, 0.0  ;;  %v1673_v25 = vmul.f32 0.2, %v1641_v34  ;;  %v1642_v35 = vadd.f32 %v10349_v56, %v12434_v52  ;;  %v1559_v49 = vpop.f32.mrb[3].mxu0 }
 0x1c9   : > { %vm1655_vm10 = vcmp.ge.f32.partialorder %v1639_v50, 0.0  ;;  %v1671_v57 = vmul.f32 0.2, %v1639_v50  ;;  %v1640_v58 = vadd.f32 %v12434_v52, %v1559_v49 }
 0x1ca   : > { %v1689_v23 = vsel %vm1657_vm9, %v1641_v34, %v1673_v25  ;;  %vm1658_vm11 = vcmp.ge.f32.partialorder %v1642_v35, 0.0  ;;  %v1674_v43 = vmul.f32 0.2, %v1642_v35 }
 0x1cb   : > { %v1861_v33 = vmul.f32 0.2, %v1689_v23  ;;  %v1687_v59 = vsel %vm1655_vm10, %v1639_v50, %v1671_v57  ;;  %vm1656_vm12 = vcmp.ge.f32.partialorder %v1640_v58, 0.0  ;;  %vm1845_vm13 = vcmp.ge.f32.partialorder %v1689_v23, 0.0 }
 0x1cc   : > { %v1690_v29 = vsel %vm1658_vm11, %v1642_v35, %v1674_v43  ;;  %v1672_v53 = vmul.f32 0.2, %v1640_v58  ;;  %vm1843_vm1 = vcmp.ge.f32.partialorder %v1687_v59, 0.0  ;;  %v1859_v7 = vmul.f32 0.2, %v1687_v59 }
 0x1cd   : > { %v1705_v61 = vpack.c.bf16 %v1690_v29, %v1689_v23  ;;  %vm1846_vm15 = vcmp.ge.f32.partialorder %v1690_v29, 0.0  ;;  %v1862_v0 = vmul.f32 0.2, %v1690_v29  ;;  %v10352_v1 = vpop.f32.mrb[4].mxu0  ;;  %v1877_v19 = vsel %vm1845_vm13, %v1689_v23, %v1861_v33 }
 0x1ce   : > { %v1688_v12 = vsel %vm1656_vm12, %v1640_v58, %v1672_v53  ;;  %v1645_v14 = vadd.f32 %v10352_v1, %v12434_v52  ;;  %v1572_v16 = vpop.f32.mrb[5].mxu0  ;;  %v12451_v35 = vsel %vm1742_vm8, %v2020_v8, 0  ;;  %v1875_v58 = vsel %vm1843_vm1, %v1687_v59, %v1859_v7 }
 0x1cf   : > { %v1878_v22 = vsel %vm1846_vm15, %v1690_v29, %v1862_v0  ;;  %v1860_v26 = vmul.f32 0.2, %v1688_v12  ;;  %v1643_v31 = vadd.f32 %v12434_v52, %v1572_v16  ;;  %v10353_v32 = vpop.f32.mrb[6].mxu0  ;;  %v1704_v34 = vpack.c.bf16 %v1688_v12, %v1687_v59 }
 0x1d0   : > { %v12443_v36 = vpack.c.bf16 %v1878_v22, %v1877_v19  ;;  %vm1661_vm4 = vcmp.ge.f32.partialorder %v1645_v14, 0.0  ;;  %v1677_v38 = vmul.f32 0.2, %v1645_v14  ;;  %v1646_v20 = vadd.f32 %v10353_v32, %v12434_v52  ;;  %v1575_v30 = vpop.f32.mrb[7].mxu0 }
 0x1d1   : > { %vm1659_vm6 = vcmp.ge.f32.partialorder %v1643_v31, 0.0  ;;  %v1675_v51 = vmul.f32 0.2, %v1643_v31  ;;  %v1644_v54 = vadd.f32 %v12434_v52, %v1575_v30  ;;  %vm1844_vm9 = vcmp.ge.f32.partialorder %v1688_v12, 0.0  ;;  %10364 = vmatprep.mubr.msk.bf16.mxu1 %vm1717_vm14, %v1704_v34 }
 0x1d2   : > { %v1908_v47 = vshrl.u32 %v12443_v36, 16  ;;  %v1693_v50 = vsel %vm1661_vm4, %v1645_v14, %v1677_v38  ;;  %vm1662_vm10 = vcmp.ge.f32.partialorder %v1646_v20, 0.0  ;;  %v1678_v25 = vmul.f32 0.2, %v1646_v20  ;;  %10365 = vmatmul.mubr.msk.bf16.vlgmr.msra.gmra.mrb[8].mxu1 %vm1717_vm14, %v1705_v61 }
 0x1d3   : > { %v1691_v56 = vsel %vm1659_vm6, %v1643_v31, %v1675_v51  ;;  %v1865_v57 = vmul.f32 0.2, %v1693_v50  ;;  %vm1660_vm11 = vcmp.ge.f32.partialorder %v1644_v54, 0.0  ;;  %vm1849_vm12 = vcmp.ge.f32.partialorder %v1693_v50, 0.0  ;;  %10381 = vmatpush3.bf16.msra.mxu1 %v2040_v6 }
 0x1d4   : > { %v12455_v49 = vrot.slane %v1908_v47, 7  ;;  %v12459_v23 = vsel %vm1662_vm10, %v1646_v20, %v1678_v25  ;;  %v1676_v43 = vmul.f32 0.2, %v1644_v54  ;;  %v1876_v29 = vsel %vm1844_vm9, %v1688_v12, %v1860_v26  ;;  %11622 = vmatprep.subr.msk.bf16.mxu1 %vm1742_vm8, %v2020_v8 }
 0x1d5   : > { %v10356_v33 = vpop.f32.mrb[8].mxu0  ;;  %v1911_v53 = vshll.u32 %v12443_v36, 16  ;;  %vm1847_vm13 = vcmp.ge.f32.partialorder %v1691_v56, 0.0  ;;  %v1863_v0 = vmul.f32 0.2, %v1691_v56  ;;  %v1707_v16 = vpack.c.bf16 %v12459_v23, %v1693_v50 }
 0x1d6   : > { %v11316_v1 = vadd.f32 %v10356_v33, %v12415_v39  ;;  %v1588_v14 = vpop.f32.mrb[9].mxu0  ;;  %v1692_v61 = vsel %vm1660_vm11, %v1644_v54, %v1676_v43  ;;  %v12467_v19 = vpack.c.bf16 %v1876_v29, %v1875_v58  ;;  %v1881_v26 = vsel %vm1849_vm12, %v1693_v50, %v1865_v57 }
 0x1d7   : > { %v11317_v59 = vadd.f32 %v1588_v14, %v12417_v41  ;;  %v10357_v7 = vpop.f32.mrb[10].mxu0  ;;  %v12472_v6 = vor.u32 %v1911_v53, %v12455_v49  ;;  %vm1850_vm15 = vcmp.ge.f32.partialorder %v12459_v23, 0.0  ;;  %v1706_v32 = vpack.c.bf16 %v1692_v61, %v1691_v56 }
 0x1d8   : > { %v1649_v12 = vadd.f32 %v11316_v1, %v12434_v52  ;;  %v11318_v39 = vadd.f32 %v10357_v7, %v12419_v44  ;;  %v1591_v22 = vpop.f32.mrb[11].mxu0  ;;  %v1866_v38 = vmul.f32 0.2, %v12459_v23  ;;  %v1864_v20 = vmul.f32 0.2, %v1692_v61 }
 0x1d9   : > { %v1647_v41 = vadd.f32 %v11317_v59, %v12434_v52  ;;  %v11319_v31 = vadd.f32 %v1591_v22, %v12421_v45  ;;  %vm1848_vm1 = vcmp.ge.f32.partialorder %v1692_v61, 0.0  ;;  %10368 = vmatprep.mubr.msk.bf16.mxu1 %vm1717_vm14, %v1706_v32  ;;  %v1904_v45 = vshll.u32 %v12467_v19, 16 }
 0x1da   : > { %v1681_v30 = vmul.f32 0.2, %v1649_v12  ;;  %v1650_v8 = vadd.f32 %v11318_v39, %v12434_v52  ;;  %vm1665_vm4 = vcmp.ge.f32.partialorder %v1649_v12, 0.0  ;;  %10369 = vmatmul.mubr.msk.bf16.gmra.mrb[12].mxu1 %vm1717_vm14, %v1707_v16  ;;  %v1901_v25 = vshrl.u32 %v12467_v19, 16 }
 0x1db   : > { %v1679_v51 = vmul.f32 0.2, %v1647_v41  ;;  %v1648_v44 = vadd.f32 %v11319_v31, %v12434_v52  ;;  %vm1663_vm6 = vcmp.ge.f32.partialorder %v1647_v41, 0.0  ;;  %v1879_v57 = vsel %vm1847_vm13, %v1691_v56, %v1863_v0 }
 0x1dc   : > { %vm1666_vm9 = vcmp.ge.f32.partialorder %v1650_v8, 0.0  ;;  %v1682_v54 = vmul.f32 0.2, %v1650_v8  ;;  %v1697_v58 = vsel %vm1665_vm4, %v1649_v12, %v1681_v30  ;;  %v1880_v1 = vsel %vm1848_vm1, %v1692_v61, %v1864_v20 }
 0x1dd   : > { %vm1664_vm10 = vcmp.ge.f32.partialorder %v1648_v44, 0.0  ;;  %v1680_v34 = vmul.f32 0.2, %v1648_v44  ;;  %v10360_v50 = vpop.f32.mrb[12].mxu0  ;;  %v1695_v14 = vsel %vm1663_vm6, %v1647_v41, %v1679_v51  ;;  %v12495_v56 = vrot.slane %v1904_v45, 1 }
 0x1de   : > { %v1698_v43 = vsel %vm1666_vm9, %v1650_v8, %v1682_v54  ;;  %v11320_v33 = vadd.f32 %v10360_v50, %v12423_v46  ;;  %v1604_v29 = vpop.f32.mrb[13].mxu0  ;;  %v12499_v61 = vpack.c.bf16 %v1880_v1, %v1879_v57  ;;  %v1869_v8 = vmul.f32 0.2, %v1697_v58 }
 0x1df   : > { %v1696_v59 = vsel %vm1664_vm10, %v1648_v44, %v1680_v34  ;;  %v11321_v7 = vadd.f32 %v1604_v29, %v12425_v4  ;;  %v10361_v16 = vpop.f32.mrb[14].mxu0  ;;  %v1709_v39 = vpack.c.bf16 %v1698_v43, %v1697_v58  ;;  %v1882_v4 = vsel %vm1850_vm15, %v12459_v23, %v1866_v38 }
 0x1e0   : > { %v1653_v22 = vadd.f32 %v11320_v33, %v12434_v52  ;;  %v11322_v31 = vadd.f32 %v10361_v16, %v12427_v48  ;;  %v1607_v32 = vpop.f32.mrb[15].mxu0  ;;  %v1708_v18 = vpack.c.bf16 %v1696_v59, %v1695_v14  ;;  %v12506_v41 = vpack.c.bf16 %v1882_v4, %v1881_v26 }
 0x1e1   : > { %v1651_v46 = vadd.f32 %v11321_v7, %v12434_v52  ;;  %v11323_v0 = vadd.f32 %v1607_v32, %v12429_v11  ;;  %v1916_v11 = vshrl.u32 %v12499_v61, 16  ;;  %v1867_v23 = vmul.f32 0.2, %v1695_v14 }
 0x1e2   : > { %vm1669_vm11 = vcmp.ge.f32.partialorder %v1653_v22, 0.0  ;;  %v1685_v12 = vmul.f32 0.2, %v1653_v22  ;;  %v1654_v48 = vadd.f32 %v11322_v31, %v12434_v52  ;;  %10372 = vmatprep.mubr.msk.bf16.mxu1 %vm1717_vm14, %v1708_v18  ;;  %v1870_v34 = vmul.f32 0.2, %v1698_v43 }
 0x1e3   : > { %vm1667_vm12 = vcmp.ge.f32.partialorder %v1651_v46, 0.0  ;;  %v1683_v20 = vmul.f32 0.2, %v1651_v46  ;;  %v1652_v30 = vadd.f32 %v11323_v0, %v12434_v52  ;;  %10373 = vmatmul.mubr.msk.bf16.gmra.mrb[16].mxu1 %vm1717_vm14, %v1709_v39  ;;  %v1868_v18 = vmul.f32 0.2, %v1696_v59 }
 0x1e4   : > { %v1701_v51 = vsel %vm1669_vm11, %v1653_v22, %v1685_v12  ;;  %vm1670_vm13 = vcmp.ge.f32.partialorder %v1654_v48, 0.0  ;;  %v1686_v44 = vmul.f32 0.2, %v1654_v48  ;;  %v1918_v52 = vrot.slane %v1916_v11, 7 }
 0x1e5   : > { %v1699_v38 = vsel %vm1667_vm12, %v1651_v46, %v1683_v20  ;;  %vm1668_vm15 = vcmp.ge.f32.partialorder %v1652_v30, 0.0  ;;  %v1684_v54 = vmul.f32 0.2, %v1652_v30  ;;  %v1873_v26 = vmul.f32 0.2, %v1701_v51 }
 0x1e6   : > { %v1702_v50 = vsel %vm1670_vm13, %v1654_v48, %v1686_v44  ;;  %v1871_v57 = vmul.f32 0.2, %v1699_v38  ;;  %vm1851_vm1 = vcmp.ge.f32.partialorder %v1695_v14, 0.0  ;;  %v1924_v39 = vshrl.u32 %v12506_v41, 16 }
 0x1e7   : > { %v1700_v33 = vsel %vm1668_vm15, %v1652_v30, %v1684_v54  ;;  %v1711_v29 = vpack.c.bf16 %v1702_v50, %v1701_v51  ;;  %v1874_v1 = vmul.f32 0.2, %v1702_v50  ;;  %vm1852_vm4 = vcmp.ge.f32.partialorder %v1696_v59, 0.0 }
 0x1e8   : > { %v1872_v7 = vmul.f32 0.2, %v1700_v33  ;;  %v1710_v16 = vpack.c.bf16 %v1700_v33, %v1699_v38  ;;  %v1883_v22 = vsel %vm1851_vm1, %v1695_v14, %v1867_v23  ;;  %vm1853_vm6 = vcmp.ge.f32.partialorder %v1697_v58, 0.0 }
 0x1e9   : > { %v1884_v31 = vsel %vm1852_vm4, %v1696_v59, %v1868_v18  ;;  %vm1854_vm9 = vcmp.ge.f32.partialorder %v1698_v43, 0.0  ;;  %v1885_v32 = vsel %vm1853_vm6, %v1697_v58, %v1869_v8  ;;  %vm1855_vm10 = vcmp.ge.f32.partialorder %v1699_v38, 0.0 }
 0x1ea   : > { %10376 = vmatprep.mubr.msk.bf16.mxu1 %vm1717_vm14, %v1710_v16  ;;  %v12515_v46 = vpack.c.bf16 %v1884_v31, %v1883_v22  ;;  %v1886_v0 = vsel %vm1854_vm9, %v1698_v43, %v1870_v34  ;;  %vm1856_vm11 = vcmp.ge.f32.partialorder %v1700_v33, 0.0  ;;  %v1887_v4 = vsel %vm1855_vm10, %v1699_v38, %v1871_v57 }
 0x1eb   : > { %10377 = vmatmul.mubr.msk.bf16.gmra.mrb[20].mxu1 %vm1717_vm14, %v1711_v29  ;;  %v12518_v12 = vpack.c.bf16 %v1886_v0, %v1885_v32  ;;  %v1888_v48 = vsel %vm1856_vm11, %v1700_v33, %v1872_v7  ;;  %vm1857_vm12 = vcmp.ge.f32.partialorder %v1701_v51, 0.0  ;;  %vm1858_vm13 = vcmp.ge.f32.partialorder %v1702_v50, 0.0 }
 0x1ec   : > { %10382 = vmatprep.mubr.msk.bf16.mxu1 %vm1717_vm14, %v12467_v19  ;;  %v1919_v14 = vshll.u32 %v12499_v61, 16  ;;  %v1926_v58 = vrot.slane %v1924_v39, 7  ;;  %v1932_v59 = vshrl.u32 %v12515_v46, 16  ;;  %v1898_v43 = vpack.c.bf16 %v1888_v48, %v1887_v4  ;;  %v9495_v19 = vld [vmem:[%s13862_s3 + $0x4] sm:$0xf] }
 0x1ed   : > { %v1940_v20 = vshrl.u32 %v12518_v12, 16  ;;  %v1889_v30 = vsel %vm1857_vm12, %v1701_v51, %v1873_v26  ;;  %v1890_v8 = vsel %vm1858_vm13, %v1702_v50, %v1874_v1  ;;  %v1903_v44 = vrot.slane %v1901_v25, 7 }
 0x1ee   : > { %v1927_v23 = vshll.u32 %v12506_v41, 16  ;;  %v1934_v38 = vrot.slane %v1932_v59, 7  ;;  %v1948_v54 = vshrl.u32 %v1898_v43, 16  ;;  %v12530_v34 = vpack.c.bf16 %v1890_v8, %v1889_v30 }
 0x1ef   : > { %v1935_v18 = vshll.u32 %v12515_v46, 16  ;;  %v1942_v57 = vrot.slane %v1940_v20, 7  ;;  %v1914_v33 = vsel %vm1050_vm2, %v1903_v44, %v12472_v6  ;;  %v1921_v29 = vor.u32 %v1919_v14, %v1918_v52  ;;  %v9485_v6 = vld [vmem:[%s11980_s29 + $0x8] sm:$0xf] }
 0x1f0   : > { %v1985_v7 = vrot.slane %v1919_v14, 1  ;;  %v1943_v51 = vshll.u32 %v12518_v12, 16  ;;  %v1950_v26 = vrot.slane %v1948_v54, 7  ;;  %v1956_v50 = vshrl.u32 %v12530_v34, 16 }
 0x1f1   : > { %v1951_v1 = vshll.u32 %v1898_v43, 16  ;;  %v1922_v16 = vsel %vm1050_vm2, %v12455_v49, %v1921_v29  ;;  %v1929_v22 = vor.u32 %v1927_v23, %v1926_v58  ;;  %v1937_v31 = vor.u32 %v1935_v18, %v1934_v38 }
 0x1f2   : > { %v1958_v32 = vrot.slane %v1956_v50, 7  ;;  %v1959_v0 = vshll.u32 %v12530_v34, 16  ;;  %v1945_v4 = vor.u32 %v1943_v51, %v1942_v57  ;;  %v1981_v49 = vor.u32 %v12495_v56, %v1901_v25 }
 0x1f3   : > { %10383 = vmatmul.mubr.msk.bf16.vlgmr.msra.gmra.mrb[24].mxu1 %vm1717_vm14, %v12443_v36  ;;  %v1930_v48 = vsel %vm1050_vm2, %v1918_v52, %v1929_v22  ;;  %v1938_v14 = vsel %vm1050_vm2, %v1926_v58, %v1937_v31  ;;  %v1953_v30 = vor.u32 %v1951_v1, %v1950_v26  ;;  %v1982_v29 = vrot.slane %v1911_v53, 1 }
 0x1f4   : > { %10386 = vmatprep.mubr.msk.bf16.mxu1 %vm1717_vm14, %v12499_v61  ;;  %10399 = vmatpush3.bf16.msra.mxu1 %v12451_v35  ;;  %v1946_v8 = vsel %vm1050_vm2, %v1934_v38, %v1945_v4  ;;  %v1961_v58 = vor.u32 %v1959_v0, %v1958_v32  ;;  %v1987_v22 = vor.u32 %v1985_v7, %v1916_v11  ;;  %v1988_v31 = vrot.slane %v1927_v23, 1 }
 0x1f5   : > { %11623 = vmatprep.subr.msk.bf16.mxu1 %vm1742_vm8, %v9485_v6  ;;  %v1954_v52 = vsel %vm1050_vm2, %v1942_v57, %v1953_v30  ;;  %v1983_v25 = vsel %vm1173_vm3, %v1981_v49, %v1982_v29  ;;  %v1984_v56 = vor.u32 %v1982_v29, %v1908_v47  ;;  %v1991_v38 = vrot.slane %v1935_v18, 1  ;;  %v2602_v29 = vld [vmem:[%s13862_s3] sm:$0xf] }
 0x1f6   : > { %v1962_v35 = vsel %vm1050_vm2, %v1950_v26, %v1961_v58  ;;  %v1994_v4 = vrot.slane %v1943_v51, 1  ;;  %v1989_v3 = vsel %vm1173_vm3, %v1987_v22, %v1988_v31  ;;  %v1990_v57 = vor.u32 %v1988_v31, %v1924_v39 }
 0x1f7   : > { %v1986_v53 = vsel %vm1173_vm3, %v1984_v56, %v1985_v7  ;;  %v1993_v32 = vor.u32 %v1991_v38, %v1932_v59  ;;  %v1997_v30 = vrot.slane %v1951_v1, 1  ;;  %v2000_v18 = vrot.slane %v1959_v0, 1 }
 0x1f8   : > { %v1992_v61 = vsel %vm1173_vm3, %v1990_v57, %v1991_v38  ;;  %v1996_v11 = vor.u32 %v1994_v4, %v1940_v20  ;;  %v1906_v59 = vor.u32 %v1904_v45, %v1903_v44  ;;  %v1975_v45 = vmul.bf16 %v1930_v48, %v12351_v63 }
 0x1f9   : > { %v1995_v36 = vsel %vm1173_vm3, %v1993_v32, %v1994_v4  ;;  %v1999_v23 = vor.u32 %v1997_v30, %v1948_v54  ;;  %v2290_v54 = vsel %vm1742_vm8, %v9485_v6, 0  ;;  %v1977_v44 = vmul.bf16 %v1946_v8, %v12358_v2 }
 0x1fa   : > { %v1998_v47 = vsel %vm1173_vm3, %v1996_v11, %v1997_v30  ;;  %v1979_v7 = vmul.bf16 %v1962_v35, %v12366_v9  ;;  %v2012_v51 = vmul.bf16 %v1983_v25, %v12368_v10  ;;  %v2013_v26 = vmul.bf16 %v1986_v53, %v12373_v15 }
 0x1fb   : > { %10387 = vmatmul.mubr.msk.bf16.gmra.mrb[28].mxu1 %vm1717_vm14, %v12506_v41  ;;  %v2001_v39 = vsel %vm1173_vm3, %v1999_v23, %v2000_v18  ;;  %v1971_v41 = vsel %vm12328_vm5, 0, %v1906_v59  ;;  %v2622_v1 = vsel %vm1742_vm8, %v9495_v19, 0  ;;  %v2015_v0 = vmul.bf16 %v1992_v61, %v12383_v21 }
 0x1fc   : > { %10390 = vmatprep.mubr.msk.bf16.mxu1 %vm1717_vm14, %v12515_v46  ;;  %v1972_v20 = vmul.bf16 %v1971_v41, %v12334_v40  ;;  %v1973_v46 = vmul.bf16 %v1914_v33, %v12342_v42  ;;  %v1978_v33 = vmul.bf16 %v1954_v52, %v12360_v5  ;;  %v2016_v6 = vmul.bf16 %v1995_v36, %v12386_v24  ;;  %v9522_v52 = vld [vmem:[%s13861_s8 + $0x4] sm:$0xf] }
 0x1fd   : > { %v2017_v48 = vmul.bf16 %v1998_v47, %v12393_v28  ;;  %11627 = vmatprep.subr.msk.bf16.mxu0 %vm1742_vm8, %v9522_v52 }
 0x203   : > { %10391 = vmatmul.mubr.msk.bf16.gmra.mrb[32].mxu1 %vm1717_vm14, %v12518_v12  ;;  %v1974_v12 = vmul.bf16 %v1922_v16, %v12337_v60  ;;  %v2014_v16 = vmul.bf16 %v1989_v3, %v12378_v17  ;;  %v2018_v3 = vmul.bf16 %v2001_v39, %v12391_v27 }
 0x204   : > { %10394 = vmatprep.mubr.msk.bf16.mxu1 %vm1717_vm14, %v1898_v43  ;;  %v1976_v43 = vmul.bf16 %v1938_v14, %v12349_v62  ;;  %v2002_v14 = vor.u32 %v2000_v18, %v1956_v50  ;;  %v12631_v50 = vld [vmem:[%s12050_s27 + $0x2] ss:$0 sm:$0xff] }
 0x206   : > { %v2011_v49 = vsel %vm12400_vm7, %v2002_v14, 0 }
 0x207   : > { %v2019_v8 = vmul.bf16 %v2011_v49, %v12406_v37 }
 0x20b   : > { %10395 = vmatmul.mubr.msk.bf16.gmra.mrb[36].mxu1 %vm1717_vm14, %v12530_v34  ;;  %v3172_v34 = vsel %vm1742_vm8, %v9522_v52, 0 }
 0x20c   : > { %10400 = vmatprep.mubr.msk.bf16.mxu1 %vm1717_vm14, %v1972_v20  ;;  %10489 = vmatpush3.bf16.msra.mxu0 %v3172_v34 }
 0x213   : > { %10401 = vmatmul.mubr.msk.bf16.vlgmr.msra.gmra.mrb[24].mxu1 %vm1717_vm14, %v1973_v46 }
 0x214   : > { %10404 = vmatprep.mubr.msk.bf16.mxu1 %vm1717_vm14, %v1974_v12  ;;  %10417 = vmatpush3.bf16.msra.mxu1 %v2290_v54 }
 0x215   : > { %11624 = vmatprep.subr.msk.bf16.mxu1 %vm1742_vm8, %v9495_v19  ;;  %v2746_v19 = vsel %vm1742_vm8, %v2602_v29, 0 }
 0x21b   : > { %10405 = vmatmul.mubr.msk.bf16.gmra.mrb[28].mxu1 %vm1717_vm14, %v1975_v45 }
 0x21c   : > { %10408 = vmatprep.mubr.msk.bf16.mxu1 %vm1717_vm14, %v1976_v43 }
 0x223   : > { %10409 = vmatmul.mubr.msk.bf16.gmra.mrb[32].mxu1 %vm1717_vm14, %v1977_v44 }
 0x224   : > { %10412 = vmatprep.mubr.msk.bf16.mxu1 %vm1717_vm14, %v1978_v33  ;;  %v12642_v33 = vld [vmem:[%s13862_s3 + $0x8] sm:$0xf] }
 0x22b   : > { %10413 = vmatmul.mubr.msk.bf16.gmra.mrb[36].mxu1 %vm1717_vm14, %v1979_v7 }
 0x22c   : > { %10418 = vmatprep.mubr.msk.bf16.mxu1 %vm1717_vm14, %v2012_v51 }
 0x233   : > { %10419 = vmatmul.mubr.msk.bf16.vlgmr.msra.gmra.mrb[24].mxu1 %vm1717_vm14, %v2013_v26 }
 0x234   : > { %10422 = vmatprep.mubr.msk.bf16.mxu1 %vm1717_vm14, %v2014_v16  ;;  %10435 = vmatpush3.bf16.msra.mxu1 %v2622_v1 }
 0x235   : > { %11625 = vmatprep.subr.msk.bf16.mxu1 %vm1742_vm8, %v2602_v29 }
 0x23b   : > { %10423 = vmatmul.mubr.msk.bf16.gmra.mrb[28].mxu1 %vm1717_vm14, %v2015_v0 }
 0x23c   : > { %10426 = vmatprep.mubr.msk.bf16.mxu1 %vm1717_vm14, %v2016_v6 }
 0x243   : > { %10427 = vmatmul.mubr.msk.bf16.gmra.mrb[32].mxu1 %vm1717_vm14, %v2017_v48 }
 0x244   : > { %10430 = vmatprep.mubr.msk.bf16.mxu1 %vm1717_vm14, %v2018_v3 }
 0x24b   : > { %10431 = vmatmul.mubr.msk.bf16.gmra.mrb[36].mxu1 %vm1717_vm14, %v2019_v8 }
 0x306   : > { %v10420_v58 = vpop.f32.mrb[24].mxu1 }
 0x307   : > { %v2411_v22 = vadd.f32 %v10420_v58, %v12631_v50  ;;  %v2326_v25 = vpop.f32.mrb[25].mxu1 }
 0x308   : > { %v2409_v56 = vadd.f32 %v12631_v50, %v2326_v25  ;;  %v10421_v31 = vpop.f32.mrb[26].mxu1 }
 0x309   : > { %v2443_v35 = vmul.f32 0.2, %v2411_v22  ;;  %v2412_v38 = vadd.f32 %v10421_v31, %v12631_v50  ;;  %v2329_v4 = vpop.f32.mrb[27].mxu1  ;;  %vm2427_vm15 = vcmp.ge.f32.partialorder %v2411_v22, 0.0 }
 0x30a   : > { %v2441_v53 = vmul.f32 0.2, %v2409_v56  ;;  %v2410_v57 = vadd.f32 %v12631_v50, %v2329_v4  ;;  %vm2425_vm1 = vcmp.ge.f32.partialorder %v2409_v56, 0.0 }
 0x30b   : > { %vm2428_vm4 = vcmp.ge.f32.partialorder %v2412_v38, 0.0  ;;  %v2444_v32 = vmul.f32 0.2, %v2412_v38  ;;  %v2459_v11 = vsel %vm2427_vm15, %v2411_v22, %v2443_v35 }
 0x30c   : > { %vm2426_vm6 = vcmp.ge.f32.partialorder %v2410_v57, 0.0  ;;  %v2442_v61 = vmul.f32 0.2, %v2410_v57  ;;  %v2457_v36 = vsel %vm2425_vm1, %v2409_v56, %v2441_v53 }
 0x30d   : > { %v2460_v30 = vsel %vm2428_vm4, %v2412_v38, %v2444_v32 }
 0x30e   : > { %v2475_v47 = vpack.c.bf16 %v2460_v30, %v2459_v11  ;;  %v2458_v23 = vsel %vm2426_vm6, %v2410_v57, %v2442_v61  ;;  %v10424_v18 = vpop.f32.mrb[28].mxu1 }
 0x30f   : > { %v2474_v39 = vpack.c.bf16 %v2458_v23, %v2457_v36  ;;  %v2415_v59 = vadd.f32 %v10424_v18, %v12631_v50  ;;  %v2342_v41 = vpop.f32.mrb[29].mxu1 }
 0x310   : > { %v2490_v20 = vshrl.u32 %v2475_v47, 16  ;;  %v2493_v46 = vshll.u32 %v2475_v47, 16  ;;  %v2413_v54 = vadd.f32 %v12631_v50, %v2342_v41  ;;  %v10425_v12 = vpop.f32.mrb[30].mxu1 }
 0x311   : > { %v2483_v45 = vshrl.u32 %v2474_v39, 16  ;;  %v2486_v43 = vshll.u32 %v2474_v39, 16  ;;  %v2345_v44 = vpop.f32.mrb[31].mxu1  ;;  %10436 = vmatprep.mubr.msk.bf16.mxu1 %vm1717_vm14, %v2474_v39  ;;  %vm2431_vm9 = vcmp.ge.f32.partialorder %v2415_v59, 0.0  ;;  %v2447_v51 = vmul.f32 0.2, %v2415_v59 }
 0x312   : > { %v12644_v7 = vrot.slane %v2490_v20, 7  ;;  %10437 = vmatmul.mubr.msk.bf16.vlgmr.msra.gmra.mrb[8].mxu1 %vm1717_vm14, %v2475_v47  ;;  %v2564_v26 = vrot.slane %v2493_v46, 1  ;;  %v2416_v16 = vadd.f32 %v10425_v12, %v12631_v50  ;;  %v2414_v0 = vadd.f32 %v12631_v50, %v2345_v44 }
 0x313   : > { %v2562_v1 = vrot.slane %v2486_v43, 1  ;;  %10453 = vmatpush3.bf16.msra.mxu1 %v2746_v19  ;;  %vm2429_vm10 = vcmp.ge.f32.partialorder %v2413_v54, 0.0  ;;  %v2445_v48 = vmul.f32 0.2, %v2413_v54  ;;  %v2485_v3 = vrot.slane %v2483_v45, 7 }
 0x314   : > { %v2495_v6 = vor.u32 %v2493_v46, %v12644_v7  ;;  %11626 = vmatprep.subr.msk.bf16.mxu1 %vm1742_vm8, %v12642_v33  ;;  %vm2432_vm11 = vcmp.ge.f32.partialorder %v2416_v16, 0.0  ;;  %v2448_v49 = vmul.f32 0.2, %v2416_v16  ;;  %vm2430_vm12 = vcmp.ge.f32.partialorder %v2414_v0, 0.0 }
 0x315   : > { %v2563_v14 = vor.u32 %v2562_v1, %v2483_v45  ;;  %v2446_v8 = vmul.f32 0.2, %v2414_v0  ;;  %v2463_v34 = vsel %vm2431_vm9, %v2415_v59, %v2447_v51  ;;  %v2461_v31 = vsel %vm2429_vm10, %v2413_v54, %v2445_v48 }
 0x316   : > { %v10428_v29 = vpop.f32.mrb[32].mxu1  ;;  %v12653_v52 = vsel %vm1050_vm2, %v2485_v3, %v2495_v6  ;;  %v2464_v58 = vsel %vm2432_vm11, %v2416_v16, %v2448_v49  ;;  %v2566_v18 = vor.u32 %v2564_v26, %v2490_v20  ;;  %v12670_v59 = vor.u32 %v2486_v43, %v2485_v3 }
 0x317   : > { %v2419_v22 = vadd.f32 %v10428_v29, %v12631_v50  ;;  %v2358_v25 = vpop.f32.mrb[33].mxu1  ;;  %v12658_v56 = vsel %vm1173_vm3, %v2563_v14, %v2564_v26  ;;  %v12661_v35 = vpack.c.bf16 %v2464_v58, %v2463_v34  ;;  %v2462_v38 = vsel %vm2430_vm12, %v2414_v0, %v2446_v8 }
 0x318   : > { %v10429_v4 = vpop.f32.mrb[34].mxu1  ;;  %v2476_v53 = vpack.c.bf16 %v2462_v38, %v2461_v31  ;;  %v2417_v57 = vadd.f32 %v12631_v50, %v2358_v25 }
 0x319   : > { %v2420_v32 = vadd.f32 %v10429_v4, %v12631_v50  ;;  %v2361_v61 = vpop.f32.mrb[35].mxu1  ;;  %v2506_v11 = vshrl.u32 %v12661_v35, 16  ;;  %vm2435_vm13 = vcmp.ge.f32.partialorder %v2419_v22, 0.0  ;;  %v2451_v30 = vmul.f32 0.2, %v2419_v22 }
 0x31a   : > { %v2509_v36 = vshll.u32 %v12661_v35, 16  ;;  %v2498_v47 = vshrl.u32 %v2476_v53, 16  ;;  %v2501_v23 = vshll.u32 %v2476_v53, 16  ;;  %10440 = vmatprep.mubr.msk.bf16.mxu1 %vm1717_vm14, %v2476_v53  ;;  %v2449_v54 = vmul.f32 0.2, %v2417_v57 }
 0x31b   : > { %vm2436_vm15 = vcmp.ge.f32.partialorder %v2420_v32, 0.0  ;;  %v2452_v39 = vmul.f32 0.2, %v2420_v32  ;;  %10441 = vmatmul.mubr.msk.bf16.gmra.mrb[12].mxu1 %vm1717_vm14, %v12661_v35  ;;  %v2418_v12 = vadd.f32 %v12631_v50, %v2361_v61  ;;  %v2508_v19 = vrot.slane %v2506_v11, 7 }
 0x31c   : > { %v2500_v41 = vrot.slane %v2498_v47, 7  ;;  %v2567_v46 = vrot.slane %v2501_v23, 1  ;;  %v2467_v45 = vsel %vm2435_vm13, %v2419_v22, %v2451_v30  ;;  %vm2433_vm1 = vcmp.ge.f32.partialorder %v2417_v57, 0.0 }
 0x31d   : > { %v2468_v44 = vsel %vm2436_vm15, %v2420_v32, %v2452_v39  ;;  %v2570_v20 = vrot.slane %v2509_v36, 1  ;;  %vm2434_vm4 = vcmp.ge.f32.partialorder %v2418_v12, 0.0  ;;  %v2450_v0 = vmul.f32 0.2, %v2418_v12 }
 0x31e   : > { %v10432_v51 = vpop.f32.mrb[36].mxu1  ;;  %v2503_v26 = vor.u32 %v2501_v23, %v2500_v41  ;;  %v12677_v1 = vsel %vm1173_vm3, %v2566_v18, %v2567_v46  ;;  %v2479_v43 = vpack.c.bf16 %v2468_v44, %v2467_v45  ;;  %v2465_v14 = vsel %vm2433_vm1, %v2417_v57, %v2449_v54 }
 0x31f   : > { %v2374_v16 = vpop.f32.mrb[37].mxu1  ;;  %v2423_v6 = vadd.f32 %v10432_v51, %v12631_v50  ;;  %v2511_v58 = vor.u32 %v2509_v36, %v2508_v19  ;;  %v2466_v22 = vsel %vm2434_vm4, %v2418_v12, %v2450_v0  ;;  %v2569_v31 = vor.u32 %v2567_v46, %v2498_v47 }
 0x320   : > { %v2421_v48 = vadd.f32 %v12631_v50, %v2374_v16  ;;  %v10433_v3 = vpop.f32.mrb[38].mxu1  ;;  %v2522_v49 = vshrl.u32 %v2479_v43, 16  ;;  %v12684_v34 = vsel %vm1050_vm2, %v12644_v7, %v2503_v26  ;;  %v2525_v4 = vshll.u32 %v2479_v43, 16 }
 0x321   : > { %v2424_v8 = vadd.f32 %v10433_v3, %v12631_v50  ;;  %v2377_v29 = vpop.f32.mrb[39].mxu1  ;;  %vm2439_vm6 = vcmp.ge.f32.partialorder %v2423_v6, 0.0  ;;  %v2455_v25 = vmul.f32 0.2, %v2423_v6  ;;  %v2478_v53 = vpack.c.bf16 %v2466_v22, %v2465_v14 }
 0x322   : > { %v2524_v38 = vrot.slane %v2522_v49, 7  ;;  %vm2437_vm9 = vcmp.ge.f32.partialorder %v2421_v48, 0.0  ;;  %v2422_v57 = vadd.f32 %v12631_v50, %v2377_v29  ;;  %v2453_v18 = vmul.f32 0.2, %v2421_v48 }
 0x323   : > { %vm2440_vm10 = vcmp.ge.f32.partialorder %v2424_v8, 0.0  ;;  %v2456_v32 = vmul.f32 0.2, %v2424_v8  ;;  %v2514_v61 = vshrl.u32 %v2478_v53, 16  ;;  %v2517_v30 = vshll.u32 %v2478_v53, 16  ;;  %10444 = vmatprep.mubr.msk.bf16.mxu1 %vm1717_vm14, %v2478_v53 }
 0x324   : > { %v2471_v23 = vsel %vm2439_vm6, %v2423_v6, %v2455_v25  ;;  %v2527_v7 = vor.u32 %v2525_v4, %v2524_v38  ;;  %vm2438_vm11 = vcmp.ge.f32.partialorder %v2422_v57, 0.0  ;;  %v2454_v39 = vmul.f32 0.2, %v2422_v57  ;;  %10445 = vmatmul.mubr.msk.bf16.gmra.mrb[16].mxu1 %vm1717_vm14, %v2479_v43 }
 0x325   : > { %v2472_v36 = vsel %vm2440_vm10, %v2424_v8, %v2456_v32  ;;  %v2516_v47 = vrot.slane %v2514_v61, 7  ;;  %v2573_v46 = vrot.slane %v2517_v30, 1  ;;  %v2553_v50 = vsel %vm12328_vm5, 0, %v12670_v59 }
 0x326   : > { %v12689_v54 = vpack.c.bf16 %v2472_v36, %v2471_v23  ;;  %v2470_v12 = vsel %vm2438_vm11, %v2422_v57, %v2454_v39  ;;  %v2512_v45 = vsel %vm1050_vm2, %v2500_v41, %v2511_v58  ;;  %v2571_v44 = vsel %vm1173_vm3, %v2569_v31, %v2570_v20 }
 0x327   : > { %v2519_v51 = vor.u32 %v2517_v30, %v2516_v47  ;;  %v2575_v26 = vor.u32 %v2573_v46, %v2514_v61  ;;  %v2469_v16 = vsel %vm2437_vm9, %v2421_v48, %v2453_v18  ;;  %v2572_v43 = vor.u32 %v2570_v20, %v2506_v11 }
 0x328   : > { %v2538_v0 = vshrl.u32 %v12689_v54, 16  ;;  %v2576_v6 = vrot.slane %v2525_v4, 1  ;;  %v2480_v3 = vpack.c.bf16 %v2470_v12, %v2469_v16  ;;  %v2528_v14 = vsel %vm1050_vm2, %v2516_v47, %v2527_v7 }
 0x329   : > { %v2541_v59 = vshll.u32 %v12689_v54, 16  ;;  %v2520_v41 = vsel %vm1050_vm2, %v2508_v19, %v2519_v51  ;;  %v2574_v48 = vsel %vm1173_vm3, %v2572_v43, %v2573_v46  ;;  %v2554_v25 = vmul.bf16 %v2553_v50, %v12334_v40  ;;  %v9459_v51 = vld [vmem:[%s12050_s27 + $0x1] ss:$0 sm:$0xff] }
 0x32a   : > { %v2540_v8 = vrot.slane %v2538_v0, 7  ;;  %v2530_v29 = vshrl.u32 %v2480_v3, 16  ;;  %v2533_v58 = vshll.u32 %v2480_v3, 16  ;;  %10448 = vmatprep.mubr.msk.bf16.mxu1 %vm1717_vm14, %v2480_v3  ;;  %v2577_v35 = vsel %vm1173_vm3, %v2575_v26, %v2576_v6  ;;  %v9521_v26 = vld [vmem:[%s12050_s27 + $0x3] ss:$0 sm:$0xff] }
 0x32b   : > { %v2578_v11 = vor.u32 %v2576_v6, %v2522_v49  ;;  %v2582_v4 = vrot.slane %v2541_v59, 1  ;;  %v2555_v49 = vmul.bf16 %v12653_v52, %v12342_v42  ;;  %v2872_v23 = vsel %vm1742_vm8, %v12642_v33, 0 }
 0x32c   : > { %v2543_v22 = vor.u32 %v2541_v59, %v2540_v8  ;;  %v2532_v20 = vrot.slane %v2530_v29, 7  ;;  %v2579_v31 = vrot.slane %v2533_v58, 1  ;;  %10449 = vmatmul.mubr.msk.bf16.gmra.mrb[20].mxu1 %vm1717_vm14, %v12689_v54  ;;  %v2556_v18 = vmul.bf16 %v12684_v34, %v12337_v60 }
 0x32d   : > { %10454 = vmatprep.mubr.msk.bf16.mxu1 %vm1717_vm14, %v2554_v25  ;;  %v2557_v7 = vmul.bf16 %v2512_v45, %v12351_v63  ;;  %v2559_v52 = vmul.bf16 %v2528_v14, %v12358_v2  ;;  %v2594_v36 = vmul.bf16 %v12658_v56, %v12368_v10  ;;  %v2595_v39 = vmul.bf16 %v12677_v1, %v12373_v15 }
 0x32e   : > { %v2535_v19 = vor.u32 %v2533_v58, %v2532_v20  ;;  %v2581_v53 = vor.u32 %v2579_v31, %v2530_v29  ;;  %v2544_v32 = vsel %vm1050_vm2, %v2532_v20, %v2543_v22  ;;  %v2580_v57 = vsel %vm1173_vm3, %v2578_v11, %v2579_v31  ;;  %v12770_v31 = vld [vmem:[%s13861_s8 + $0x8] sm:$0xf] }
 0x32f   : > { %v2561_v34 = vmul.bf16 %v2544_v32, %v12366_v9  ;;  %v2596_v47 = vmul.bf16 %v2571_v44, %v12378_v17  ;;  %v2597_v46 = vmul.bf16 %v2574_v48, %v12383_v21  ;;  %v2598_v56 = vmul.bf16 %v2577_v35, %v12386_v24  ;;  %v3152_v44 = vld [vmem:[%s13861_s8] sm:$0xf]  ;;  %s13877_s8 = sld [smem:[#allocation13_spill]] }
 0x330   : > { %v2536_v61 = vsel %vm1050_vm2, %v2524_v38, %v2535_v19  ;;  %v2583_v30 = vsel %vm1173_vm3, %v2581_v53, %v2582_v4  ;;  %v2558_v38 = vmul.bf16 %v2520_v41, %v12349_v62  ;;  %v2599_v54 = vmul.bf16 %v2580_v57, %v12393_v28  ;;  %11628 = vmatprep.subr.msk.bf16.mxu0 %vm1742_vm8, %v3152_v44 }
 0x331   : > { %v2560_v33 = vmul.bf16 %v2536_v61, %v12360_v5  ;;  %v2600_v1 = vmul.bf16 %v2583_v30, %v12391_v27  ;;  %v2584_v12 = vor.u32 %v2582_v4, %v2538_v0  ;;  %v12756_v16 = vadd.f32 %v9521_v26, %v9459_v51 }
 0x332   : > { %v3296_v22 = vsel %vm1742_vm8, %v3152_v44, 0 }
 0x333   : > { %v2593_v50 = vsel %vm12400_vm7, %v2584_v12, 0 }
 0x334   : > { %10455 = vmatmul.mubr.msk.bf16.vlgmr.msra.gmra.mrb[8].mxu1 %vm1717_vm14, %v2555_v49  ;;  %v2601_v45 = vmul.bf16 %v2593_v50, %v12406_v37 }
 0x335   : > { %10458 = vmatprep.mubr.msk.bf16.mxu1 %vm1717_vm14, %v2556_v18  ;;  %10471 = vmatpush3.bf16.msra.mxu1 %v2872_v23 }
 0x33c   : > { %10459 = vmatmul.mubr.msk.bf16.gmra.mrb[12].mxu1 %vm1717_vm14, %v2557_v7 }
 0x33d   : > { %10462 = vmatprep.mubr.msk.bf16.mxu1 %vm1717_vm14, %v2558_v38 }
 0x344   : > { %10463 = vmatmul.mubr.msk.bf16.gmra.mrb[16].mxu1 %vm1717_vm14, %v2559_v52 }
 0x345   : > { %10466 = vmatprep.mubr.msk.bf16.mxu1 %vm1717_vm14, %v2560_v33 }
 0x34c   : > { %10467 = vmatmul.mubr.msk.bf16.gmra.mrb[20].mxu1 %vm1717_vm14, %v2561_v34 }
 0x34d   : > { %10472 = vmatprep.mubr.msk.bf16.mxu1 %vm1717_vm14, %v2594_v36 }
 0x354   : > { %10473 = vmatmul.mubr.msk.bf16.vlgmr.msra.gmra.mrb[8].mxu1 %vm1717_vm14, %v2595_v39 }
 0x355   : > { %10476 = vmatprep.mubr.msk.bf16.mxu1 %vm1717_vm14, %v2596_v47 }
 0x35c   : > { %10477 = vmatmul.mubr.msk.bf16.gmra.mrb[12].mxu1 %vm1717_vm14, %v2597_v46 }
 0x35d   : > { %10480 = vmatprep.mubr.msk.bf16.mxu1 %vm1717_vm14, %v2598_v56 }
 0x364   : > { %10481 = vmatmul.mubr.msk.bf16.gmra.mrb[16].mxu1 %vm1717_vm14, %v2599_v54 }
 0x365   : > { %10484 = vmatprep.mubr.msk.bf16.mxu1 %vm1717_vm14, %v2600_v1 }
 0x36c   : > { %10485 = vmatmul.mubr.msk.bf16.gmra.mrb[20].mxu1 %vm1717_vm14, %v2601_v45 }
 0x427   : > { %v10474_v43 = vpop.f32.mrb[8].mxu1 }
 0x428   : > { %v2908_v0 = vpop.f32.mrb[9].mxu1  ;;  %v11325_v3 = vadd.f32 %v12756_v16, %v10474_v43 }
 0x429   : > { %v10475_v6 = vpop.f32.mrb[10].mxu1  ;;  %v11327_v59 = vadd.f32 %v12756_v16, %v2908_v0 }
 0x42a   : > { %v11329_v14 = vadd.f32 %v12756_v16, %v10475_v6  ;;  %v2911_v8 = vpop.f32.mrb[11].mxu1 }
 0x42b   : > { %v11331_v41 = vadd.f32 %v12756_v16, %v2911_v8 }
 0x42c   : > { %v3025_v29 = vpack.c.bf16 %v11329_v14, %v11325_v3 }
 0x42d   : > { %v12762_v58 = vpack.c.bf16 %v11331_v41, %v11327_v59 }
 0x42e   : > { %v3040_v48 = vshrl.u32 %v3025_v29, 16  ;;  %v3043_v25 = vshll.u32 %v3025_v29, 16 }
 0x42f   : > { %v3033_v35 = vshrl.u32 %v12762_v58, 16  ;;  %v3036_v11 = vshll.u32 %v12762_v58, 16  ;;  %v10478_v20 = vpop.f32.mrb[12].mxu1  ;;  %10490 = vmatprep.mubr.msk.bf16.mxu0 %vm1717_vm14, %v12762_v58 }
 0x430   : > { %v3042_v4 = vrot.slane %v3040_v48, 7  ;;  %v2924_v19 = vpop.f32.mrb[13].mxu1  ;;  %10491 = vmatmul.mubr.msk.bf16.vlgmr.msra.gmra.mrb[16].mxu0 %vm1717_vm14, %v3025_v29  ;;  %v11333_v30 = vadd.f32 %v12756_v16, %v10478_v20  ;;  %v3114_v18 = vrot.slane %v3043_v25, 1 }
 0x431   : > { %v3035_v53 = vrot.slane %v3033_v35, 7  ;;  %v3112_v32 = vrot.slane %v3036_v11, 1  ;;  %v10479_v57 = vpop.f32.mrb[14].mxu1  ;;  %10507 = vmatpush3.bf16.msra.mxu0 %v3296_v22  ;;  %v11335_v38 = vadd.f32 %v12756_v16, %v2924_v19 }
 0x432   : > { %v3045_v61 = vor.u32 %v3043_v25, %v3042_v4  ;;  %v11337_v49 = vadd.f32 %v12756_v16, %v10479_v57  ;;  %v2927_v23 = vpop.f32.mrb[15].mxu1  ;;  %11629 = vmatprep.subr.msk.bf16.mxu0 %vm1742_vm8, %v12770_v31  ;;  %v3116_v45 = vor.u32 %v3114_v18, %v3040_v48 }
 0x433   : > { %v3113_v7 = vor.u32 %v3112_v32, %v3033_v35  ;;  %v11339_v52 = vadd.f32 %v12756_v16, %v2927_v23 }
 0x434   : > { %v12780_v33 = vsel %vm1050_vm2, %v3035_v53, %v3045_v61  ;;  %v3027_v34 = vpack.c.bf16 %v11337_v49, %v11333_v30  ;;  %v3038_v49 = vor.u32 %v3036_v11, %v3035_v53 }
 0x435   : > { %v3026_v36 = vpack.c.bf16 %v11339_v52, %v11335_v38  ;;  %v12783_v39 = vsel %vm1173_vm3, %v3113_v7, %v3114_v18 }
 0x436   : > { %v3056_v47 = vshrl.u32 %v3027_v34, 16  ;;  %v3059_v46 = vshll.u32 %v3027_v34, 16 }
 0x437   : > { %v3048_v56 = vshrl.u32 %v3026_v36, 16  ;;  %v3051_v54 = vshll.u32 %v3026_v36, 16  ;;  %v10482_v1 = vpop.f32.mrb[16].mxu1  ;;  %10494 = vmatprep.mubr.msk.bf16.mxu0 %vm1717_vm14, %v3026_v36 }
 0x438   : > { %v3058_v12 = vrot.slane %v3056_v47, 7  ;;  %v2940_v50 = vpop.f32.mrb[17].mxu1  ;;  %10495 = vmatmul.mubr.msk.bf16.gmra.mrb[20].mxu0 %vm1717_vm14, %v3027_v34  ;;  %v3120_v44 = vrot.slane %v3059_v46, 1  ;;  %v11341_v6 = vadd.f32 %v12756_v16, %v10482_v1 }
 0x439   : > { %v3050_v51 = vrot.slane %v3048_v56, 7  ;;  %v3117_v26 = vrot.slane %v3051_v54, 1  ;;  %v10483_v43 = vpop.f32.mrb[18].mxu1  ;;  %v11343_v3 = vadd.f32 %v12756_v16, %v2940_v50 }
 0x43a   : > { %v3061_v0 = vor.u32 %v3059_v46, %v3058_v12  ;;  %v11345_v14 = vadd.f32 %v12756_v16, %v10483_v43  ;;  %v2943_v8 = vpop.f32.mrb[19].mxu1  ;;  %v3122_v7 = vor.u32 %v3120_v44, %v3056_v47  ;;  %v3103_v47 = vsel %vm12328_vm5, 0, %v3038_v49 }
 0x43b   : > { %v3053_v59 = vor.u32 %v3051_v54, %v3050_v51  ;;  %v12791_v41 = vsel %vm1173_vm3, %v3116_v45, %v3117_v26  ;;  %v3119_v29 = vor.u32 %v3117_v26, %v3048_v56  ;;  %v11347_v58 = vadd.f32 %v12756_v16, %v2943_v8 }
 0x43c   : > { %v3029_v48 = vpack.c.bf16 %v11345_v14, %v11341_v6  ;;  %v12795_v22 = vsel %vm1050_vm2, %v3050_v51, %v3061_v0 }
 0x43d   : > { %v3028_v25 = vpack.c.bf16 %v11347_v58, %v11343_v3  ;;  %v3054_v35 = vsel %vm1050_vm2, %v3042_v4, %v3053_v59  ;;  %v12799_v20 = vsel %vm1173_vm3, %v3119_v29, %v3120_v44 }
 0x43e   : > { %v3072_v19 = vshrl.u32 %v3029_v48, 16  ;;  %v3075_v32 = vshll.u32 %v3029_v48, 16 }
 0x43f   : > { %v3064_v57 = vshrl.u32 %v3028_v25, 16  ;;  %v3067_v61 = vshll.u32 %v3028_v25, 16  ;;  %v10486_v30 = vpop.f32.mrb[20].mxu1  ;;  %10498 = vmatprep.mubr.msk.bf16.mxu0 %vm1717_vm14, %v3028_v25 }
 0x440   : > { %v3074_v23 = vrot.slane %v3072_v19, 7  ;;  %v2956_v18 = vpop.f32.mrb[21].mxu1  ;;  %10499 = vmatmul.mubr.msk.bf16.gmra.mrb[24].mxu0 %vm1717_vm14, %v3029_v48  ;;  %v3126_v38 = vrot.slane %v3075_v32, 1  ;;  %v11349_v46 = vadd.f32 %v12756_v16, %v10486_v30 }
 0x441   : > { %v3066_v52 = vrot.slane %v3064_v57, 7  ;;  %v3123_v34 = vrot.slane %v3067_v61, 1  ;;  %v10487_v4 = vpop.f32.mrb[22].mxu1  ;;  %v11351_v56 = vadd.f32 %v12756_v16, %v2956_v18  ;;  %v3105_v18 = vmul.bf16 %v12780_v33, %v12342_v42 }
 0x442   : > { %v3077_v36 = vor.u32 %v3075_v32, %v3074_v23  ;;  %v11353_v54 = vadd.f32 %v12756_v16, %v10487_v4  ;;  %v2959_v1 = vpop.f32.mrb[23].mxu1  ;;  %v3128_v29 = vor.u32 %v3126_v38, %v3072_v19  ;;  %v3422_v19 = vsel %vm1742_vm8, %v12770_v31, 0 }
 0x443   : > { %v3069_v50 = vor.u32 %v3067_v61, %v3066_v52  ;;  %v3125_v45 = vor.u32 %v3123_v34, %v3064_v57  ;;  %v11355_v11 = vadd.f32 %v12756_v16, %v2959_v1  ;;  %v3124_v53 = vsel %vm1173_vm3, %v3122_v7, %v3123_v34 }
 0x444   : > { %v3031_v51 = vpack.c.bf16 %v11353_v54, %v11349_v46  ;;  %v3078_v44 = vsel %vm1050_vm2, %v3066_v52, %v3077_v36  ;;  %v3104_v16 = vmul.bf16 %v3103_v47, %v12334_v40  ;;  %v3106_v7 = vmul.bf16 %v3054_v35, %v12337_v60 }
 0x445   : > { %v3030_v26 = vpack.c.bf16 %v11355_v11, %v11351_v56  ;;  %v3070_v43 = vsel %vm1050_vm2, %v3058_v12, %v3069_v50  ;;  %v3127_v0 = vsel %vm1173_vm3, %v3125_v45, %v3126_v38  ;;  %v3107_v38 = vmul.bf16 %v12795_v22, %v12351_v63 }
 0x446   : > { %v3088_v6 = vshrl.u32 %v3031_v51, 16  ;;  %v3091_v3 = vshll.u32 %v3031_v51, 16  ;;  %v3109_v42 = vmul.bf16 %v3078_v44, %v12358_v2  ;;  %v3144_v33 = vmul.bf16 %v12783_v39, %v12368_v10  ;;  %v12862_v39 = vld [vmem:[%s12050_s27 + $0x4] ss:$0 sm:$0xff] }
 0x447   : > { %v3080_v14 = vshrl.u32 %v3030_v26, 16  ;;  %v3083_v8 = vshll.u32 %v3030_v26, 16  ;;  %10502 = vmatprep.mubr.msk.bf16.mxu0 %vm1717_vm14, %v3030_v26  ;;  %v3146_v63 = vmul.bf16 %v12799_v20, %v12378_v17  ;;  %v3147_v2 = vmul.bf16 %v3124_v53, %v12383_v21 }
 0x448   : > { %v3090_v59 = vrot.slane %v3088_v6, 7  ;;  %10503 = vmatmul.mubr.msk.bf16.gmra.mrb[28].mxu0 %vm1717_vm14, %v3031_v51  ;;  %v3132_v12 = vrot.slane %v3091_v3, 1 }
 0x449   : > { %v3082_v58 = vrot.slane %v3080_v14, 7  ;;  %v3129_v48 = vrot.slane %v3083_v8, 1  ;;  %10508 = vmatprep.mubr.msk.bf16.mxu0 %vm1717_vm14, %v3104_v16 }
 0x44a   : > { %v3093_v25 = vor.u32 %v3091_v3, %v3090_v59  ;;  %v3134_v10 = vor.u32 %v3132_v12, %v3088_v6 }
 0x44b   : > { %v3085_v32 = vor.u32 %v3083_v8, %v3082_v58  ;;  %v3131_v57 = vor.u32 %v3129_v48, %v3080_v14  ;;  %v3130_v61 = vsel %vm1173_vm3, %v3128_v29, %v3129_v48 }
 0x44c   : > { %v3094_v30 = vsel %vm1050_vm2, %v3082_v58, %v3093_v25  ;;  %v3143_v17 = vsel %vm12400_vm7, %v3134_v10, 0 }
 0x44d   : > { %v3086_v49 = vsel %vm1050_vm2, %v3074_v23, %v3085_v32  ;;  %v3133_v40 = vsel %vm1173_vm3, %v3131_v57, %v3132_v12  ;;  %v3108_v23 = vmul.bf16 %v3070_v43, %v12349_v62  ;;  %v3111_v60 = vmul.bf16 %v3094_v30, %v12366_v9 }
 0x44e   : > { %v3110_v31 = vmul.bf16 %v3086_v49, %v12360_v5  ;;  %v3145_v62 = vmul.bf16 %v12791_v41, %v12373_v15  ;;  %v3148_v5 = vmul.bf16 %v3127_v0, %v12386_v24  ;;  %v3149_v9 = vmul.bf16 %v3130_v61, %v12393_v28  ;;  %v3605_v24 = vld [vmem:[%s12060_s17] sm:$0xff] }
 0x44f   : > { %v3150_v15 = vmul.bf16 %v3133_v40, %v12391_v27  ;;  %v3151_v21 = vmul.bf16 %v3143_v17, %v12406_v37 }
 0x450   : > { %10509 = vmatmul.mubr.msk.bf16.vlgmr.msra.gmra.mrb[16].mxu0 %vm1717_vm14, %v3105_v18 }
 0x451   : > { %10512 = vmatprep.mubr.msk.bf16.mxu0 %vm1717_vm14, %v3106_v7  ;;  %10525 = vmatpush3.bf16.msra.mxu0 %v3422_v19 }
 0x458   : > { %10513 = vmatmul.mubr.msk.bf16.gmra.mrb[20].mxu0 %vm1717_vm14, %v3107_v38 }
 0x459   : > { %10516 = vmatprep.mubr.msk.bf16.mxu0 %vm1717_vm14, %v3108_v23 }
 0x460   : > { %10517 = vmatmul.mubr.msk.bf16.gmra.mrb[24].mxu0 %vm1717_vm14, %v3109_v42 }
 0x461   : > { %10520 = vmatprep.mubr.msk.bf16.mxu0 %vm1717_vm14, %v3110_v31 }
 0x468   : > { %10521 = vmatmul.mubr.msk.bf16.gmra.mrb[28].mxu0 %vm1717_vm14, %v3111_v60 }
 0x469   : > { %10526 = vmatprep.mubr.msk.bf16.mxu0 %vm1717_vm14, %v3144_v33 }
 0x470   : > { %10527 = vmatmul.mubr.msk.bf16.vlgmr.msra.gmra.mrb[16].mxu0 %vm1717_vm14, %v3145_v62 }
 0x471   : > { %10530 = vmatprep.mubr.msk.bf16.mxu0 %vm1717_vm14, %v3146_v63 }
 0x478   : > { %10531 = vmatmul.mubr.msk.bf16.gmra.mrb[20].mxu0 %vm1717_vm14, %v3147_v2 }
 0x479   : > { %10534 = vmatprep.mubr.msk.bf16.mxu0 %vm1717_vm14, %v3148_v5 }
 0x480   : > { %10535 = vmatmul.mubr.msk.bf16.gmra.mrb[24].mxu0 %vm1717_vm14, %v3149_v9 }
 0x481   : > { %10538 = vmatprep.mubr.msk.bf16.mxu0 %vm1717_vm14, %v3150_v15 }
 0x488   : > { %10539 = vmatmul.mubr.msk.bf16.gmra.mrb[28].mxu0 %vm1717_vm14, %v3151_v21 }
 0x489   : > { %10574 = vmatprep.mubr.f32.mxu0 %v3605_v24 }
 0x543   : > { %v10528_v41 = vpop.f32.mrb[16].mxu0 }
 0x544   : > { %v3543_v28 = vadd.f32 %v10528_v41, %v12862_v39  ;;  %v3458_v22 = vpop.f32.mrb[17].mxu0 }
 0x545   : > { %v3541_v27 = vadd.f32 %v12862_v39, %v3458_v22  ;;  %v10529_v35 = vpop.f32.mrb[18].mxu0 }
 0x546   : > { %v3575_v20 = vmul.f32 0.2, %v3543_v28  ;;  %v3544_v52 = vadd.f32 %v10529_v35, %v12862_v39  ;;  %v3461_v34 = vpop.f32.mrb[19].mxu0  ;;  %vm3559_vm8 = vcmp.ge.f32.partialorder %v3543_v28, 0.0 }
 0x547   : > { %v3573_v4 = vmul.f32 0.2, %v3541_v27  ;;  %v3542_v37 = vadd.f32 %v12862_v39, %v3461_v34  ;;  %vm3557_vm14 = vcmp.ge.f32.partialorder %v3541_v27, 0.0 }
 0x548   : > { %vm3560_vm12 = vcmp.ge.f32.partialorder %v3544_v52, 0.0  ;;  %v3576_v36 = vmul.f32 0.2, %v3544_v52  ;;  %v3591_v56 = vsel %vm3559_vm8, %v3543_v28, %v3575_v20 }
 0x549   : > { %vm3558_vm13 = vcmp.ge.f32.partialorder %v3542_v37, 0.0  ;;  %v3574_v46 = vmul.f32 0.2, %v3542_v37  ;;  %v3589_v50 = vsel %vm3557_vm14, %v3541_v27, %v3573_v4 }
 0x54a   : > { %v3592_v54 = vsel %vm3560_vm12, %v3544_v52, %v3576_v36  ;;  %v3606_v36 = vld [vmem:[%s12060_s17 + $0x8] sm:$0xff] }
 0x54b   : > { %v10532_v1 = vpop.f32.mrb[20].mxu0  ;;  %v3590_v45 = vsel %vm3558_vm13, %v3542_v37, %v3574_v46  ;;  %v11171_v11 = vpack.c.bf16 %v3592_v54, %v3591_v56  ;;  %v3607_v46 = vld [vmem:[%s12060_s17 + $0x10] sm:$0xff]  ;;  %v3608_v56 = vld [vmem:[%s12060_s17 + $0x18] sm:$0xff]  ;;  %v3609_v54 = vld [vmem:[%s12060_s17 + $0x20] sm:$0xff] }
 0x54c   : > { %v3547_v53 = vadd.f32 %v10532_v1, %v12862_v39  ;;  %v3474_v51 = vpop.f32.mrb[21].mxu0  ;;  %v11167_v47 = vpack.c.bf16 %v3590_v45, %v3589_v50  ;;  %v3610_v1 = vld [vmem:[%s12060_s17 + $0x28] sm:$0xff]  ;;  %v3611_v50 = vld [vmem:[%s12060_s17 + $0x30] sm:$0xff]  ;;  %v3612_v45 = vld [vmem:[%s12060_s17 + $0x38] sm:$0xff] }
 0x54d   : > { %v3545_v44 = vadd.f32 %v12862_v39, %v3474_v51  ;;  %v10533_v26 = vpop.f32.mrb[22].mxu0 }
 0x54e   : > { %v3579_v43 = vmul.f32 0.2, %v3547_v53  ;;  %v3548_v0 = vadd.f32 %v10533_v26, %v12862_v39  ;;  %v3477_v6 = vpop.f32.mrb[23].mxu0  ;;  %11168 = vmatprep.subr.bf16.mxu0 %v11167_v47  ;;  %vm3563_vm15 = vcmp.ge.f32.partialorder %v3547_v53, 0.0 }
 0x54f   : > { %v3577_v3 = vmul.f32 0.2, %v3545_v44  ;;  %v3546_v14 = vadd.f32 %v12862_v39, %v3477_v6  ;;  %11170 = vmatpush3.bf16.msra.mxu0 %v11167_v47  ;;  %vm3561_vm1 = vcmp.ge.f32.partialorder %v3545_v44, 0.0 }
 0x550   : > { %vm3564_vm4 = vcmp.ge.f32.partialorder %v3548_v0, 0.0  ;;  %v3580_v8 = vmul.f32 0.2, %v3548_v0  ;;  %11172 = vmatprep.subr.bf16.mxu0 %v11171_v11  ;;  %v3595_v59 = vsel %vm3563_vm15, %v3547_v53, %v3579_v43  ;;  %v11936_v53 = vmov 0.0  }
 0x551   : > { %vm3562_vm6 = vcmp.ge.f32.partialorder %v3546_v14, 0.0  ;;  %v3578_v16 = vmul.f32 0.2, %v3546_v14  ;;  %v3593_v48 = vsel %vm3561_vm1, %v3545_v44, %v3577_v3  ;;  %vm11935_vm1 = vmmov 0  }
 0x552   : > { %v3596_v29 = vsel %vm3564_vm4, %v3548_v0, %v3580_v8  ;;  %10635 = vmatprep.mubr.msk.f32.mxu1 %vm11935_vm1, %v11936_v53  ;;  %vm3735_vm4 = vcmask 523264  }
 0x553   : > { %v10536_v58 = vpop.f32.mrb[24].mxu0  ;;  %11174 = vmatpush3.bf16.msra.mxu0 %v11171_v11  ;;  %v3594_v25 = vsel %vm3562_vm6, %v3546_v14, %v3578_v16  ;;  %v11179_v12 = vpack.c.bf16 %v3596_v29, %v3595_v59  ;;  %v11934_v11 = vmov 0.0|0.0   ;;  %v12897_v29 = vld [vmem:[%s13859_s6] sm:$0x3]  ;;  %vm3809_vm6 = vcmask 15360  }
 0x554   : > { %v3551_v32 = vadd.f32 %v10536_v58, %v12862_v39  ;;  %v3490_v57 = vpop.f32.mrb[25].mxu0  ;;  %v11175_v61 = vpack.c.bf16 %v3594_v25, %v3593_v48  ;;  %11211 = vmatprep.subr.bf16.mxu1 %v11934_v11  ;;  %v12902_v58 = vld [vmem:[%s12080_s13] sm:$0xff]  ;;  %v12907_v25 = vld [vmem:[%s12080_s13 + $0x8] sm:$0xff] }
 0x555   : > { %v3549_v30 = vadd.f32 %v12862_v39, %v3490_v57  ;;  %v10537_v49 = vpop.f32.mrb[26].mxu0  ;;  %v12919_v57 = vld [vmem:[%s12080_s13 + $0x18] sm:$0xff] }
 0x556   : > { %v3583_v40 = vmul.f32 0.2, %v3551_v32  ;;  %v3552_v18 = vadd.f32 %v10537_v49, %v12862_v39  ;;  %v3493_v19 = vpop.f32.mrb[27].mxu0  ;;  %11176 = vmatprep.subr.bf16.mxu0 %v11175_v61  ;;  %vm3567_vm9 = vcmp.ge.f32.partialorder %v3551_v32, 0.0  ;;  %v12932_v49 = vld [vmem:[%s12080_s13 + $0x30] sm:$0xff] }
 0x557   : > { %v3581_v7 = vmul.f32 0.2, %v3549_v30  ;;  %v3550_v38 = vadd.f32 %v12862_v39, %v3493_v19  ;;  %11178 = vmatpush3.bf16.msra.mxu0 %v11175_v61  ;;  %vm3565_vm10 = vcmp.ge.f32.partialorder %v3549_v30, 0.0  ;;  %v12922_v61 = vld [vmem:[%s12080_s13 + $0x20] sm:$0xff] }
 0x558   : > { %vm3568_vm11 = vcmp.ge.f32.partialorder %v3552_v18, 0.0  ;;  %v3584_v23 = vmul.f32 0.2, %v3552_v18  ;;  %11180 = vmatprep.subr.bf16.mxu0 %v11179_v12  ;;  %v3599_v31 = vsel %vm3567_vm9, %v3551_v32, %v3583_v40  ;;  %v12911_v32 = vld [vmem:[%s12080_s13 + $0x10] sm:$0xff]  ;;  %v12939_v40 = vld [vmem:[%s12080_s13 + $0x38] sm:$0xff] }
 0x559   : > { %vm3566_vm8 = vcmp.ge.f32.partialorder %v3550_v38, 0.0  ;;  %v3582_v42 = vmul.f32 0.2, %v3550_v38  ;;  %v3597_v62 = vsel %vm3565_vm10, %v3549_v30, %v3581_v7  ;;  %v12929_v30 = vld [vmem:[%s12080_s13 + $0x28] sm:$0xff]  ;;  %vm4217_vm10 = vcmask 130048  }
 0x55a   : > { %v3600_v60 = vsel %vm3568_vm11, %v3552_v18, %v3584_v23 }
 0x55b   : > { %v10540_v33 = vpop.f32.mrb[28].mxu0  ;;  %11182 = vmatpush3.bf16.msra.mxu0 %v11179_v12  ;;  %v3598_v63 = vsel %vm3566_vm8, %v3550_v38, %v3582_v42  ;;  %v11187_v2 = vpack.c.bf16 %v3600_v60, %v3599_v31 }
 0x55c   : > { %v3555_v5 = vadd.f32 %v10540_v33, %v12862_v39  ;;  %v3506_v9 = vpop.f32.mrb[29].mxu0  ;;  %v11183_v10 = vpack.c.bf16 %v3598_v63, %v3597_v62 }
 0x55d   : > { %v3553_v15 = vadd.f32 %v12862_v39, %v3506_v9  ;;  %v10541_v17 = vpop.f32.mrb[30].mxu0 }
 0x55e   : > { %v3587_v21 = vmul.f32 0.2, %v3555_v5  ;;  %v3556_v24 = vadd.f32 %v10541_v17, %v12862_v39  ;;  %v3509_v41 = vpop.f32.mrb[31].mxu0  ;;  %11184 = vmatprep.subr.bf16.mxu0 %v11183_v10  ;;  %vm3571_vm14 = vcmp.ge.f32.partialorder %v3555_v5, 0.0 }
 0x55f   : > { %v3585_v28 = vmul.f32 0.2, %v3553_v15  ;;  %v3554_v22 = vadd.f32 %v12862_v39, %v3509_v41  ;;  %11186 = vmatpush3.bf16.msra.mxu0 %v11183_v10  ;;  %vm3569_vm12 = vcmp.ge.f32.partialorder %v3553_v15, 0.0 }
 0x560   : > { %vm3572_vm13 = vcmp.ge.f32.partialorder %v3556_v24, 0.0  ;;  %v3588_v27 = vmul.f32 0.2, %v3556_v24  ;;  %11188 = vmatprep.subr.bf16.mxu0 %v11187_v2  ;;  %v3603_v20 = vsel %vm3571_vm14, %v3555_v5, %v3587_v21 }
 0x561   : > { %vm3570_vm15 = vcmp.ge.f32.partialorder %v3554_v22, 0.0  ;;  %v3586_v35 = vmul.f32 0.2, %v3554_v22  ;;  %v3601_v34 = vsel %vm3569_vm12, %v3553_v15, %v3585_v28 }
 0x562   : > { %v3604_v52 = vsel %vm3572_vm13, %v3556_v24, %v3588_v27 }
 0x563   : > { %11190 = vmatpush3.bf16.msra.mxu0 %v11187_v2  ;;  %v3602_v4 = vsel %vm3570_vm15, %v3554_v22, %v3586_v35  ;;  %v11195_v37 = vpack.c.bf16 %v3604_v52, %v3603_v20 }
 0x564   : > { %v11191_v39 = vpack.c.bf16 %v3602_v4, %v3601_v34 }
 0x566   : > { %11192 = vmatprep.subr.bf16.mxu0 %v11191_v39 }
 0x567   : > { %11194 = vmatpush3.bf16.msra.mxu0 %v11191_v39  ;;  %v12986_v39 = vld [vmem:[%s985_s23] sm:$0xff] }
 0x568   : > { %11196 = vmatprep.subr.bf16.mxu0 %v11195_v37  ;;  %4168 = vrot.lane.b32.xlu1 %v12986_v39, %s11937_s28 }
 0x56b   : > { %11198 = vmatpush3.bf16.msra.mxu0 %v11195_v37  ;;  %v12984_v37 = vld [vmem:[%s985_s23 + $0x8] sm:$0xff] }
 0x56c   : > { %11199 = vmatprep.subr.bf16.mxu0 %v11934_v11  ;;  %4170 = vrot.lane.b32.xlu0 %v12984_v37, %s11937_s28 }
 0x56e   : > { %10575 = vmatmul.mubr.f32.vlgmr.msra.gmra.mrb[32].mxu0 %v3606_v36  ;;  %v12990_v36 = vld [vmem:[%s985_s23 + $0x18] sm:$0xff] }
 0x56f   : > { %10577 = vmatprep.mubr.f32.mxu0 %v3607_v46  ;;  %v12992_v46 = vld [vmem:[%s985_s23 + $0x10] sm:$0xff] }
 0x570   : > { %4174 = vrot.lane.b32.xlu0 %v12990_v36, %s11937_s28  ;;  %4172 = vrot.lane.b32.xlu1 %v12992_v46, %s11937_s28 }
 0x572   : > { %10578 = vmatmul.mubr.f32.gmra.mrb[34].mxu0 %v3608_v56  ;;  %v12996_v56 = vld [vmem:[%s985_s23 + $0x28] sm:$0xff] }
 0x573   : > { %10580 = vmatprep.mubr.f32.mxu0 %v3609_v54  ;;  %v12998_v54 = vld [vmem:[%s985_s23 + $0x20] sm:$0xff] }
 0x574   : > { %4178 = vrot.lane.b32.xlu0 %v12996_v56, %s11937_s28  ;;  %4176 = vrot.lane.b32.xlu1 %v12998_v54, %s11937_s28 }
 0x576   : > { %10581 = vmatmul.mubr.f32.gmra.mrb[36].mxu0 %v3610_v1  ;;  %v13002_v1 = vld [vmem:[%s985_s23 + $0x38] sm:$0xff] }
 0x577   : > { %10583 = vmatprep.mubr.f32.mxu0 %v3611_v50  ;;  %v13004_v50 = vld [vmem:[%s985_s23 + $0x30] sm:$0xff]  ;;  %s13873_s23 = sld [smem:[#allocation11_spill]] }
 0x578   : > { %4182 = vrot.lane.b32.xlu0 %v13002_v1, %s11937_s28  ;;  %4180 = vrot.lane.b32.xlu1 %v13004_v50, %s11937_s28  ;;  %s13874_s28 = sld [smem:[#allocation12_spill]] }
 0x57a   : > { %10584 = vmatmul.mubr.f32.gmra.mrb[38].mxu0 %v3612_v45 }
 0x57b   : > { %10602 = vmatprep.mubr.msk.f32.mxu0 %vm11935_vm1, %v11936_v53 }
 0x641   : > { %v10576_v51 = vpop.f32.mrb[32].mxu0 }
 0x642   : > { %v3679_v47 = vpop.f32.mrb[33].mxu0 }
 0x643   : > { %v11200_v44 = vpack.c.bf16 %v10576_v51, %v3679_v47 }
 0x645   : > { %v10579_v26 = vpop.f32.mrb[34].mxu0  ;;  %11201 = vmatpush3.bf16.msra.mxu0 %v11200_v44 }
 0x646   : > { %v3689_v43 = vpop.f32.mrb[35].mxu0  ;;  %11202 = vmatprep.subr.bf16.mxu0 %v11934_v11 }
 0x647   : > { %v11203_v0 = vpack.c.bf16 %v10579_v26, %v3689_v43 }
 0x649   : > { %v10582_v6 = vpop.f32.mrb[36].mxu0  ;;  %11204 = vmatpush3.bf16.msra.mxu0 %v11203_v0 }
 0x64a   : > { %v3699_v3 = vpop.f32.mrb[37].mxu0  ;;  %11205 = vmatprep.subr.bf16.mxu0 %v11934_v11 }
 0x64b   : > { %v11206_v14 = vpack.c.bf16 %v10582_v6, %v3699_v3 }
 0x64d   : > { %v10585_v8 = vpop.f32.mrb[38].mxu0  ;;  %11207 = vmatpush3.bf16.msra.mxu0 %v11206_v14 }
 0x64e   : > { %v3709_v16 = vpop.f32.mrb[39].mxu0  ;;  %11208 = vmatprep.subr.bf16.mxu0 %v11934_v11 }
 0x64f   : > { %v11209_v59 = vpack.c.bf16 %v10585_v8, %v3709_v16 }
 0x651   : > { %11210 = vmatpush3.bf16.msra.mxu0 %v11209_v59 }
 0x654   : > { %10603 = vmatmul.mubr.msk.f32.vlgmr.msra.gmra.mrb[40].mxu0 %vm3735_vm4, %v12897_v29 }
 0x655   : > { %10607 = vmatprep.mubr.msk.f32.mxu0 %vm3809_vm6, %v12902_v58 }
 0x727   : > { %v3805_v48 = vpop.f32.mrb[40].mxu0 }
 0x728   : > { %v10604_v12 = vpop.f32.mrb[41].mxu0  ;;  %10605 = vmatprep.subr.msk.mxu0 %vm1268_vm0, %v3805_v48 }
 0x729   : > { %10606 = vmatpush3.msk.msra.mxu0 %vm1268_vm0, %v3805_v48  ;;  %v13028_v12 = vpop.permute.xlu0 %4170 }
 0x72a   : > { %10608 = vmatmul.mubr.msk.f32.vlgmr.msra.gmra.mrb[42].mxu0 %vm3809_vm6, %v12907_v25 }
 0x72b   : > { %10610 = vmatprep.mubr.msk.f32.mxu0 %vm3809_vm6, %v12911_v32 }
 0x72e   : > { %10611 = vmatmul.mubr.msk.f32.gmra.mrb[44].mxu0 %vm3809_vm6, %v12919_v57 }
 0x72f   : > { %10613 = vmatprep.mubr.msk.f32.mxu0 %vm3809_vm6, %v12922_v61 }
 0x732   : > { %10614 = vmatmul.mubr.msk.f32.gmra.mrb[46].mxu0 %vm3809_vm6, %v12929_v30 }
 0x733   : > { %10616 = vmatprep.mubr.msk.f32.mxu0 %vm3809_vm6, %v12932_v49 }
 0x736   : > { %10617 = vmatmul.mubr.msk.f32.gmra.mrb[48].mxu0 %vm3809_vm6, %v12939_v40 }
 0x737   : > { %10640 = vmatprep.mubr.msk.f32.mxu0 %vm3809_vm6, %v12902_v58 }
 0x7fd   : > { %v10609_v18 = vpop.f32.mrb[42].mxu0 }
 0x7fe   : > { %v12945_v19 = vsub.f32 %v10576_v51, %v10609_v18  ;;  %v3903_v7 = vpop.f32.mrb[43].mxu0 }
 0x7ff   : > { %v12947_v38 = vsub.f32 %v3679_v47, %v3903_v7  ;;  %v11720_v47 = vld [vmem:[%s11995_s14] sm:$0xff]   ;;  %v13030_v7 = vpop.permute.xlu1 %4168 }
 0x800   : > { %v3951_v23 = vmul.f32 %v12945_v19, %v12945_v19 }
 0x801   : > { %v3950_v42 = vmul.f32 %v12947_v38, %v12947_v38  ;;  %v10612_v31 = vpop.f32.mrb[44].mxu0 }
 0x802   : > { %v12953_v60 = vsub.f32 %v10579_v26, %v10612_v31  ;;  %v3913_v33 = vpop.f32.mrb[45].mxu0 }
 0x803   : > { %v11212_v62 = vpack.c.bf16 %v3951_v23, %v3950_v42  ;;  %v12955_v63 = vsub.f32 %v3689_v43, %v3913_v33 }
 0x804   : > { %v3953_v2 = vmul.f32 %v12953_v60, %v12953_v60 }
 0x805   : > { %v3952_v5 = vmul.f32 %v12955_v63, %v12955_v63  ;;  %v10615_v9 = vpop.f32.mrb[46].mxu0  ;;  %11213 = vmatpush3.bf16.msra.mxu1 %v11212_v62 }
 0x806   : > { %v12961_v10 = vsub.f32 %v10582_v6, %v10615_v9  ;;  %v3923_v15 = vpop.f32.mrb[47].mxu0  ;;  %11214 = vmatprep.subr.bf16.mxu1 %v11934_v11 }
 0x807   : > { %v11215_v17 = vpack.c.bf16 %v3953_v2, %v3952_v5  ;;  %v12964_v21 = vsub.f32 %v3699_v3, %v3923_v15  ;;  %v13034_v15 = vpop.permute.xlu0 %4174 }
 0x808   : > { %v3955_v24 = vmul.f32 %v12961_v10, %v12961_v10 }
 0x809   : > { %v3954_v41 = vmul.f32 %v12964_v21, %v12964_v21  ;;  %v10618_v28 = vpop.f32.mrb[48].mxu0  ;;  %11216 = vmatpush3.bf16.msra.mxu1 %v11215_v17 }
 0x80a   : > { %v12970_v22 = vsub.f32 %v10585_v8, %v10618_v28  ;;  %v3933_v27 = vpop.f32.mrb[49].mxu0  ;;  %11217 = vmatprep.subr.bf16.mxu1 %v11934_v11 }
 0x80b   : > { %v11218_v35 = vpack.c.bf16 %v3955_v24, %v3954_v41  ;;  %v12973_v20 = vsub.f32 %v3709_v16, %v3933_v27  ;;  %v13037_v24 = vpop.permute.xlu1 %4172 }
 0x80c   : > { %v3957_v52 = vmul.f32 %v12970_v22, %v12970_v22 }
 0x80d   : > { %v3956_v34 = vmul.f32 %v12973_v20, %v12973_v20  ;;  %11219 = vmatpush3.bf16.msra.mxu1 %v11218_v35 }
 0x80e   : > { %11220 = vmatprep.subr.bf16.mxu1 %v11934_v11 }
 0x80f   : > { %v11221_v4 = vpack.c.bf16 %v3957_v52, %v3956_v34 }
 0x811   : > { %11222 = vmatpush3.bf16.msra.mxu1 %v11221_v4 }
 0x812   : > { %10652 = vmatprep.subr.bf16.mxu1 %v11720_v47 }
 0x814   : > { %10636 = vmatmul.mubr.msk.f32.vlgmr.msra.gmra.mrb[40].mxu1 %vm3735_vm4, %v12897_v29 }
 0x815   : > { %10653 = vmatpush3.bf16.msra.mxu1 %v11720_v47 }
 0x8e7   : > { %v4024_v45 = vpop.f32.mrb[40].mxu1 }
 0x8e8   : > { %10638 = vmatprep.subr.msk.mxu0 %vm1268_vm0, %v4024_v45  ;;  %v10637_v51 = vpop.f32.mrb[41].mxu1 }
 0x8e9   : > { %10639 = vmatpush3.msk.msra.mxu0 %vm1268_vm0, %v4024_v45 }
 0x8ea   : > { %10641 = vmatmul.mubr.msk.f32.vlgmr.msra.gmra.mrb[50].mxu0 %vm3809_vm6, %v12907_v25  ;;  %11223 = vmatprep.subr.bf16.mxu0 %v11934_v11 }
 0x8eb   : > { %10643 = vmatprep.mubr.msk.f32.mxu0 %vm3809_vm6, %v12911_v32 }
 0x8ee   : > { %10644 = vmatmul.mubr.msk.f32.gmra.mrb[52].mxu0 %vm3809_vm6, %v12919_v57 }
 0x8ef   : > { %10646 = vmatprep.mubr.msk.f32.mxu0 %vm3809_vm6, %v12922_v61 }
 0x8f2   : > { %10647 = vmatmul.mubr.msk.f32.gmra.mrb[54].mxu0 %vm3809_vm6, %v12929_v30 }
 0x8f3   : > { %10649 = vmatprep.mubr.msk.f32.mxu0 %vm3809_vm6, %v12932_v49 }
 0x8f6   : > { %10650 = vmatmul.mubr.msk.f32.gmra.mrb[56].mxu0 %vm3809_vm6, %v12939_v40 }
 0x8f7   : > { %10678 = vmatprep.mubr.msk.f32.mxu0 %vm11935_vm1, %v11936_v53 }
 0x9bd   : > { %v10642_v44 = vpop.f32.mrb[50].mxu0 }
 0x9be   : > { %v4103_v26 = vadd.f32 1e-05, %v10642_v44  ;;  %v4097_v43 = vpop.f32.mrb[51].mxu0 }
 0x9bf   : > { %v4098_v0 = vadd.f32 1e-05, %v4097_v43 }
 0x9c0   : > { %11782 = vrsqrt.f32 %v4103_v26  ;;  %v13046_v26 = vpop.permute.xlu0 %4178 }
 0x9c1   : > { %11784 = vrsqrt.f32 %v4098_v0  ;;  %v10645_v6 = vpop.f32.mrb[52].mxu0 }
 0x9c2   : > { %v4113_v3 = vadd.f32 1e-05, %v10645_v6  ;;  %v4107_v14 = vpop.f32.mrb[53].mxu0  ;;  %v13050_v6 = vpop.permute.xlu1 %4176 }
 0x9c3   : > { %v4108_v8 = vadd.f32 1e-05, %v4107_v14 }
 0x9c4   : > { %11786 = vrsqrt.f32 %v4113_v3 }
 0x9c5   : > { %11788 = vrsqrt.f32 %v4108_v8  ;;  %v10648_v16 = vpop.f32.mrb[54].mxu0 }
 0x9c6   : > { %v4123_v59 = vadd.f32 1e-05, %v10648_v16  ;;  %v4117_v48 = vpop.f32.mrb[55].mxu0 }
 0x9c7   : > { %v4118_v18 = vadd.f32 1e-05, %v4117_v48 }
 0x9c8   : > { %11790 = vrsqrt.f32 %v4123_v59 }
 0x9c9   : > { %11792 = vrsqrt.f32 %v4118_v18  ;;  %v10651_v23 = vpop.f32.mrb[56].mxu0 }
 0x9ca   : > { %v11783_v42 = vpop.eup %11782  ;;  %v4133_v31 = vadd.f32 1e-05, %v10651_v23  ;;  %v4127_v33 = vpop.f32.mrb[57].mxu0 }
 0x9cb   : > { %v11785_v62 = vpop.eup %11784  ;;  %v4128_v2 = vadd.f32 1e-05, %v4127_v33  ;;  %v4145_v5 = vmul.f32 %v11783_v42, %v12945_v19 }
 0x9cc   : > { %11794 = vrsqrt.f32 %v4133_v31  ;;  %v4144_v9 = vmul.f32 %v11785_v62, %v12947_v38 }
 0x9cd   : > { %11796 = vrsqrt.f32 %v4128_v2  ;;  %v4153_v17 = vmul.f32 %v4145_v5, %v12984_v37  ;;  %v13067_v5 = vpop.permute.xlu0 %4182 }
 0x9ce   : > { %v11787_v41 = vpop.eup %11786  ;;  %v4152_v28 = vmul.f32 %v4144_v9, %v12986_v39 }
 0x9cf   : > { %v11789_v27 = vpop.eup %11788  ;;  %v4193_v35 = vadd.f32 %v13028_v12, %v4153_v17  ;;  %v4147_v52 = vmul.f32 %v11787_v41, %v12953_v60 }
 0x9d0   : > { %v4192_v19 = vadd.f32 %v13030_v7, %v4152_v28  ;;  %v4146_v34 = vmul.f32 %v11789_v27, %v12955_v63  ;;  %v13072_v27 = vpop.permute.xlu1 %4180 }
 0x9d1   : > { %vm4296_vm9 = vcmp.ge.f32.partialorder %v4193_v35, 0.0  ;;  %v4304_v38 = vmul.f32 0.2, %v4193_v35  ;;  %v4155_v4 = vmul.f32 %v4147_v52, %v12990_v36 }
 0x9d2   : > { %v11791_v45 = vpop.eup %11790  ;;  %vm4295_vm11 = vcmp.ge.f32.partialorder %v4192_v19, 0.0  ;;  %v4303_v51 = vmul.f32 0.2, %v4192_v19  ;;  %v4154_v47 = vmul.f32 %v4146_v34, %v12992_v46  ;;  %v4201_v44 = vpack.c.bf16 %v4193_v35, %v4192_v19 }
 0x9d3   : > { %v11793_v43 = vpop.eup %11792  ;;  %v4195_v60 = vadd.f32 %v13034_v15, %v4155_v4  ;;  %v4149_v0 = vmul.f32 %v11791_v45, %v12961_v10  ;;  %v13052_v63 = vsel %vm4296_vm9, %v4193_v35, %v4304_v38 }
 0x9d4   : > { %v4194_v3 = vadd.f32 %v13037_v24, %v4154_v47  ;;  %10654 = vmatprep.mubr.msk.bf16.mxu1 %vm4217_vm10, %v4201_v44  ;;  %v4148_v14 = vmul.f32 %v11793_v43, %v12964_v21  ;;  %v13057_v8 = vsel %vm4295_vm11, %v4192_v19, %v4303_v51 }
 0x9d5   : > { %vm4298_vm8 = vcmp.ge.f32.partialorder %v4195_v60, 0.0  ;;  %v4306_v16 = vmul.f32 0.2, %v4195_v60  ;;  %v4157_v59 = vmul.f32 %v4149_v0, %v12996_v56  ;;  %v11224_v48 = vpack.c.bf16 %v13052_v63, %v13057_v8 }
 0x9d6   : > { %v11795_v10 = vpop.eup %11794  ;;  %v4202_v18 = vpack.c.bf16 %v4195_v60, %v4194_v3  ;;  %vm4297_vm14 = vcmp.ge.f32.partialorder %v4194_v3, 0.0  ;;  %v4305_v23 = vmul.f32 0.2, %v4194_v3  ;;  %v4156_v42 = vmul.f32 %v4148_v14, %v12998_v54 }
 0x9d7   : > { %v11797_v31 = vpop.eup %11796  ;;  %v4197_v33 = vadd.f32 %v13046_v26, %v4157_v59  ;;  %11225 = vmatpush3.bf16.msra.mxu0 %v11224_v48  ;;  %v4151_v21 = vmul.f32 %v11795_v10, %v12970_v22  ;;  %v4314_v62 = vsel %vm4298_vm8, %v4195_v60, %v4306_v16 }
 0x9d8   : > { %v4196_v2 = vadd.f32 %v13050_v6, %v4156_v42  ;;  %10655 = vmatmul.mubr.msk.bf16.vlgmr.msra.gmra.mrb[44].mxu1 %vm4217_vm10, %v4202_v18  ;;  %11226 = vmatprep.subr.bf16.mxu0 %v11934_v11  ;;  %v4150_v9 = vmul.f32 %v11797_v31, %v12973_v20  ;;  %v4313_v17 = vsel %vm4297_vm14, %v4194_v3, %v4305_v23 }
 0x9d9   : > { %vm4300_vm12 = vcmp.ge.f32.partialorder %v4197_v33, 0.0  ;;  %v4308_v41 = vmul.f32 0.2, %v4197_v33  ;;  %v4159_v28 = vmul.f32 %v4151_v21, %v13002_v1  ;;  %v11227_v35 = vpack.c.bf16 %v4314_v62, %v4313_v17 }
 0x9da   : > { %vm4299_vm13 = vcmp.ge.f32.partialorder %v4196_v2, 0.0  ;;  %v4307_v22 = vmul.f32 0.2, %v4196_v2  ;;  %v4158_v52 = vmul.f32 %v4150_v9, %v13004_v50  ;;  %v4203_v19 = vpack.c.bf16 %v4197_v33, %v4196_v2 }
 0x9db   : > { %v4199_v34 = vadd.f32 %v13067_v5, %v4159_v28  ;;  %11228 = vmatpush3.bf16.msra.mxu0 %v11227_v35  ;;  %v4316_v38 = vsel %vm4300_vm12, %v4197_v33, %v4308_v41 }
 0x9dc   : > { %v4198_v4 = vadd.f32 %v13072_v27, %v4158_v52  ;;  %10658 = vmatprep.mubr.msk.bf16.mxu1 %vm4217_vm10, %v4203_v19  ;;  %11229 = vmatprep.subr.bf16.mxu0 %v11934_v11  ;;  %v4315_v20 = vsel %vm4299_vm13, %v4196_v2, %v4307_v22 }
 0x9dd   : > { %vm4302_vm15 = vcmp.ge.f32.partialorder %v4199_v34, 0.0  ;;  %v4310_v45 = vmul.f32 0.2, %v4199_v34  ;;  %v11230_v51 = vpack.c.bf16 %v4316_v38, %v4315_v20 }
 0x9de   : > { %vm4301_vm9 = vcmp.ge.f32.partialorder %v4198_v4, 0.0  ;;  %v4309_v47 = vmul.f32 0.2, %v4198_v4  ;;  %v4204_v44 = vpack.c.bf16 %v4199_v34, %v4198_v4 }
 0x9df   : > { %11231 = vmatpush3.bf16.msra.mxu0 %v11230_v51  ;;  %v4318_v43 = vsel %vm4302_vm15, %v4199_v34, %v4310_v45 }
 0x9e0   : > { %10659 = vmatmul.mubr.msk.bf16.gmra.mrb[48].mxu1 %vm4217_vm10, %v4204_v44  ;;  %11232 = vmatprep.subr.bf16.mxu0 %v11934_v11  ;;  %v4317_v60 = vsel %vm4301_vm9, %v4198_v4, %v4309_v47 }
 0x9e1   : > { %v11233_v0 = vpack.c.bf16 %v4318_v43, %v4317_v60  ;;  %10683 = vmatprep.mubr.msk.f32.mxu1 %vm3809_vm6, %v12902_v58 }
 0x9e3   : > { %11234 = vmatpush3.bf16.msra.mxu0 %v11233_v0 }
 0x9e4   : > { %11235 = vmatprep.subr.bf16.mxu0 %v11934_v11 }
 0x9e6   : > { %10679 = vmatmul.mubr.msk.f32.vlgmr.msra.gmra.mrb[58].mxu0 %vm3735_vm4, %v12897_v29 }
 0x9e7   : > { %10711 = vmatprep.mubr.msk.f32.mxu0 %vm11935_vm1, %v11936_v53 }
 0xab9   : > { %v4385_v3 = vpop.f32.mrb[58].mxu0 }
 0xaba   : > { %10681 = vmatprep.subr.msk.mxu1 %vm1268_vm0, %v4385_v3  ;;  %v10680_v14 = vpop.f32.mrb[59].mxu0 }
 0xabb   : > { %10682 = vmatpush3.msk.msra.mxu1 %vm1268_vm0, %v4385_v3 }
 0xabc   : > { %10684 = vmatmul.mubr.msk.f32.vlgmr.msra.gmra.mrb[42].mxu1 %vm3809_vm6, %v12907_v25 }
 0xabd   : > { %10686 = vmatprep.mubr.msk.f32.mxu1 %vm3809_vm6, %v12911_v32 }
 0xac0   : > { %10687 = vmatmul.mubr.msk.f32.gmra.mrb[52].mxu1 %vm3809_vm6, %v12919_v57 }
 0xac1   : > { %10689 = vmatprep.mubr.msk.f32.mxu1 %vm3809_vm6, %v12922_v61 }
 0xac4   : > { %10690 = vmatmul.mubr.msk.f32.gmra.mrb[54].mxu1 %vm3809_vm6, %v12929_v30 }
 0xac5   : > { %10692 = vmatprep.mubr.msk.f32.mxu1 %vm3809_vm6, %v12932_v49 }
 0xac8   : > { %10693 = vmatmul.mubr.msk.f32.gmra.mrb[56].mxu1 %vm3809_vm6, %v12939_v40 }
 0xac9   : > { %10716 = vmatprep.mubr.msk.f32.mxu1 %vm3809_vm6, %v12902_v58 }
 0xb8f   : > { %v10685_v16 = vpop.f32.mrb[42].mxu1 }
 0xb90   : > { %v13107_v59 = vsub.f32 %v13052_v63, %v10685_v16  ;;  %v4458_v48 = vpop.f32.mrb[43].mxu1 }
 0xb91   : > { %v13110_v10 = vsub.f32 %v13057_v8, %v4458_v48 }
 0xb92   : > { %v4506_v18 = vmul.f32 %v13107_v59, %v13107_v59 }
 0xb93   : > { %v4505_v23 = vmul.f32 %v13110_v10, %v13110_v10  ;;  %v10688_v42 = vpop.f32.mrb[52].mxu1 }
 0xb94   : > { %v13116_v31 = vsub.f32 %v4314_v62, %v10688_v42  ;;  %v4468_v33 = vpop.f32.mrb[53].mxu1 }
 0xb95   : > { %v11236_v21 = vpack.c.bf16 %v4506_v18, %v4505_v23  ;;  %v13118_v58 = vsub.f32 %v4313_v17, %v4468_v33 }
 0xb96   : > { %v4508_v63 = vmul.f32 %v13116_v31, %v13116_v31 }
 0xb97   : > { %v4507_v8 = vmul.f32 %v13118_v58, %v13118_v58  ;;  %v10691_v2 = vpop.f32.mrb[54].mxu1  ;;  %11237 = vmatpush3.bf16.msra.mxu0 %v11236_v21 }
 0xb98   : > { %v13124_v9 = vsub.f32 %v4316_v38, %v10691_v2  ;;  %v4478_v41 = vpop.f32.mrb[55].mxu1  ;;  %11238 = vmatprep.subr.bf16.mxu0 %v11934_v11 }
 0xb99   : > { %v11239_v28 = vpack.c.bf16 %v4508_v63, %v4507_v8  ;;  %v13127_v62 = vsub.f32 %v4315_v20, %v4478_v41 }
 0xb9a   : > { %v4510_v17 = vmul.f32 %v13124_v9, %v13124_v9 }
 0xb9b   : > { %v4509_v35 = vmul.f32 %v13127_v62, %v13127_v62  ;;  %v10694_v22 = vpop.f32.mrb[56].mxu1  ;;  %11240 = vmatpush3.bf16.msra.mxu0 %v11239_v28 }
 0xb9c   : > { %v13133_v52 = vsub.f32 %v4318_v43, %v10694_v22  ;;  %v4488_v19 = vpop.f32.mrb[57].mxu1  ;;  %11241 = vmatprep.subr.bf16.mxu0 %v11934_v11 }
 0xb9d   : > { %v11242_v34 = vpack.c.bf16 %v4510_v17, %v4509_v35  ;;  %v13136_v38 = vsub.f32 %v4317_v60, %v4488_v19  ;;  %v9597_v35 = vld [vmem:[%s13860_s4 + $0x90] sm:$0xff]  ;;  %v9595_v19 = vld [vmem:[%s13860_s4 + $0x80] sm:$0xff] }
 0xb9e   : > { %v4512_v4 = vmul.f32 %v13133_v52, %v13133_v52 }
 0xb9f   : > { %v4511_v20 = vmul.f32 %v13136_v38, %v13136_v38  ;;  %11243 = vmatpush3.bf16.msra.mxu0 %v11242_v34  ;;  %v9596_v34 = vld [vmem:[%s13860_s4 + $0x88] sm:$0xff] }
 0xba0   : > { %11244 = vmatprep.subr.bf16.mxu0 %v11934_v11 }
 0xba1   : > { %v11245_v45 = vpack.c.bf16 %v4512_v4, %v4511_v20  ;;  %v9601_v20 = vld [vmem:[%s13860_s4 + $0xb0] sm:$0xff] }
 0xba3   : > { %11246 = vmatpush3.bf16.msra.mxu0 %v11245_v45  ;;  %v9602_v45 = vld [vmem:[%s13860_s4 + $0xb8] sm:$0xff] }
 0xba6   : > { %10712 = vmatmul.mubr.msk.f32.vlgmr.msra.gmra.mrb[60].mxu0 %vm3735_vm4, %v12897_v29 }
 0xc79   : > { %v4579_v51 = vpop.f32.mrb[60].mxu0 }
 0xc7a   : > { %10714 = vmatprep.subr.msk.mxu1 %vm1268_vm0, %v4579_v51  ;;  %v10713_v47 = vpop.f32.mrb[61].mxu0 }
 0xc7b   : > { %10715 = vmatpush3.msk.msra.mxu1 %vm1268_vm0, %v4579_v51  ;;  %v9599_v51 = vld [vmem:[%s13860_s4 + $0xa0] sm:$0xff]  ;;  %v9600_v47 = vld [vmem:[%s13860_s4 + $0xa8] sm:$0xff] }
 0xc7c   : > { %10717 = vmatmul.mubr.msk.f32.vlgmr.msra.gmra.mrb[58].mxu1 %vm3809_vm6, %v12907_v25 }
 0xc7d   : > { %10719 = vmatprep.mubr.msk.f32.mxu1 %vm3809_vm6, %v12911_v32 }
 0xc80   : > { %10720 = vmatmul.mubr.msk.f32.gmra.mrb[60].mxu1 %vm3809_vm6, %v12919_v57 }
 0xc81   : > { %10722 = vmatprep.mubr.msk.f32.mxu1 %vm3809_vm6, %v12922_v61 }
 0xc84   : > { %10723 = vmatmul.mubr.msk.f32.gmra.mrb[62].mxu1 %vm3809_vm6, %v12929_v30 }
 0xc85   : > { %10725 = vmatprep.mubr.msk.f32.mxu1 %vm3809_vm6, %v12932_v49 }
 0xc88   : > { %10726 = vmatmul.mubr.msk.f32.gmra.mrb[64].mxu1 %vm3809_vm6, %v12939_v40 }
 0xd4f   : > { %v10718_v29 = vpop.f32.mrb[58].mxu1 }
 0xd50   : > { %v4658_v25 = vadd.f32 1e-05, %v10718_v29  ;;  %v4652_v44 = vpop.f32.mrb[59].mxu1  ;;  %v13177_v29 = vpack.c.bf16 %v9602_v45, %v9601_v20  ;;  %v13872_v45 = vmov 1  }
 0xd51   : > { %v4653_v43 = vadd.f32 1e-05, %v4652_v44 }
 0xd52   : > { %11798 = vrsqrt.f32 %v4658_v25  ;;  %v4767_v25 = vpack.c.bf16 %v9600_v47, %v9599_v51 }
 0xd53   : > { %11800 = vrsqrt.f32 %v4653_v43  ;;  %v10721_v32 = vpop.f32.mrb[60].mxu1 }
 0xd54   : > { %v4668_v57 = vadd.f32 1e-05, %v10721_v32  ;;  %v4662_v60 = vpop.f32.mrb[61].mxu1 }
 0xd55   : > { %v4663_v0 = vadd.f32 1e-05, %v4662_v60 }
 0xd56   : > { %11802 = vrsqrt.f32 %v4668_v57 }
 0xd57   : > { %11804 = vrsqrt.f32 %v4663_v0  ;;  %v10724_v61 = vpop.f32.mrb[62].mxu1 }
 0xd58   : > { %v4678_v30 = vadd.f32 1e-05, %v10724_v61  ;;  %v4672_v3 = vpop.f32.mrb[63].mxu1 }
 0xd59   : > { %v4673_v14 = vadd.f32 1e-05, %v4672_v3 }
 0xd5a   : > { %11806 = vrsqrt.f32 %v4678_v30 }
 0xd5b   : > { %11808 = vrsqrt.f32 %v4673_v14  ;;  %v10727_v49 = vpop.f32.mrb[64].mxu1 }
 0xd5c   : > { %v11799_v40 = vpop.eup %11798  ;;  %v4688_v16 = vadd.f32 1e-05, %v10727_v49  ;;  %v4682_v48 = vpop.f32.mrb[65].mxu1 }
 0xd5d   : > { %v11801_v18 = vpop.eup %11800  ;;  %v4683_v23 = vadd.f32 1e-05, %v4682_v48  ;;  %v4700_v42 = vmul.f32 %v11799_v40, %v13107_v59 }
 0xd5e   : > { %11810 = vrsqrt.f32 %v4688_v16  ;;  %v4699_v33 = vmul.f32 %v11801_v18, %v13110_v10 }
 0xd5f   : > { %11812 = vrsqrt.f32 %v4683_v23  ;;  %4717 = vrot.lane.b32.xlu0 %v4700_v42, %s11938_s1 }
 0xd60   : > { %v11803_v21 = vpop.eup %11802  ;;  %4715 = vrot.lane.b32.xlu1 %v4699_v33, %s11938_s1 }
 0xd61   : > { %v11805_v63 = vpop.eup %11804  ;;  %v4702_v8 = vmul.f32 %v11803_v21, %v13116_v31  ;;  %v9598_v31 = vld [vmem:[%s13860_s4 + $0x98] sm:$0xff] }
 0xd62   : > { %v4701_v2 = vmul.f32 %v11805_v63, %v13118_v58 }
 0xd63   : > { %4721 = vrot.lane.b32.xlu0 %v4702_v8, %s11938_s1 }
 0xd64   : > { %v11807_v41 = vpop.eup %11806  ;;  %4719 = vrot.lane.b32.xlu1 %v4701_v2, %s11938_s1 }
 0xd65   : > { %v11809_v59 = vpop.eup %11808  ;;  %v4704_v10 = vmul.f32 %v11807_v41, %v13124_v9  ;;  %v4766_v9 = vpack.c.bf16 %v9598_v31, %v9597_v35  ;;  %v11722_v31 = vld [vmem:[%s12000_s19] sm:$0xff]  }
 0xd66   : > { %v4703_v28 = vmul.f32 %v11809_v59, %v13127_v62  ;;  %v4765_v62 = vpack.c.bf16 %v9596_v34, %v9595_v19 }
 0xd67   : > { %4725 = vrot.lane.b32.xlu0 %v4704_v10, %s11938_s1 }
 0xd68   : > { %v11811_v17 = vpop.eup %11810  ;;  %4723 = vrot.lane.b32.xlu1 %v4703_v28, %s11938_s1 }
 0xd69   : > { %v11813_v22 = vpop.eup %11812  ;;  %v4706_v58 = vmul.f32 %v11811_v17, %v13133_v52  ;;  %v13871_v52 = vmov 0  }
 0xd6a   : > { %v4705_v4 = vmul.f32 %v11813_v22, %v13136_v38  ;;  %v11721_v38 = vld [vmem:[%s12000_s19 + $0x8] sm:$0xff]  }
 0xd6b   : > { %4729 = vrot.lane.b32.xlu0 %v4706_v58, %s11938_s1  ;;  %10728 = vmatprep.subr.bf16.mxu0 %v11721_v38 }
 0xd6c   : > { %4727 = vrot.lane.b32.xlu1 %v4705_v4, %s11938_s1  ;;  %10729 = vmatpush3.bf16.msra.mxu0 %v11721_v38  ;;  %s13875_s1 = sld [smem:[#allocation21_spill]] }
 0xd6d   : > { %10738 = vmatprep.subr.bf16.mxu0 %v11722_v31 }
 0xd6f   : > { %4862 = vperm.xlu0 %11710, %v4766_v9  }
 0xd70   : > { %4858 = vperm.xlu1 %11711, %v4765_v62  }
 0xd73   : > { %4870 = vperm.xlu0 %11710, %v13177_v29  }
 0xd74   : > { %4866 = vperm.xlu1 %11711, %v4767_v25  }
 0xd77   : > { %11713 = vset.pattern.permute.xlu0 %v13871_v52 }
 0xd78   : > { %11712 = vset.pattern.permute.xlu1 %v13871_v52 }
 0xdd1   : > { %v4718_v44 = vpop.permute.xlu0 %4717 }
 0xdd2   : > { %v4740_v43 = vmul.f32 %v4718_v44, %v12984_v37  ;;  %v4716_v32 = vpop.permute.xlu1 %4715 }
 0xdd3   : > { %v4739_v57 = vmul.f32 %v4716_v32, %v12986_v39 }
 0xdd4   : > { %v4748_v60 = vadd.f32 %v4740_v43, %v13028_v12 }
 0xdd5   : > { %v4747_v0 = vadd.f32 %v4739_v57, %v13030_v7  ;;  %v4722_v61 = vpop.permute.xlu0 %4721 }
 0xdd6   : > { %v4742_v30 = vmul.f32 %v4722_v61, %v12990_v36  ;;  %v4720_v3 = vpop.permute.xlu1 %4719 }
 0xdd7   : > { %v4741_v14 = vmul.f32 %v4720_v3, %v12992_v46  ;;  %v4769_v49 = vpack.c.bf16 %v4748_v60, %v4747_v0 }
 0xdd8   : > { %v4750_v40 = vadd.f32 %v4742_v30, %v13034_v15 }
 0xdd9   : > { %v4749_v16 = vadd.f32 %v4741_v14, %v13037_v24  ;;  %v4726_v48 = vpop.permute.xlu0 %4725  ;;  %4886 = vrot.lane.b32.xlu1 %v4769_v49, %s13820_s11  ;;  %v4774_v18 = vshrl.u32 %v4769_v49, 16 }
 0xdda   : > { %v4744_v37 = vmul.f32 %v4726_v48, %v12996_v56  ;;  %v4724_v39 = vpop.permute.xlu1 %4723 }
 0xddb   : > { %v4743_v12 = vmul.f32 %v4724_v39, %v12998_v54  ;;  %v4770_v7 = vpack.c.bf16 %v4750_v40, %v4749_v16  ;;  %v4776_v21 = vrot.slane %v4774_v18, 7  ;;  %v11723_v40 = vld [vmem:[%s12000_s19 + $0x10] sm:$0xff]  }
 0xddc   : > { %v4752_v36 = vadd.f32 %v4744_v37, %v13046_v26 }
 0xddd   : > { %v4751_v46 = vadd.f32 %v4743_v12, %v13050_v6  ;;  %v4730_v23 = vpop.permute.xlu0 %4729  ;;  %4819 = vperm.xlu1 %11712, %v4765_v62   ;;  %4888 = vrot.lane.b32.xlu0 %v4770_v7, %s13820_s11  ;;  %v4781_v15 = vshrl.u32 %v4770_v7, 16  ;;  %v4777_v6 = vshll.u32 %v4769_v49, 16  ;;  %v4784_v2 = vshll.u32 %v4770_v7, 16 }
 0xdde   : > { %v4746_v24 = vmul.f32 %v4730_v23, %v13002_v1  ;;  %v4728_v42 = vpop.permute.xlu1 %4727 }
 0xddf   : > { %v4745_v33 = vmul.f32 %v4728_v42, %v13004_v50  ;;  %v4771_v56 = vpack.c.bf16 %v4752_v36, %v4751_v46  ;;  %v4783_v63 = vrot.slane %v4781_v15, 7  ;;  %v4779_v41 = vor.u32 %v4777_v6, %v4776_v21 }
 0xde0   : > { %v4754_v54 = vadd.f32 %v4746_v24, %v13067_v5  ;;  %v4841_v35 = vrot.slane %v4777_v6, 1  ;;  %v4843_v58 = vrot.slane %v4784_v2, 1  ;;  %v11724_v6 = vld [vmem:[%s13873_s23 + $0x8] sm:$0xff]  }
 0xde1   : > { %v4753_v8 = vadd.f32 %v4745_v33, %v13072_v27  ;;  %4824 = vperm.xlu0 %11713, %v4766_v9   ;;  %4890 = vrot.lane.b32.xlu1 %v4771_v56, %s13820_s11  ;;  %v4789_v26 = vshrl.u32 %v4771_v56, 16  ;;  %v4786_v1 = vor.u32 %v4784_v2, %v4783_v63  ;;  %v4792_v5 = vshll.u32 %v4771_v56, 16  ;;  %v11725_v2 = vld [vmem:[%s13873_s23] sm:$0xff]  }
 0xde2   : > { %v4842_v9 = vor.u32 %v4841_v35, %v4774_v18  ;;  %10758 = vmatprep.subr.bf16.mxu1 %v11724_v6 }
 0xde3   : > { %v4772_v59 = vpack.c.bf16 %v4754_v54, %v4753_v8  ;;  %v4791_v10 = vrot.slane %v4789_v26, 7  ;;  %v4787_v28 = vsel %vm1050_vm2, %v4776_v21, %v4786_v1  ;;  %v4846_v4 = vrot.slane %v4792_v5, 1  ;;  %10759 = vmatpush3.bf16.msra.mxu1 %v11724_v6 }
 0xde4   : > { %v4844_v51 = vsel %vm1173_vm3, %v4842_v9, %v4843_v58  ;;  %10768 = vmatprep.subr.bf16.mxu1 %v11725_v2 }
 0xde5   : > { %4804 = vrot.lane.b32.xlu0 %v4779_v41, %s13820_s11  ;;  %4892 = vrot.lane.b32.xlu1 %v4772_v59, %s13820_s11  ;;  %v4797_v50 = vshrl.u32 %v4772_v59, 16  ;;  %v4794_v27 = vor.u32 %v4792_v5, %v4791_v10  ;;  %v4800_v22 = vshll.u32 %v4772_v59, 16  ;;  %v4848_v43 = vor.u32 %v4846_v4, %v4789_v26  ;;  %v9622_v41 = vld [vmem:[%s12050_s27 + $0x6] ss:$0 sm:$0xff] }
 0xde7   : > { %v4799_v17 = vrot.slane %v4797_v50, 7  ;;  %v4795_v19 = vsel %vm1050_vm2, %v4783_v63, %v4794_v27  ;;  %v4849_v20 = vrot.slane %v4800_v22, 1 }
 0xde9   : > { %4829 = vperm.xlu0 %11713, %v4767_v25   ;;  %4806 = vrot.lane.b32.xlu1 %v4787_v28, %s13820_s11  ;;  %v4802_v34 = vor.u32 %v4800_v22, %v4799_v17  ;;  %v4845_v25 = vor.u32 %v4843_v58, %v4781_v15  ;;  %v4851_v32 = vor.u32 %v4849_v20, %v4797_v50 }
 0xdea   : > { %v4850_v60 = vsel %vm1173_vm3, %v4848_v43, %v4849_v20 }
 0xdeb   : > { %v4803_v44 = vsel %vm1050_vm2, %v4791_v10, %v4802_v34  ;;  %v4856_v3 = vsel %vm12400_vm7, %v4851_v32, 0 }
 0xded   : > { %4808 = vrot.lane.b32.xlu0 %v4795_v19, %s13820_s11  ;;  %4834 = vperm.xlu1 %11712, %v13177_v29   ;;  %v4847_v29 = vsel %vm1173_vm3, %v4845_v25, %v4846_v4 }
 0xdee   : > { %v13210_v62 = vpop.permute.xlu0 %4862  ;;  %11714 = vset.pattern.permute.xlu0 %v13872_v45 }
 0xdef   : > { %v13214_v47 = vpop.permute.xlu1 %4858  ;;  %v4874_v57 = vmul.bf16 %v13210_v62, %v4847_v29 }
 0xdf0   : > { %v4873_v38 = vmul.bf16 %v13214_v47, %v4844_v51 }
 0xdf1   : > { %4810 = vrot.lane.b32.xlu1 %v4803_v44, %s13820_s11 }
 0xdf2   : > { %5067 = vrot.lane.b32.xlu0 %v4873_v38, %s13820_s11  ;;  %11715 = vset.pattern.permute.xlu1 %v13872_v45  ;;  %v13226_v61 = vpop.permute.xlu0 %4870 }
 0xdf3   : > { %v13224_v0 = vpop.permute.xlu1 %4866  ;;  %v4876_v14 = vmul.bf16 %v13226_v61, %v4856_v3 }
 0xdf4   : > { %v4875_v30 = vmul.bf16 %v13224_v0, %v4850_v60  ;;  %v11726_v60 = vld [vmem:[%s13873_s23 + $0x10] sm:$0xff]  }
 0xdf5   : > { %5069 = vrot.lane.b32.xlu1 %v4874_v57, %s13820_s11 }
 0xdf6   : > { %5071 = vrot.lane.b32.xlu0 %v4875_v30, %s13820_s11 }
 0xdf9   : > { %5073 = vrot.lane.b32.xlu1 %v4876_v14, %s13820_s11  ;;  %s13876_s11 = sld [smem:[#allocation7_spill]] }
 0xe4b   : > { %v4887_v49 = vpop.permute.xlu1 %4886 }
 0xe4c   : > { %10730 = vmatprep.mubr.msk.bf16.mxu0 %vm4217_vm10, %v4887_v49 }
 0xe4f   : > { %v4889_v16 = vpop.permute.xlu0 %4888 }
 0xe50   : > { %10731 = vmatmul.mubr.msk.bf16.vlgmr.msra.gmra.mrb[64].mxu0 %vm4217_vm10, %v4889_v16 }
 0xe51   : > { %10739 = vmatpush3.bf16.msra.mxu0 %v11722_v31 }
 0xe52   : > { %10748 = vmatprep.subr.bf16.mxu0 %v11723_v40 }
 0xe5c   : > { %v13238_v48 = vpop.permute.xlu1 %4819 }
 0xe60   : > { %v13240_v37 = vpop.permute.xlu0 %4824  ;;  %v4891_v39 = vpop.permute.xlu1 %4890 }
 0xe61   : > { %10734 = vmatprep.mubr.msk.bf16.mxu0 %vm4217_vm10, %v4891_v39 }
 0xe64   : > { %v4805_v12 = vpop.permute.xlu0 %4804  ;;  %v4893_v7 = vpop.permute.xlu1 %4892 }
 0xe65   : > { %v4816_v18 = vsel %vm12328_vm5, 0, %v4805_v12  ;;  %10735 = vmatmul.mubr.msk.bf16.gmra.mrb[68].mxu0 %vm4217_vm10, %v4893_v7 }
 0xe66   : > { %v4837_v36 = vmul.bf16 %v13238_v48, %v4816_v18 }
 0xe68   : > { %v13247_v46 = vpop.permute.xlu0 %4829  ;;  %10740 = vmatprep.mubr.msk.bf16.mxu0 %vm4217_vm10, %v4837_v36  ;;  %v4807_v23 = vpop.permute.xlu1 %4806 }
 0xe69   : > { %v4838_v15 = vmul.bf16 %v13240_v37, %v4807_v23 }
 0xe6c   : > { %v4809_v24 = vpop.permute.xlu0 %4808  ;;  %v13251_v42 = vpop.permute.xlu1 %4834 }
 0xe6d   : > { %v4839_v33 = vmul.bf16 %v13247_v46, %v4809_v24  ;;  %10741 = vmatmul.mubr.msk.bf16.vlgmr.msra.gmra.mrb[64].mxu0 %vm4217_vm10, %v4838_v15 }
 0xe6e   : > { %10749 = vmatpush3.bf16.msra.mxu0 %v11723_v40 }
 0xe6f   : > { %10744 = vmatprep.mubr.msk.bf16.mxu0 %vm4217_vm10, %v4839_v33 }
 0xe70   : > { %v4811_v56 = vpop.permute.xlu1 %4810  ;;  %v5068_v54 = vpop.permute.xlu0 %5067 }
 0xe71   : > { %v4840_v21 = vmul.bf16 %v13251_v42, %v4811_v56 }
 0xe74   : > { %v5070_v63 = vpop.permute.xlu1 %5069  ;;  %v5072_v8 = vpop.permute.xlu0 %5071 }
 0xe75   : > { %10745 = vmatmul.mubr.msk.bf16.gmra.mrb[68].mxu0 %vm4217_vm10, %v4840_v21 }
 0xe76   : > { %10750 = vmatprep.mubr.msk.bf16.mxu0 %vm4217_vm10, %v5068_v54 }
 0xe78   : > { %v5074_v26 = vpop.permute.xlu1 %5073 }
 0xe7d   : > { %10751 = vmatmul.mubr.msk.bf16.vlgmr.msra.gmra.mrb[64].mxu0 %vm4217_vm10, %v5070_v63 }
 0xe7e   : > { %10754 = vmatprep.mubr.msk.bf16.mxu0 %vm4217_vm10, %v5072_v8 }
 0xe85   : > { %10755 = vmatmul.mubr.msk.bf16.gmra.mrb[68].mxu0 %vm4217_vm10, %v5074_v26 }
 0xf50   : > { %v10752_v59 = vpop.f32.mrb[64].mxu0 }
 0xf51   : > { %v5172_v1 = vadd.f32 %v10752_v59, %v9622_v41  ;;  %v5127_v10 = vpop.f32.mrb[65].mxu0 }
 0xf52   : > { %v5170_v50 = vadd.f32 %v9622_v41, %v5127_v10  ;;  %v10753_v5 = vpop.f32.mrb[66].mxu0 }
 0xf53   : > { %v5188_v28 = vmul.f32 0.2, %v5172_v1  ;;  %v5173_v27 = vadd.f32 %v10753_v5, %v9622_v41  ;;  %v5130_v17 = vpop.f32.mrb[67].mxu0  ;;  %vm5180_vm11 = vcmp.ge.f32.partialorder %v5172_v1, 0.0 }
 0xf54   : > { %v5186_v35 = vmul.f32 0.2, %v5170_v50  ;;  %v5171_v31 = vadd.f32 %v9622_v41, %v5130_v17  ;;  %vm5178_vm8 = vcmp.ge.f32.partialorder %v5170_v50, 0.0 }
 0xf55   : > { %vm5181_vm14 = vcmp.ge.f32.partialorder %v5173_v27, 0.0  ;;  %v5189_v22 = vmul.f32 0.2, %v5173_v27  ;;  %v5196_v19 = vsel %vm5180_vm11, %v5172_v1, %v5188_v28 }
 0xf56   : > { %vm5179_vm12 = vcmp.ge.f32.partialorder %v5171_v31, 0.0  ;;  %v5187_v58 = vmul.f32 0.2, %v5171_v31  ;;  %v5194_v4 = vsel %vm5178_vm8, %v5170_v50, %v5186_v35 }
 0xf57   : > { %v5197_v34 = vsel %vm5181_vm14, %v5173_v27, %v5189_v22 }
 0xf58   : > { %v5204_v9 = vpack.c.bf16 %v5197_v34, %v5196_v19  ;;  %v5195_v20 = vsel %vm5179_vm12, %v5171_v31, %v5187_v58  ;;  %v10756_v51 = vpop.f32.mrb[68].mxu0 }
 0xf59   : > { %v5203_v25 = vpack.c.bf16 %v5195_v20, %v5194_v4  ;;  %v5176_v38 = vadd.f32 %v10756_v51, %v9622_v41  ;;  %v5143_v44 = vpop.f32.mrb[69].mxu0 }
 0xf5a   : > { %v5215_v43 = vshrl.u32 %v5204_v9, 16  ;;  %v5218_v29 = vshll.u32 %v5204_v9, 16  ;;  %v5174_v32 = vadd.f32 %v9622_v41, %v5143_v44  ;;  %v10757_v57 = vpop.f32.mrb[70].mxu0 }
 0xf5b   : > { %v5208_v30 = vshrl.u32 %v5203_v25, 16  ;;  %v5211_v3 = vshll.u32 %v5203_v25, 16  ;;  %v5146_v14 = vpop.f32.mrb[71].mxu0  ;;  %10760 = vmatprep.mubr.msk.bf16.mxu1 %vm4217_vm10, %v5203_v25  ;;  %vm5184_vm13 = vcmp.ge.f32.partialorder %v5176_v38, 0.0  ;;  %v5192_v40 = vmul.f32 0.2, %v5176_v38 }
 0xf5c   : > { %v5217_v49 = vrot.slane %v5215_v43, 7  ;;  %10761 = vmatmul.mubr.msk.bf16.vlgmr.msra.gmra.mrb[44].mxu1 %vm4217_vm10, %v5204_v9  ;;  %v5249_v16 = vrot.slane %v5218_v29, 1  ;;  %v5177_v12 = vadd.f32 %v10757_v57, %v9622_v41  ;;  %v5175_v7 = vadd.f32 %v9622_v41, %v5146_v14  ;;  %v11728_v14 = vld [vmem:[%s13874_s28] sm:$0xff]  }
 0xf5d   : > { %v5247_v39 = vrot.slane %v5211_v3, 1  ;;  %10769 = vmatpush3.bf16.msra.mxu1 %v11725_v2  ;;  %vm5182_vm15 = vcmp.ge.f32.partialorder %v5174_v32, 0.0  ;;  %v5190_v36 = vmul.f32 0.2, %v5174_v32  ;;  %v5210_v23 = vrot.slane %v5208_v30, 7 }
 0xf5e   : > { %v5220_v18 = vor.u32 %v5218_v29, %v5217_v49  ;;  %10778 = vmatprep.subr.bf16.mxu1 %v11726_v60  ;;  %vm5185_vm9 = vcmp.ge.f32.partialorder %v5177_v12, 0.0  ;;  %v5193_v24 = vmul.f32 0.2, %v5177_v12  ;;  %vm5183_vm11 = vcmp.ge.f32.partialorder %v5175_v7, 0.0 }
 0xf5f   : > { %v5248_v15 = vor.u32 %v5247_v39, %v5208_v30  ;;  %v5191_v33 = vmul.f32 0.2, %v5175_v7  ;;  %v5213_v56 = vor.u32 %v5211_v3, %v5210_v23  ;;  %v5200_v54 = vsel %vm5184_vm13, %v5176_v38, %v5192_v40  ;;  %v11727_v3 = vld [vmem:[%s13874_s28 + $0x8] sm:$0xff]   ;;  %v9642_v40 = vld [vmem:[%s12050_s27 + $0x7] ss:$0 sm:$0xff] }
 0xf60   : > { %v5221_v21 = vsel %vm1050_vm2, %v5210_v23, %v5220_v18  ;;  %v5201_v63 = vsel %vm5185_vm9, %v5177_v12, %v5193_v24  ;;  %v5198_v26 = vsel %vm5182_vm15, %v5174_v32, %v5190_v36  ;;  %v5251_v17 = vor.u32 %v5249_v16, %v5215_v43  ;;  %10788 = vmatprep.subr.bf16.mxu0 %v11727_v3 }
 0xf61   : > { %v5250_v8 = vsel %vm1173_vm3, %v5248_v15, %v5249_v16  ;;  %v5206_v6 = vpack.c.bf16 %v5201_v63, %v5200_v54  ;;  %v5199_v2 = vsel %vm5183_vm11, %v5175_v7, %v5191_v33  ;;  %v5242_v41 = vsel %vm12328_vm5, 0, %v5213_v56  ;;  %10789 = vmatpush3.bf16.msra.mxu0 %v11727_v3  ;;  %v11729_v63 = vld [vmem:[%s13874_s28 + $0x10] sm:$0xff]  }
 0xf62   : > { %v5205_v59 = vpack.c.bf16 %v5199_v2, %v5198_v26  ;;  %v5243_v1 = vmul.bf16 %v5242_v41, %v13238_v48  ;;  %v5244_v25 = vmul.bf16 %v5221_v21, %v13240_v37  ;;  %v5263_v43 = vmul.bf16 %v5250_v8, %v13214_v47  ;;  %10798 = vmatprep.subr.bf16.mxu0 %v11728_v14 }
 0xf63   : > { %v5231_v10 = vshrl.u32 %v5206_v6, 16  ;;  %v5234_v50 = vshll.u32 %v5206_v6, 16 }
 0xf64   : > { %v5223_v5 = vshrl.u32 %v5205_v59, 16  ;;  %v5226_v28 = vshll.u32 %v5205_v59, 16  ;;  %10764 = vmatprep.mubr.msk.bf16.mxu1 %vm4217_vm10, %v5205_v59 }
 0xf65   : > { %v5233_v27 = vrot.slane %v5231_v10, 7  ;;  %10765 = vmatmul.mubr.msk.bf16.gmra.mrb[48].mxu1 %vm4217_vm10, %v5206_v6  ;;  %v5255_v58 = vrot.slane %v5234_v50, 1 }
 0xf66   : > { %v5225_v35 = vrot.slane %v5223_v5, 7  ;;  %v5252_v31 = vrot.slane %v5226_v28, 1  ;;  %10770 = vmatprep.mubr.msk.bf16.mxu1 %vm4217_vm10, %v5243_v1 }
 0xf67   : > { %v5236_v22 = vor.u32 %v5234_v50, %v5233_v27  ;;  %v5257_v57 = vor.u32 %v5255_v58, %v5231_v10 }
 0xf68   : > { %v5228_v19 = vor.u32 %v5226_v28, %v5225_v35  ;;  %v5253_v34 = vsel %vm1173_vm3, %v5251_v17, %v5252_v31  ;;  %v5254_v4 = vor.u32 %v5252_v31, %v5223_v5 }
 0xf69   : > { %v5237_v9 = vsel %vm1050_vm2, %v5225_v35, %v5236_v22  ;;  %v5264_v29 = vmul.bf16 %v5253_v34, %v13210_v62 }
 0xf6a   : > { %v5229_v20 = vsel %vm1050_vm2, %v5217_v49, %v5228_v19  ;;  %v5256_v51 = vsel %vm1173_vm3, %v5254_v4, %v5255_v58  ;;  %v5246_v44 = vmul.bf16 %v5237_v9, %v13251_v42  ;;  %v9569_v49 = vld [vmem:[%s12050_s27 + $0x5] ss:$0 sm:$0xff] }
 0xf6b   : > { %v5245_v38 = vmul.bf16 %v5229_v20, %v13247_v46  ;;  %v5265_v32 = vmul.bf16 %v5256_v51, %v13224_v0  ;;  %v11358_v16 = vadd.f32 %v9642_v40, %v9569_v49 }
 0xf6d   : > { %10771 = vmatmul.mubr.msk.bf16.vlgmr.msra.gmra.mrb[44].mxu1 %vm4217_vm10, %v5244_v25 }
 0xf6e   : > { %10774 = vmatprep.mubr.msk.bf16.mxu1 %vm4217_vm10, %v5245_v38  ;;  %10779 = vmatpush3.bf16.msra.mxu1 %v11726_v60  ;;  %v5262_v60 = vsel %vm12400_vm7, %v5257_v57, 0 }
 0xf6f   : > { %v5266_v30 = vmul.bf16 %v5262_v60, %v13226_v61 }
 0xf75   : > { %10775 = vmatmul.mubr.msk.bf16.gmra.mrb[48].mxu1 %vm4217_vm10, %v5246_v44 }
 0xf76   : > { %10780 = vmatprep.mubr.msk.bf16.mxu1 %vm4217_vm10, %v5263_v43 }
 0xf7d   : > { %10781 = vmatmul.mubr.msk.bf16.vlgmr.msra.gmra.mrb[44].mxu1 %vm4217_vm10, %v5264_v29 }
 0xf7e   : > { %10784 = vmatprep.mubr.msk.bf16.mxu1 %vm4217_vm10, %v5265_v32 }
 0xf85   : > { %10785 = vmatmul.mubr.msk.bf16.gmra.mrb[48].mxu1 %vm4217_vm10, %v5266_v30 }
0x1050   : > { %v10782_v39 = vpop.f32.mrb[44].mxu1 }
0x1051   : > { %v5489_v12 = vpop.f32.mrb[45].mxu1  ;;  %v11357_v18 = vadd.f32 %v11358_v16, %v10782_v39 }
0x1052   : > { %v10783_v7 = vpop.f32.mrb[46].mxu1  ;;  %v11359_v15 = vadd.f32 %v11358_v16, %v5489_v12 }
0x1053   : > { %v11361_v36 = vadd.f32 %v11358_v16, %v10783_v7  ;;  %v5492_v23 = vpop.f32.mrb[47].mxu1 }
0x1054   : > { %v11363_v24 = vadd.f32 %v11358_v16, %v5492_v23 }
0x1055   : > { %v5550_v33 = vpack.c.bf16 %v11361_v36, %v11357_v18 }
0x1056   : > { %v5549_v56 = vpack.c.bf16 %v11363_v24, %v11359_v15 }
0x1057   : > { %v5561_v21 = vshrl.u32 %v5550_v33, 16  ;;  %v5564_v54 = vshll.u32 %v5550_v33, 16 }
0x1058   : > { %v5554_v8 = vshrl.u32 %v5549_v56, 16  ;;  %v5557_v26 = vshll.u32 %v5549_v56, 16  ;;  %v10786_v6 = vpop.f32.mrb[48].mxu1  ;;  %10790 = vmatprep.mubr.msk.bf16.mxu0 %vm4217_vm10, %v5549_v56 }
0x1059   : > { %v5563_v2 = vrot.slane %v5561_v21, 7  ;;  %v5505_v41 = vpop.f32.mrb[49].mxu1  ;;  %10791 = vmatmul.mubr.msk.bf16.vlgmr.msra.gmra.mrb[72].mxu0 %vm4217_vm10, %v5550_v33  ;;  %v5595_v5 = vrot.slane %v5564_v54, 1  ;;  %v11365_v28 = vadd.f32 %v11358_v16, %v10786_v6 }
0x105a   : > { %v5556_v59 = vrot.slane %v5554_v8, 7  ;;  %v5593_v1 = vrot.slane %v5557_v26, 1  ;;  %v10787_v10 = vpop.f32.mrb[50].mxu1  ;;  %10799 = vmatpush3.bf16.msra.mxu0 %v11728_v14  ;;  %v11367_v22 = vadd.f32 %v11358_v16, %v5505_v41 }
0x105b   : > { %v5566_v50 = vor.u32 %v5564_v54, %v5563_v2  ;;  %v11369_v27 = vadd.f32 %v11358_v16, %v10787_v10  ;;  %v5508_v17 = vpop.f32.mrb[51].mxu1  ;;  %10808 = vmatprep.subr.bf16.mxu0 %v11729_v63  ;;  %v5597_v32 = vor.u32 %v5595_v5, %v5561_v21 }
0x105c   : > { %v5559_v35 = vor.u32 %v5557_v26, %v5556_v59  ;;  %v5594_v31 = vor.u32 %v5593_v1, %v5554_v8  ;;  %v11371_v58 = vadd.f32 %v11358_v16, %v5508_v17 }
0x105d   : > { %v5567_v19 = vsel %vm1050_vm2, %v5556_v59, %v5566_v50  ;;  %v5552_v34 = vpack.c.bf16 %v11369_v27, %v11365_v28 }
0x105e   : > { %v5551_v4 = vpack.c.bf16 %v11371_v58, %v11367_v22  ;;  %v5588_v9 = vsel %vm12328_vm5, 0, %v5559_v35  ;;  %v5596_v20 = vsel %vm1173_vm3, %v5594_v31, %v5595_v5  ;;  %v5590_v12 = vmul.bf16 %v5567_v19, %v13240_v37 }
0x105f   : > { %v5577_v51 = vshrl.u32 %v5552_v34, 16  ;;  %v5589_v25 = vmul.bf16 %v5588_v9, %v13238_v48  ;;  %v5580_v38 = vshll.u32 %v5552_v34, 16  ;;  %v5609_v36 = vmul.bf16 %v5596_v20, %v13214_v47  ;;  %v5910_v47 = vld [vmem:[%s13875_s1] sm:$0xff] }
0x1060   : > { %v5569_v44 = vshrl.u32 %v5551_v4, 16  ;;  %v5572_v43 = vshll.u32 %v5551_v4, 16  ;;  %10794 = vmatprep.mubr.msk.bf16.mxu0 %vm4217_vm10, %v5551_v4  ;;  %10834 = vmatprep.mubr.msk.f32.mxu1 %vm3735_vm4, %v5910_v47 }
0x1061   : > { %v5579_v29 = vrot.slane %v5577_v51, 7  ;;  %10795 = vmatmul.mubr.msk.bf16.gmra.mrb[76].mxu0 %vm4217_vm10, %v5552_v34  ;;  %v5601_v3 = vrot.slane %v5580_v38, 1 }
0x1062   : > { %v5571_v57 = vrot.slane %v5569_v44, 7  ;;  %v5598_v60 = vrot.slane %v5572_v43, 1  ;;  %10800 = vmatprep.mubr.msk.bf16.mxu0 %vm4217_vm10, %v5589_v25 }
0x1063   : > { %v5582_v30 = vor.u32 %v5580_v38, %v5579_v29 }
0x1064   : > { %v5574_v14 = vor.u32 %v5572_v43, %v5571_v57  ;;  %v5599_v49 = vsel %vm1173_vm3, %v5597_v32, %v5598_v60  ;;  %v5600_v40 = vor.u32 %v5598_v60, %v5569_v44  ;;  %v5911_v32 = vld [vmem:[%s13875_s1 + $0x8] sm:$0xff]  ;;  %v5913_v60 = vld [vmem:[%s13875_s1 + $0x18] sm:$0xff] }
0x1065   : > { %v5583_v48 = vsel %vm1050_vm2, %v5571_v57, %v5582_v30  ;;  %v5610_v37 = vmul.bf16 %v5599_v49, %v13210_v62  ;;  %v9662_v62 = vld [vmem:[%s12050_s27 + $0x8] ss:$0 sm:$0xff]  ;;  %v5912_v57 = vld [vmem:[%s13875_s1 + $0x10] sm:$0xff]  ;;  %s9427_s1 = sshll.u32 %s12123_s0, 2 }
0x1066   : > { %v5575_v16 = vsel %vm1050_vm2, %v5563_v2, %v5574_v14  ;;  %v5602_v39 = vsel %vm1173_vm3, %v5600_v40, %v5601_v3  ;;  %v5592_v18 = vmul.bf16 %v5583_v48, %v13251_v42  ;;  %p988_p12 = scmp.lt.s32.totalorder %s9427_s1, 7 }
0x1067   : > { %v5591_v7 = vmul.bf16 %v5575_v16, %v13247_v46  ;;  %v5603_v46 = vor.u32 %v5601_v3, %v5577_v51  ;;  %v5611_v23 = vmul.bf16 %v5602_v39, %v13224_v0  ;;  %v13349_v16 = vld [vmem:[%s13859_s6 + $0x2] sm:$0x3] }
0x1068   : > { %v13354_v39 = vld [vmem:[%s12080_s13 + $0x40] sm:$0xff]  ;;  %s13897_s1 = smov (!%p988_p12, %s9427_s1), 7 }
0x1069   : > { %10801 = vmatmul.mubr.msk.bf16.vlgmr.msra.gmra.mrb[72].mxu0 %vm4217_vm10, %v5590_v12  ;;  %v5608_v15 = vsel %vm12400_vm7, %v5603_v46, 0  ;;  %s9428_s3 = sshll.u32 %s13897_s1, 3 }
0x106a   : > { %10804 = vmatprep.mubr.msk.bf16.mxu0 %vm4217_vm10, %v5591_v7  ;;  %10809 = vmatpush3.bf16.msra.mxu0 %v11729_v63  ;;  %v5612_v42 = vmul.bf16 %v5608_v15, %v13226_v61  ;;  %v13359_v7 = vld [vmem:[%s12080_s13 + $0x48] sm:$0xff]  ;;  %s991_s5 = scalar_lea.vmem %s13876_s11, %s9428_s3  ;;  %s9429_s3 = sshll.u32 %s12123_s0, 1 }
0x106b   : > { %11275 = vmatprep.subr.bf16.mxu0 %v11934_v11  ;;  %p994_p13 = scmp.lt.s32.totalorder %s9429_s3, 3  ;;  %s13880_s11 = sld [smem:[#allocation8_spill]] }
0x106d   : > { %s13899_s3 = smov (!%p994_p13, %s9429_s3), 3 }
0x106e   : > { %s9874_s1 = sshll.u32 %s13899_s3, 4  ;;  %s13881_s3 = sld [smem:[#allocation15_spill]] }
0x1071   : > { %10805 = vmatmul.mubr.msk.bf16.gmra.mrb[76].mxu0 %vm4217_vm10, %v5592_v18  ;;  %v13363_v18 = vld [vmem:[%s12080_s13 + $0x50] sm:$0xff] }
0x1072   : > { %10810 = vmatprep.mubr.msk.bf16.mxu0 %vm4217_vm10, %v5609_v36 }
0x1079   : > { %10811 = vmatmul.mubr.msk.bf16.vlgmr.msra.gmra.mrb[72].mxu0 %vm4217_vm10, %v5610_v37  ;;  %v13372_v37 = vld [vmem:[%s12080_s13 + $0x58] sm:$0xff] }
0x107a   : > { %10814 = vmatprep.mubr.msk.bf16.mxu0 %vm4217_vm10, %v5611_v23 }
0x1081   : > { %10815 = vmatmul.mubr.msk.bf16.gmra.mrb[76].mxu0 %vm4217_vm10, %v5612_v42 }
0x1082   : > { %10894 = vmatprep.mubr.msk.f32.mxu0 %vm11935_vm1, %v11936_v53 }
0x114c   : > { %v10812_v24 = vpop.f32.mrb[72].mxu0 }
0x114d   : > { %v5880_v0 = vadd.f32 %v10812_v24, %v9662_v62  ;;  %v5835_v33 = vpop.f32.mrb[73].mxu0 }
0x114e   : > { %v5878_v56 = vadd.f32 %v9662_v62, %v5835_v33  ;;  %v10813_v21 = vpop.f32.mrb[74].mxu0 }
0x114f   : > { %v5896_v54 = vmul.f32 0.2, %v5880_v0  ;;  %v5881_v63 = vadd.f32 %v10813_v21, %v9662_v62  ;;  %v5838_v8 = vpop.f32.mrb[75].mxu0  ;;  %vm5888_vm8 = vcmp.ge.f32.partialorder %v5880_v0, 0.0 }
0x1150   : > { %v5894_v26 = vmul.f32 0.2, %v5878_v56  ;;  %v5879_v61 = vadd.f32 %v9662_v62, %v5838_v8  ;;  %vm5886_vm14 = vcmp.ge.f32.partialorder %v5878_v56, 0.0 }
0x1151   : > { %vm5889_vm12 = vcmp.ge.f32.partialorder %v5881_v63, 0.0  ;;  %v5897_v6 = vmul.f32 0.2, %v5881_v63  ;;  %v5904_v41 = vsel %vm5888_vm8, %v5880_v0, %v5896_v54 }
0x1152   : > { %vm5887_vm13 = vcmp.ge.f32.partialorder %v5879_v61, 0.0  ;;  %v5895_v2 = vmul.f32 0.2, %v5879_v61  ;;  %v5902_v10 = vsel %vm5886_vm14, %v5878_v56, %v5894_v26  ;;  %vm6022_vm14 = vcmask 261120   ;;  %v13385_v26 = vld [vmem:[%s991_s5 + $0x8] sm:$0xff] }
0x1153   : > { %v5905_v59 = vsel %vm5889_vm12, %v5881_v63, %v5897_v6  ;;  %6380 = vrot.lane.b32.xlu1 %v13385_v26, %s13878_s9  ;;  %v13393_v6 = vld [vmem:[%s991_s5 + $0x18] sm:$0xff] }
0x1154   : > { %v10816_v1 = vpop.f32.mrb[76].mxu0  ;;  %v5903_v50 = vsel %vm5887_vm13, %v5879_v61, %v5895_v2  ;;  %v11251_v5 = vpack.c.bf16 %v5905_v59, %v5904_v41  ;;  %v13387_v61 = vld [vmem:[%s991_s5] sm:$0xff]  ;;  %v13395_v2 = vld [vmem:[%s991_s5 + $0x10] sm:$0xff]  ;;  %s13826_s5 = smov 64  }
0x1155   : > { %v5884_v28 = vadd.f32 %v10816_v1, %v9662_v62  ;;  %v5851_v27 = vpop.f32.mrb[77].mxu0  ;;  %v11247_v17 = vpack.c.bf16 %v5903_v50, %v5902_v10  ;;  %6378 = vrot.lane.b32.xlu0 %v13387_v61, %s13878_s9  ;;  %v11730_v1 = vld [vmem:[%s13877_s8] sm:$0xff]   ;;  %v11731_v10 = vld [vmem:[%s13877_s8 + $0x8] sm:$0xff]   ;;  %s13496_s8 = scalar_lea.vmem %s13880_s11, %s9874_s1  ;;  %s13882_s11 = sld [smem:[#allocation16_spill]] }
0x1156   : > { %v5882_v35 = vadd.f32 %v9662_v62, %v5851_v27  ;;  %v10817_v31 = vpop.f32.mrb[78].mxu0  ;;  %s13883_s1 = sld [smem:[#allocation22_spill]] }
0x1157   : > { %v5900_v22 = vmul.f32 0.2, %v5884_v28  ;;  %v5885_v58 = vadd.f32 %v10817_v31, %v9662_v62  ;;  %v5854_v19 = vpop.f32.mrb[79].mxu0  ;;  %11248 = vmatprep.subr.bf16.mxu1 %v11247_v17  ;;  %vm5892_vm15 = vcmp.ge.f32.partialorder %v5884_v28, 0.0  ;;  %6384 = vrot.lane.b32.xlu1 %v13393_v6, %s13878_s9 }
0x1158   : > { %v5898_v34 = vmul.f32 0.2, %v5882_v35  ;;  %v5883_v4 = vadd.f32 %v9662_v62, %v5854_v19  ;;  %11250 = vmatpush3.bf16.msra.mxu1 %v11247_v17  ;;  %vm5890_vm9 = vcmp.ge.f32.partialorder %v5882_v35, 0.0 }
0x1159   : > { %vm5893_vm11 = vcmp.ge.f32.partialorder %v5885_v58, 0.0  ;;  %v5901_v9 = vmul.f32 0.2, %v5885_v58  ;;  %11252 = vmatprep.subr.bf16.mxu1 %v11251_v5  ;;  %v5908_v51 = vsel %vm5892_vm15, %v5884_v28, %v5900_v22  ;;  %6382 = vrot.lane.b32.xlu0 %v13395_v2, %s13878_s9  ;;  %s13879_s9 = sld [smem:[#allocation14_spill]] }
0x115a   : > { %vm5891_vm8 = vcmp.ge.f32.partialorder %v5883_v4, 0.0  ;;  %v5899_v20 = vmul.f32 0.2, %v5883_v4  ;;  %v5906_v38 = vsel %vm5890_vm9, %v5882_v35, %v5898_v34 }
0x115b   : > { %v5909_v25 = vsel %vm5893_vm11, %v5885_v58, %v5901_v9 }
0x115c   : > { %11254 = vmatpush3.bf16.msra.mxu1 %v11251_v5  ;;  %v5907_v44 = vsel %vm5891_vm8, %v5883_v4, %v5899_v20  ;;  %v11259_v43 = vpack.c.bf16 %v5909_v25, %v5908_v51 }
0x115d   : > { %v11255_v29 = vpack.c.bf16 %v5907_v44, %v5906_v38 }
0x115f   : > { %11256 = vmatprep.subr.bf16.mxu1 %v11255_v29 }
0x1160   : > { %11258 = vmatpush3.bf16.msra.mxu1 %v11255_v29 }
0x1161   : > { %11260 = vmatprep.subr.bf16.mxu1 %v11259_v43 }
0x1164   : > { %11262 = vmatpush3.bf16.msra.mxu1 %v11259_v43 }
0x1165   : > { %11263 = vmatprep.subr.bf16.mxu1 %v11934_v11 }
0x1167   : > { %10835 = vmatmul.mubr.msk.f32.vlgmr.msra.gmra.mrb[66].mxu1 %vm3735_vm4, %v5911_v32 }
0x1168   : > { %10837 = vmatprep.mubr.msk.f32.mxu1 %vm3735_vm4, %v5912_v57 }
0x116b   : > { %10838 = vmatmul.mubr.msk.f32.gmra.mrb[68].mxu1 %vm3735_vm4, %v5913_v60 }
0x116c   : > { %10848 = vmatprep.mubr.msk.f32.mxu1 %vm11935_vm1, %v11936_v53 }
0x11c5   : > { %v13412_v19 = vpop.permute.xlu1 %6380 }
0x11c7   : > { %v13414_v9 = vpop.permute.xlu0 %6378 }
0x11c9   : > { %v13420_v57 = vpop.permute.xlu1 %6384 }
0x123a   : > { %v10836_v30 = vpop.f32.mrb[66].mxu1 }
0x123b   : > { %v5992_v3 = vpop.f32.mrb[67].mxu1 }
0x123c   : > { %v11264_v14 = vpack.c.bf16 %v10836_v30, %v5992_v3 }
0x123e   : > { %v10839_v49 = vpop.f32.mrb[68].mxu1  ;;  %11265 = vmatpush3.bf16.msra.mxu1 %v11264_v14  ;;  %v13423_v14 = vpop.permute.xlu0 %6382 }
0x123f   : > { %v6002_v40 = vpop.f32.mrb[69].mxu1  ;;  %11266 = vmatprep.subr.bf16.mxu1 %v11934_v11 }
0x1240   : > { %v11267_v48 = vpack.c.bf16 %v10839_v49, %v6002_v40 }
0x1242   : > { %11268 = vmatpush3.bf16.msra.mxu1 %v11267_v48 }
0x1245   : > { %10849 = vmatmul.mubr.msk.f32.vlgmr.msra.gmra.mrb[70].mxu1 %vm6022_vm14, %v13349_v16 }
0x1246   : > { %10853 = vmatprep.mubr.msk.f32.mxu1 %vm3809_vm6, %v13354_v39 }
0x1318   : > { %v6092_v12 = vpop.f32.mrb[70].mxu1 }
0x1319   : > { %10851 = vmatprep.subr.msk.mxu1 %vm1268_vm0, %v6092_v12  ;;  %v10850_v36 = vpop.f32.mrb[71].mxu1 }
0x131a   : > { %10852 = vmatpush3.msk.msra.mxu1 %vm1268_vm0, %v6092_v12 }
0x131b   : > { %10854 = vmatmul.mubr.msk.f32.vlgmr.msra.gmra.mrb[72].mxu1 %vm3809_vm6, %v13359_v7  ;;  %11269 = vmatprep.subr.bf16.mxu1 %v11934_v11 }
0x131c   : > { %10856 = vmatprep.mubr.msk.f32.mxu1 %vm3809_vm6, %v13363_v18 }
0x131f   : > { %10857 = vmatmul.mubr.msk.f32.gmra.mrb[74].mxu1 %vm3809_vm6, %v13372_v37 }
0x1320   : > { %10867 = vmatprep.mubr.msk.f32.mxu1 %vm11935_vm1, %v11936_v53 }
0x13ee   : > { %v10855_v46 = vpop.f32.mrb[72].mxu1 }
0x13ef   : > { %v6197_v23 = vsub.f32 %v10836_v30, %v10855_v46  ;;  %v6177_v15 = vpop.f32.mrb[73].mxu1 }
0x13f0   : > { %v6196_v42 = vsub.f32 %v5992_v3, %v6177_v15 }
0x13f1   : > { %v6201_v47 = vmul.f32 %v6197_v23, %v6197_v23 }
0x13f2   : > { %v6200_v62 = vmul.f32 %v6196_v42, %v6196_v42  ;;  %v10858_v24 = vpop.f32.mrb[74].mxu1 }
0x13f3   : > { %v6199_v0 = vsub.f32 %v10839_v49, %v10858_v24  ;;  %v6187_v33 = vpop.f32.mrb[75].mxu1 }
0x13f4   : > { %v11270_v56 = vpack.c.bf16 %v6201_v47, %v6200_v62  ;;  %v6198_v21 = vsub.f32 %v6002_v40, %v6187_v33 }
0x13f5   : > { %v6203_v54 = vmul.f32 %v6199_v0, %v6199_v0 }
0x13f6   : > { %v6202_v63 = vmul.f32 %v6198_v21, %v6198_v21  ;;  %11271 = vmatpush3.bf16.msra.mxu1 %v11270_v56 }
0x13f7   : > { %11272 = vmatprep.subr.bf16.mxu1 %v11934_v11 }
0x13f8   : > { %v11273_v8 = vpack.c.bf16 %v6203_v54, %v6202_v63 }
0x13fa   : > { %11274 = vmatpush3.bf16.msra.mxu1 %v11273_v8 }
0x13fd   : > { %10868 = vmatmul.mubr.msk.f32.vlgmr.msra.gmra.mrb[76].mxu1 %vm6022_vm14, %v13349_v16 }
0x13fe   : > { %10872 = vmatprep.mubr.msk.f32.mxu1 %vm3809_vm6, %v13354_v39 }
0x14d0   : > { %v6270_v41 = vpop.f32.mrb[76].mxu1 }
0x14d1   : > { %10870 = vmatprep.subr.msk.mxu1 %vm1268_vm0, %v6270_v41  ;;  %v10869_v59 = vpop.f32.mrb[77].mxu1 }
0x14d2   : > { %10871 = vmatpush3.msk.msra.mxu1 %vm1268_vm0, %v6270_v41 }
0x14d3   : > { %10873 = vmatmul.mubr.msk.f32.vlgmr.msra.gmra.mrb[78].mxu1 %vm3809_vm6, %v13359_v7  ;;  %10878 = vmatprep.subr.bf16.mxu1 %v11730_v1 }
0x14d4   : > { %10875 = vmatprep.mubr.msk.f32.mxu1 %vm3809_vm6, %v13363_v18  ;;  %10879 = vmatpush3.bf16.msra.mxu1 %v11730_v1 }
0x14d5   : > { %10880 = vmatprep.subr.bf16.mxu1 %v11731_v10 }
0x14d7   : > { %10876 = vmatmul.mubr.msk.f32.gmra.mrb[80].mxu1 %vm3809_vm6, %v13372_v37 }
0x14d8   : > { %10881 = vmatpush3.bf16.msra.mxu1 %v11731_v10 }
0x14d9   : > { %11281 = vmatprep.subr.bf16.mxu1 %v11934_v11 }
0x15a6   : > { %v10874_v50 = vpop.f32.mrb[78].mxu1 }
0x15a7   : > { %v6349_v5 = vadd.f32 1e-05, %v10874_v50  ;;  %v6343_v28 = vpop.f32.mrb[79].mxu1 }
0x15a8   : > { %v6344_v27 = vadd.f32 1e-05, %v6343_v28 }
0x15a9   : > { %11814 = vrsqrt.f32 %v6349_v5 }
0x15aa   : > { %11816 = vrsqrt.f32 %v6344_v27  ;;  %v10877_v17 = vpop.f32.mrb[80].mxu1 }
0x15ab   : > { %v6359_v35 = vadd.f32 1e-05, %v10877_v17  ;;  %v6353_v31 = vpop.f32.mrb[81].mxu1 }
0x15ac   : > { %v6354_v22 = vadd.f32 1e-05, %v6353_v31 }
0x15ad   : > { %11818 = vrsqrt.f32 %v6359_v35 }
0x15ae   : > { %11820 = vrsqrt.f32 %v6354_v22 }
0x15b3   : > { %v11815_v58 = vpop.eup %11814 }
0x15b4   : > { %v11817_v34 = vpop.eup %11816  ;;  %v6367_v4 = vmul.f32 %v11815_v58, %v6197_v23 }
0x15b5   : > { %v6366_v20 = vmul.f32 %v11817_v34, %v6196_v42 }
0x15b6   : > { %v6371_v51 = vmul.f32 %v6367_v4, %v13385_v26 }
0x15b7   : > { %v11819_v25 = vpop.eup %11818  ;;  %v6370_v38 = vmul.f32 %v6366_v20, %v13387_v61 }
0x15b8   : > { %v11821_v44 = vpop.eup %11820  ;;  %v6391_v43 = vadd.f32 %v13412_v19, %v6371_v51  ;;  %v6369_v29 = vmul.f32 %v11819_v25, %v6199_v0 }
0x15b9   : > { %v6390_v32 = vadd.f32 %v13414_v9, %v6370_v38  ;;  %v6368_v60 = vmul.f32 %v11821_v44, %v6198_v21 }
0x15ba   : > { %vm6473_vm12 = vcmp.ge.f32.partialorder %v6391_v43, 0.0  ;;  %v6477_v30 = vmul.f32 0.2, %v6391_v43  ;;  %v6373_v3 = vmul.f32 %v6369_v29, %v13393_v6  ;;  %v9703_v29 = vld [vmem:[%s13860_s4 + $0x110] sm:$0xff] }
0x15bb   : > { %vm6472_vm13 = vcmp.ge.f32.partialorder %v6390_v32, 0.0  ;;  %v6476_v49 = vmul.f32 0.2, %v6390_v32  ;;  %v6372_v40 = vmul.f32 %v6368_v60, %v13395_v2  ;;  %v6395_v48 = vpack.c.bf16 %v6391_v43, %v6390_v32 }
0x15bc   : > { %v6393_v12 = vadd.f32 %v13420_v57, %v6373_v3  ;;  %v6481_v36 = vsel %vm6473_vm12, %v6391_v43, %v6477_v30  ;;  %v9701_v3 = vld [vmem:[%s13860_s4 + $0x100] sm:$0xff] }
0x15bd   : > { %v6392_v46 = vadd.f32 %v13423_v14, %v6372_v40  ;;  %10882 = vmatprep.mubr.msk.bf16.mxu1 %vm6022_vm14, %v6395_v48  ;;  %v6480_v23 = vsel %vm6472_vm13, %v6390_v32, %v6476_v49  ;;  %v9704_v32 = vld [vmem:[%s13860_s4 + $0x118] sm:$0xff]  ;;  %v9702_v49 = vld [vmem:[%s13860_s4 + $0x108] sm:$0xff] }
0x15be   : > { %vm6475_vm15 = vcmp.ge.f32.partialorder %v6393_v12, 0.0  ;;  %v6479_v15 = vmul.f32 0.2, %v6393_v12  ;;  %v11276_v42 = vpack.c.bf16 %v6481_v36, %v6480_v23  ;;  %v6847_v48 = vpack.c.bf16 %v9704_v32, %v9703_v29  ;;  %v11737_v32 = vld [vmem:[%s13879_s9 + $0x28] sm:$0xff]  }
0x15bf   : > { %v6396_v47 = vpack.c.bf16 %v6393_v12, %v6392_v46  ;;  %vm6474_vm9 = vcmp.ge.f32.partialorder %v6392_v46, 0.0  ;;  %v6478_v62 = vmul.f32 0.2, %v6392_v46 }
0x15c0   : > { %11277 = vmatpush3.bf16.msra.mxu0 %v11276_v42  ;;  %v6483_v24 = vsel %vm6475_vm15, %v6393_v12, %v6479_v15  ;;  %v6846_v12 = vpack.c.bf16 %v9702_v49, %v9701_v3  ;;  %v11738_v3 = vld [vmem:[%s13881_s3 + $0x10] sm:$0xff]   ;;  %v11739_v49 = vld [vmem:[%s13881_s3 + $0x18] sm:$0xff]  }
0x15c1   : > { %10883 = vmatmul.mubr.msk.bf16.vlgmr.msra.gmra.mrb[84].mxu1 %vm6022_vm14, %v6396_v47  ;;  %11278 = vmatprep.subr.bf16.mxu0 %v11934_v11  ;;  %v6482_v0 = vsel %vm6474_vm9, %v6392_v46, %v6478_v62  ;;  %v11733_v46 = vld [vmem:[%s13879_s9 + $0x18] sm:$0xff]  }
0x15c2   : > { %v11279_v33 = vpack.c.bf16 %v6483_v24, %v6482_v0  ;;  %10913 = vmatprep.mubr.msk.f32.mxu1 %vm11935_vm1, %v11936_v53 }
0x15c4   : > { %11280 = vmatpush3.bf16.msra.mxu0 %v11279_v33 }
0x15c7   : > { %10895 = vmatmul.mubr.msk.f32.vlgmr.msra.gmra.mrb[62].mxu0 %vm6022_vm14, %v13349_v16 }
0x15c8   : > { %10899 = vmatprep.mubr.msk.f32.mxu0 %vm3809_vm6, %v13354_v39 }
0x169a   : > { %v6550_v56 = vpop.f32.mrb[62].mxu0 }
0x169b   : > { %10897 = vmatprep.subr.msk.mxu0 %vm1268_vm0, %v6550_v56  ;;  %v10896_v21 = vpop.f32.mrb[63].mxu0 }
0x169c   : > { %10898 = vmatpush3.msk.msra.mxu0 %vm1268_vm0, %v6550_v56 }
0x169d   : > { %10900 = vmatmul.mubr.msk.f32.vlgmr.msra.gmra.mrb[80].mxu0 %vm3809_vm6, %v13359_v7 }
0x169e   : > { %10902 = vmatprep.mubr.msk.f32.mxu0 %vm3809_vm6, %v13363_v18 }
0x16a1   : > { %10903 = vmatmul.mubr.msk.f32.gmra.mrb[82].mxu0 %vm3809_vm6, %v13372_v37 }
0x1770   : > { %v10901_v54 = vpop.f32.mrb[80].mxu0 }
0x1771   : > { %v6643_v63 = vsub.f32 %v6481_v36, %v10901_v54  ;;  %v6623_v8 = vpop.f32.mrb[81].mxu0  ;;  %v11732_v36 = vld [vmem:[%s13879_s9 + $0x10] sm:$0xff]  }
0x1772   : > { %v6642_v41 = vsub.f32 %v6480_v23, %v6623_v8  ;;  %10924 = vmatprep.subr.bf16.mxu0 %v11732_v36 }
0x1773   : > { %v6647_v59 = vmul.f32 %v6643_v63, %v6643_v63  ;;  %10925 = vmatpush3.bf16.msra.mxu0 %v11732_v36 }
0x1774   : > { %v6646_v1 = vmul.f32 %v6642_v41, %v6642_v41  ;;  %v10904_v10 = vpop.f32.mrb[82].mxu0  ;;  %10926 = vmatprep.subr.bf16.mxu0 %v11733_v46 }
0x1775   : > { %v6645_v50 = vsub.f32 %v6483_v24, %v10904_v10  ;;  %v6633_v5 = vpop.f32.mrb[83].mxu0 }
0x1776   : > { %v11282_v28 = vpack.c.bf16 %v6647_v59, %v6646_v1  ;;  %v6644_v27 = vsub.f32 %v6482_v0, %v6633_v5 }
0x1777   : > { %v6649_v17 = vmul.f32 %v6645_v50, %v6645_v50  ;;  %10927 = vmatpush3.bf16.msra.mxu0 %v11733_v46 }
0x1778   : > { %v6648_v35 = vmul.f32 %v6644_v27, %v6644_v27  ;;  %11283 = vmatpush3.bf16.msra.mxu1 %v11282_v28 }
0x1779   : > { %11284 = vmatprep.subr.bf16.mxu1 %v11934_v11 }
0x177a   : > { %v11285_v31 = vpack.c.bf16 %v6649_v17, %v6648_v35 }
0x177c   : > { %11286 = vmatpush3.bf16.msra.mxu1 %v11285_v31 }
0x177f   : > { %10914 = vmatmul.mubr.msk.f32.vlgmr.msra.gmra.mrb[82].mxu1 %vm6022_vm14, %v13349_v16 }
0x1780   : > { %10918 = vmatprep.mubr.msk.f32.mxu1 %vm3809_vm6, %v13354_v39 }
0x1852   : > { %v6716_v22 = vpop.f32.mrb[82].mxu1 }
0x1853   : > { %10916 = vmatprep.subr.msk.mxu1 %vm1268_vm0, %v6716_v22  ;;  %v10915_v58 = vpop.f32.mrb[83].mxu1 }
0x1854   : > { %10917 = vmatpush3.msk.msra.mxu1 %vm1268_vm0, %v6716_v22  ;;  %v13501_v58 = vld [vmem:[%s13496_s8] sm:$0xff] }
0x1855   : > { %10919 = vmatmul.mubr.msk.f32.vlgmr.msra.gmra.mrb[88].mxu1 %vm3809_vm6, %v13359_v7  ;;  %10948 = vmatprep.subr.bf16.mxu1 %v11738_v3 }
0x1856   : > { %10921 = vmatprep.mubr.msk.f32.mxu1 %vm3809_vm6, %v13363_v18  ;;  %10949 = vmatpush3.bf16.msra.mxu1 %v11738_v3 }
0x1857   : > { %10950 = vmatprep.subr.bf16.mxu1 %v11739_v49 }
0x1859   : > { %10922 = vmatmul.mubr.msk.f32.gmra.mrb[90].mxu1 %vm3809_vm6, %v13372_v37 }
0x185a   : > { %10951 = vmatpush3.bf16.msra.mxu1 %v11739_v49 }
0x1928   : > { %v10920_v34 = vpop.f32.mrb[88].mxu1 }
0x1929   : > { %v6795_v16 = vadd.f32 1e-05, %v10920_v34  ;;  %v6789_v4 = vpop.f32.mrb[89].mxu1  ;;  %v13506_v34 = vld [vmem:[%s13496_s8 + $0x8] sm:$0xff] }
0x192a   : > { %v6790_v20 = vadd.f32 1e-05, %v6789_v4  ;;  %v9796_v4 = vld [vmem:[%s13860_s4 + $0x188] sm:$0xff] }
0x192b   : > { %11822 = vrsqrt.f32 %v6795_v16  ;;  %v9795_v16 = vld [vmem:[%s13860_s4 + $0x180] sm:$0xff]  ;;  %s9871_s4 = sshll.u32 %s12123_s0, 5  ;;  %s11941_s0 = smov [#allocation2]  }
0x192c   : > { %11824 = vrsqrt.f32 %v6790_v20  ;;  %v10923_v39 = vpop.f32.mrb[90].mxu1  ;;  %v13512_v20 = vpack.c.bf16 %v9796_v4, %v9795_v16  ;;  %v11743_v4 = vld [vmem:[%s13881_s3 + $0x28] sm:$0xff]  }
0x192d   : > { %v6805_v51 = vadd.f32 1e-05, %v10923_v39  ;;  %v6799_v25 = vpop.f32.mrb[91].mxu1 }
0x192e   : > { %v6800_v38 = vadd.f32 1e-05, %v6799_v25 }
0x192f   : > { %11826 = vrsqrt.f32 %v6805_v51  ;;  %v11735_v51 = vld [vmem:[%s13879_s9 + $0x8] sm:$0xff]  }
0x1930   : > { %11828 = vrsqrt.f32 %v6800_v38  ;;  %v11736_v38 = vld [vmem:[%s13879_s9 + $0x20] sm:$0xff]  }
0x1935   : > { %v11823_v7 = vpop.eup %11822 }
0x1936   : > { %v11825_v18 = vpop.eup %11824  ;;  %v6813_v44 = vmul.f32 %v11823_v7, %v6643_v63 }
0x1937   : > { %v6812_v37 = vmul.f32 %v11825_v18, %v6642_v41 }
0x1938   : > { %6822 = vrot.lane.b32.xlu1 %v6813_v44, %s13826_s5 }
0x1939   : > { %v11827_v43 = vpop.eup %11826  ;;  %6820 = vrot.lane.b32.xlu0 %v6812_v37, %s13826_s5 }
0x193a   : > { %v11829_v60 = vpop.eup %11828  ;;  %v6815_v30 = vmul.f32 %v11827_v43, %v6645_v50 }
0x193b   : > { %v6814_v40 = vmul.f32 %v11829_v60, %v6644_v27 }
0x193c   : > { %6826 = vrot.lane.b32.xlu1 %v6815_v30, %s13826_s5 }
0x193d   : > { %6824 = vrot.lane.b32.xlu0 %v6814_v40, %s13826_s5  ;;  %v11740_v40 = vld [vmem:[%s13881_s3] sm:$0xff]  }
0x193e   : > { %10956 = vmatprep.subr.bf16.mxu1 %v11740_v40 }
0x1940   : > { %6897 = vperm.xlu1 %11715, %v6847_v48  }
0x1941   : > { %6893 = vperm.xlu0 %11714, %v6846_v12  }
0x1944   : > { %11716 = vset.pattern.permute.xlu1 %v13871_v52 }
0x1945   : > { %11717 = vset.pattern.permute.xlu0 %v13871_v52 }
0x19aa   : > { %v6823_v23 = vpop.permute.xlu1 %6822 }
0x19ab   : > { %v6833_v15 = vmul.f32 %v6823_v23, %v13385_v26  ;;  %v6821_v42 = vpop.permute.xlu0 %6820 }
0x19ac   : > { %v6832_v47 = vmul.f32 %v6821_v42, %v13387_v61 }
0x19ad   : > { %v6837_v62 = vadd.f32 %v6833_v15, %v13412_v19  ;;  %v11734_v19 = vld [vmem:[%s13879_s9] sm:$0xff]  }
0x19ae   : > { %v6836_v24 = vadd.f32 %v6832_v47, %v13414_v9  ;;  %v6827_v0 = vpop.permute.xlu1 %6826  ;;  %10932 = vmatprep.subr.bf16.mxu0 %v11734_v19 }
0x19af   : > { %v6835_v52 = vmul.f32 %v6827_v0, %v13393_v6  ;;  %v6825_v33 = vpop.permute.xlu0 %6824 }
0x19b0   : > { %v6834_v56 = vmul.f32 %v6825_v33, %v13395_v2  ;;  %v6848_v21 = vpack.c.bf16 %v6837_v62, %v6836_v24 }
0x19b1   : > { %v6839_v54 = vadd.f32 %v6835_v52, %v13420_v57 }
0x19b2   : > { %v6838_v63 = vadd.f32 %v6834_v56, %v13423_v14  ;;  %6913 = vrot.lane.b32.xlu1 %v6848_v21, %s13826_s5  ;;  %v6851_v26 = vshrl.u32 %v6848_v21, 16  ;;  %v6854_v6 = vshll.u32 %v6848_v21, 16 }
0x19b4   : > { %v6849_v61 = vpack.c.bf16 %v6839_v54, %v6838_v63  ;;  %v6853_v8 = vrot.slane %v6851_v26, 7  ;;  %v6884_v1 = vrot.slane %v6854_v6, 1 }
0x19b6   : > { %6874 = vperm.xlu1 %11716, %v6846_v12   ;;  %6915 = vrot.lane.b32.xlu0 %v6849_v61, %s13826_s5  ;;  %v6858_v9 = vshrl.u32 %v6849_v61, 16  ;;  %v6861_v41 = vshll.u32 %v6849_v61, 16  ;;  %v6856_v2 = vor.u32 %v6854_v6, %v6853_v8  ;;  %v6885_v5 = vor.u32 %v6884_v1, %v6851_v26 }
0x19b8   : > { %v6860_v59 = vrot.slane %v6858_v9, 7  ;;  %v6886_v57 = vrot.slane %v6861_v41, 1 }
0x19ba   : > { %6865 = vrot.lane.b32.xlu1 %v6856_v2, %s13826_s5  ;;  %6879 = vperm.xlu0 %11717, %v6847_v48   ;;  %v6863_v14 = vor.u32 %v6861_v41, %v6860_v59  ;;  %v6888_v10 = vor.u32 %v6886_v57, %v6858_v9  ;;  %v6887_v35 = vsel %vm1173_vm3, %v6885_v5, %v6886_v57  ;;  %v9725_v48 = vld [vmem:[%s12050_s27 + $0xa] ss:$0 sm:$0xff] }
0x19bb   : > { %11718 = vset.pattern.permute.xlu1 %v13872_v45 }
0x19bc   : > { %v6864_v50 = vsel %vm1050_vm2, %v6853_v8, %v6863_v14  ;;  %v6891_v27 = vsel %vm12400_vm7, %v6888_v10, 0  ;;  %v11742_v14 = vld [vmem:[%s13881_s3 + $0x20] sm:$0xff]  }
0x19be   : > { %6867 = vrot.lane.b32.xlu1 %v6864_v50, %s13826_s5 }
0x19bf   : > { %v13486_v28 = vpop.permute.xlu1 %6897 }
0x19c0   : > { %v6901_v17 = vmul.bf16 %v13486_v28, %v6891_v27  ;;  %v13492_v31 = vpop.permute.xlu0 %6893 }
0x19c1   : > { %v6900_v22 = vmul.bf16 %v13492_v31, %v6887_v35 }
0x19c2   : > { %7060 = vrot.lane.b32.xlu1 %v6901_v17, %s13826_s5 }
0x19c3   : > { %7058 = vrot.lane.b32.xlu0 %v6900_v22, %s13826_s5 }
0x19c7   : > { %8094 = vrot.lane.b32.xlu0 %v13501_v58, %s13826_s5 }
0x19cb   : > { %8498 = vrot.lane.b32.xlu0 %v13506_v34, %s13826_s5  ;;  %s13884_s5 = sld [smem:[#allocation17_spill]] }
0x19cf   : > { %8523 = vperm.xlu0 %11717, %v13512_v20  }
0x19d3   : > { %11719 = vset.pattern.permute.xlu0 %v13872_v45 }
0x1a24   : > { %v6914_v39 = vpop.permute.xlu1 %6913 }
0x1a25   : > { %10928 = vmatprep.mubr.msk.bf16.mxu0 %vm6022_vm14, %v6914_v39 }
0x1a28   : > { %v6916_v25 = vpop.permute.xlu0 %6915 }
0x1a29   : > { %10929 = vmatmul.mubr.msk.bf16.vlgmr.msra.gmra.mrb[84].mxu0 %vm6022_vm14, %v6916_v25 }
0x1a2a   : > { %10933 = vmatpush3.bf16.msra.mxu0 %v11734_v19  ;;  %v11741_v19 = vld [vmem:[%s13881_s3 + $0x8] sm:$0xff]   ;;  %s13886_s3 = sld [smem:[#allocation18_spill]] }
0x1a2b   : > { %10934 = vmatprep.subr.bf16.mxu0 %v11735_v51 }
0x1a2e   : > { %10935 = vmatpush3.bf16.msra.mxu0 %v11735_v51 }
0x1a2f   : > { %10940 = vmatprep.subr.bf16.mxu0 %v11736_v38 }
0x1a35   : > { %v13520_v7 = vpop.permute.xlu1 %6874 }
0x1a39   : > { %v6866_v18 = vpop.permute.xlu1 %6865  ;;  %v13524_v44 = vpop.permute.xlu0 %6879 }
0x1a3a   : > { %v6871_v45 = vsel %vm12328_vm5, 0, %v6866_v18  ;;  %v11744_v18 = vld [vmem:[%s13882_s11 + $0x10] sm:$0xff]  }
0x1a3b   : > { %v6882_v37 = vmul.bf16 %v13520_v7, %v6871_v45  ;;  %v11745_v45 = vld [vmem:[%s13882_s11 + $0x18] sm:$0xff]  }
0x1a3d   : > { %v6868_v43 = vpop.permute.xlu1 %6867  ;;  %10936 = vmatprep.mubr.msk.bf16.mxu0 %vm6022_vm14, %v6882_v37  ;;  %v7059_v60 = vpop.permute.xlu0 %7058  ;;  %v11746_v37 = vld [vmem:[%s13882_s11] sm:$0xff]  }
0x1a3e   : > { %v6883_v29 = vmul.bf16 %v13524_v44, %v6868_v43  ;;  %v9684_v43 = vld [vmem:[%s12050_s27 + $0x9] ss:$0 sm:$0xff] }
0x1a40   : > { %10937 = vmatmul.mubr.msk.bf16.vlgmr.msra.gmra.mrb[84].mxu0 %vm6022_vm14, %v6883_v29  ;;  %v9746_v29 = vld [vmem:[%s12050_s27 + $0xb] ss:$0 sm:$0xff] }
0x1a41   : > { %10944 = vmatprep.mubr.msk.bf16.mxu0 %vm6022_vm14, %v7059_v60  ;;  %10941 = vmatpush3.bf16.msra.mxu0 %v11736_v38  ;;  %v7061_v30 = vpop.permute.xlu1 %7060 }
0x1a42   : > { %10942 = vmatprep.subr.bf16.mxu0 %v11737_v32 }
0x1a45   : > { %10943 = vmatpush3.bf16.msra.mxu0 %v11737_v32  ;;  %v11374_v32 = vadd.f32 %v9746_v29, %v9684_v43 }
0x1a46   : > { %10972 = vmatprep.subr.bf16.mxu0 %v11744_v18 }
0x1a4c   : > { %10945 = vmatmul.mubr.msk.bf16.vlgmr.msra.gmra.mrb[84].mxu0 %vm6022_vm14, %v7061_v30 }
0x1a4d   : > { %10973 = vmatpush3.bf16.msra.mxu0 %v11744_v18 }
0x1a4e   : > { %10974 = vmatprep.subr.bf16.mxu0 %v11745_v45 }
0x1a51   : > { %10975 = vmatpush3.bf16.msra.mxu0 %v11745_v45 }
0x1a52   : > { %10980 = vmatprep.subr.bf16.mxu0 %v11746_v37 }
0x1b1f   : > { %v10946_v12 = vpop.f32.mrb[84].mxu0 }
0x1b20   : > { %v7139_v36 = vadd.f32 %v10946_v12, %v9725_v48  ;;  %v7114_v46 = vpop.f32.mrb[85].mxu0 }
0x1b21   : > { %v7137_v23 = vadd.f32 %v9725_v48, %v7114_v46  ;;  %v10947_v15 = vpop.f32.mrb[86].mxu0 }
0x1b22   : > { %v7147_v42 = vmul.f32 0.2, %v7139_v36  ;;  %v7140_v47 = vadd.f32 %v10947_v15, %v9725_v48  ;;  %v7117_v62 = vpop.f32.mrb[87].mxu0  ;;  %vm7143_vm11 = vcmp.ge.f32.partialorder %v7139_v36, 0.0 }
0x1b23   : > { %v7145_v24 = vmul.f32 0.2, %v7137_v23  ;;  %v7138_v0 = vadd.f32 %v9725_v48, %v7117_v62  ;;  %vm7141_vm8 = vcmp.ge.f32.partialorder %v7137_v23, 0.0 }
0x1b24   : > { %vm7144_vm12 = vcmp.ge.f32.partialorder %v7140_v47, 0.0  ;;  %v7148_v52 = vmul.f32 0.2, %v7140_v47  ;;  %v7151_v56 = vsel %vm7143_vm11, %v7139_v36, %v7147_v42  ;;  %v11747_v42 = vld [vmem:[%s13882_s11 + $0x8] sm:$0xff]  }
0x1b25   : > { %vm7142_vm13 = vcmp.ge.f32.partialorder %v7138_v0, 0.0  ;;  %v7146_v33 = vmul.f32 0.2, %v7138_v0  ;;  %v7149_v54 = vsel %vm7141_vm8, %v7137_v23, %v7145_v24 }
0x1b26   : > { %v7152_v21 = vsel %vm7144_vm12, %v7140_v47, %v7148_v52 }
0x1b27   : > { %v7155_v63 = vpack.c.bf16 %v7152_v21, %v7151_v56  ;;  %v7150_v26 = vsel %vm7142_vm13, %v7138_v0, %v7146_v33  ;;  %v11748_v21 = vld [vmem:[%s13882_s11 + $0x20] sm:$0xff]  }
0x1b28   : > { %v7154_v61 = vpack.c.bf16 %v7150_v26, %v7149_v54 }
0x1b29   : > { %v7164_v8 = vshrl.u32 %v7155_v63, 16  ;;  %v7167_v9 = vshll.u32 %v7155_v63, 16 }
0x1b2a   : > { %v7157_v6 = vshrl.u32 %v7154_v61, 16  ;;  %v7160_v41 = vshll.u32 %v7154_v61, 16  ;;  %10952 = vmatprep.mubr.msk.bf16.mxu1 %vm6022_vm14, %v7154_v61 }
0x1b2b   : > { %v7166_v2 = vrot.slane %v7164_v8, 7  ;;  %10953 = vmatmul.mubr.msk.bf16.vlgmr.msra.gmra.mrb[84].mxu1 %vm6022_vm14, %v7155_v63  ;;  %v7178_v10 = vrot.slane %v7167_v9, 1 }
0x1b2c   : > { %v7176_v59 = vrot.slane %v7160_v41, 1  ;;  %10957 = vmatpush3.bf16.msra.mxu1 %v11740_v40  ;;  %v7159_v57 = vrot.slane %v7157_v6, 7 }
0x1b2d   : > { %v7169_v1 = vor.u32 %v7167_v9, %v7166_v2  ;;  %10958 = vmatprep.subr.bf16.mxu1 %v11741_v19  ;;  %v7180_v51 = vor.u32 %v7178_v10, %v7164_v8 }
0x1b2e   : > { %v7177_v50 = vor.u32 %v7176_v59, %v7157_v6  ;;  %v7162_v5 = vor.u32 %v7160_v41, %v7159_v57  ;;  %v11749_v41 = vld [vmem:[%s13882_s11 + $0x28] sm:$0xff]  }
0x1b2f   : > { %v7170_v27 = vsel %vm1050_vm2, %v7159_v57, %v7169_v1  ;;  %v7183_v25 = vsel %vm12400_vm7, %v7180_v51, 0 }
0x1b30   : > { %v7173_v17 = vsel %vm12328_vm5, 0, %v7162_v5  ;;  %10959 = vmatpush3.bf16.msra.mxu1 %v11741_v19  ;;  %v7179_v35 = vsel %vm1173_vm3, %v7177_v50, %v7178_v10  ;;  %v7175_v16 = vmul.bf16 %v7170_v27, %v13524_v44  ;;  %v7185_v38 = vmul.bf16 %v7183_v25, %v13486_v28 }
0x1b31   : > { %v7174_v22 = vmul.bf16 %v7173_v17, %v13520_v7  ;;  %10964 = vmatprep.subr.bf16.mxu1 %v11742_v14  ;;  %v7184_v39 = vmul.bf16 %v7179_v35, %v13492_v31 }
0x1b33   : > { %10960 = vmatprep.mubr.msk.bf16.mxu1 %vm6022_vm14, %v7174_v22 }
0x1b37   : > { %10961 = vmatmul.mubr.msk.bf16.vlgmr.msra.gmra.mrb[84].mxu1 %vm6022_vm14, %v7175_v16 }
0x1b38   : > { %10968 = vmatprep.mubr.msk.bf16.mxu1 %vm6022_vm14, %v7184_v39  ;;  %10965 = vmatpush3.bf16.msra.mxu1 %v11742_v14 }
0x1b39   : > { %10966 = vmatprep.subr.bf16.mxu1 %v11743_v4 }
0x1b3c   : > { %10967 = vmatpush3.bf16.msra.mxu1 %v11743_v4 }
0x1b43   : > { %10969 = vmatmul.mubr.msk.bf16.vlgmr.msra.gmra.mrb[84].mxu1 %vm6022_vm14, %v7185_v38 }
0x1c16   : > { %v10970_v60 = vpop.f32.mrb[84].mxu1 }
0x1c17   : > { %v7384_v30 = vpop.f32.mrb[85].mxu1  ;;  %v11373_v49 = vadd.f32 %v11374_v32, %v10970_v60  ;;  %v13592_v60 = vld [vmem:[%s13859_s6 + $0x4] sm:$0x3] }
0x1c18   : > { %v10971_v3 = vpop.f32.mrb[86].mxu1  ;;  %v11375_v12 = vadd.f32 %v11374_v32, %v7384_v30  ;;  %v13597_v30 = vld [vmem:[%s12080_s13 + $0x80] sm:$0xff] }
0x1c19   : > { %v11377_v40 = vadd.f32 %v11374_v32, %v10971_v3  ;;  %v7387_v48 = vpop.f32.mrb[87].mxu1 }
0x1c1a   : > { %v11379_v36 = vadd.f32 %v11374_v32, %v7387_v48 }
0x1c1b   : > { %v7417_v46 = vpack.c.bf16 %v11377_v40, %v11373_v49  ;;  %v13602_v49 = vld [vmem:[%s12080_s13 + $0x88] sm:$0xff] }
0x1c1c   : > { %v7416_v23 = vpack.c.bf16 %v11379_v36, %v11375_v12 }
0x1c1d   : > { %v7426_v15 = vshrl.u32 %v7417_v46, 16  ;;  %v7429_v47 = vshll.u32 %v7417_v46, 16 }
0x1c1e   : > { %v7419_v62 = vshrl.u32 %v7416_v23, 16  ;;  %v7422_v24 = vshll.u32 %v7416_v23, 16  ;;  %10976 = vmatprep.mubr.msk.bf16.mxu0 %vm6022_vm14, %v7416_v23 }
0x1c1f   : > { %v7428_v0 = vrot.slane %v7426_v15, 7  ;;  %10977 = vmatmul.mubr.msk.bf16.vlgmr.msra.gmra.mrb[88].mxu0 %vm6022_vm14, %v7417_v46  ;;  %v7440_v54 = vrot.slane %v7429_v47, 1 }
0x1c20   : > { %v7421_v52 = vrot.slane %v7419_v62, 7  ;;  %v7438_v33 = vrot.slane %v7422_v24, 1  ;;  %10981 = vmatpush3.bf16.msra.mxu0 %v11746_v37  ;;  %v7686_v37 = vld [vmem:[%s13883_s1 + $0x8] sm:$0xff] }
0x1c21   : > { %v7431_v56 = vor.u32 %v7429_v47, %v7428_v0  ;;  %10982 = vmatprep.subr.bf16.mxu0 %v11747_v42  ;;  %v7442_v59 = vor.u32 %v7440_v54, %v7426_v15  ;;  %v7770_v47 = vld [vmem:[%s13496_s8 + $0x10] sm:$0xff]  ;;  %v11750_v0 = vld [vmem:[%s13884_s5] sm:$0xff]  }
0x1c22   : > { %v7424_v63 = vor.u32 %v7422_v24, %v7421_v52  ;;  %v7439_v26 = vor.u32 %v7438_v33, %v7419_v62  ;;  %v11752_v33 = vld [vmem:[%s13884_s5 + $0x10] sm:$0xff]  }
0x1c23   : > { %v7432_v61 = vsel %vm1050_vm2, %v7421_v52, %v7431_v56  ;;  %v11751_v52 = vld [vmem:[%s13884_s5 + $0x8] sm:$0xff]   ;;  %v11753_v56 = vld [vmem:[%s13884_s5 + $0x18] sm:$0xff]  }
0x1c24   : > { %v7435_v8 = vsel %vm12328_vm5, 0, %v7424_v63  ;;  %10983 = vmatpush3.bf16.msra.mxu0 %v11747_v42  ;;  %v7441_v19 = vsel %vm1173_vm3, %v7439_v26, %v7440_v54  ;;  %v7437_v6 = vmul.bf16 %v7432_v61, %v13524_v44  ;;  %v9767_v44 = vld [vmem:[%s12050_s27 + $0xc] ss:$0 sm:$0xff] }
0x1c25   : > { %v7436_v9 = vmul.bf16 %v7435_v8, %v13520_v7  ;;  %10988 = vmatprep.subr.bf16.mxu0 %v11748_v21  ;;  %v7446_v2 = vmul.bf16 %v7441_v19, %v13492_v31  ;;  %v7445_v7 = vsel %vm12400_vm7, %v7442_v59, 0  ;;  %v7685_v31 = vld [vmem:[%s13883_s1] sm:$0xff]  ;;  %s13885_s1 = smov 64   ;;  %v8095_v59 = vpop.permute.xlu0 %8094 }
0x1c26   : > { %v7447_v57 = vmul.bf16 %v7445_v7, %v13486_v28  ;;  %11004 = vmatprep.mubr.msk.f32.mxu1 %vm6022_vm14, %v7685_v31  ;;  %8096 = vrot.lane.b32.xlu1 %v7770_v47, %s13885_s1 }
0x1c27   : > { %10984 = vmatprep.mubr.msk.bf16.mxu0 %vm6022_vm14, %v7436_v9 }
0x1c2b   : > { %10985 = vmatmul.mubr.msk.bf16.vlgmr.msra.gmra.mrb[88].mxu0 %vm6022_vm14, %v7437_v6 }
0x1c2c   : > { %10992 = vmatprep.mubr.msk.bf16.mxu0 %vm6022_vm14, %v7446_v2  ;;  %10989 = vmatpush3.bf16.msra.mxu0 %v11748_v21 }
0x1c2d   : > { %10990 = vmatprep.subr.bf16.mxu0 %v11749_v41 }
0x1c30   : > { %10991 = vmatpush3.bf16.msra.mxu0 %v11749_v41 }
0x1c31   : > { %11031 = vmatprep.subr.bf16.mxu0 %v11936_v53 }
0x1c37   : > { %10993 = vmatmul.mubr.msk.bf16.vlgmr.msra.gmra.mrb[88].mxu0 %vm6022_vm14, %v7447_v57 }
0x1c38   : > { %11039 = vmatprep.mubr.msk.bf16.mxu0 %vm11935_vm1, %v11936_v53  ;;  %11032 = vmatpush3.bf16.msra.mxu0 %v11750_v0  ;;  %v11760_v0 = vld [vmem:[%s13886_s3 + $0x40] sm:$0xff]  }
0x1c39   : > { %11033 = vmatprep.subr.bf16.mxu0 %v11936_v53 }
0x1c3c   : > { %11034 = vmatpush3.bf16.msra.mxu0 %v11751_v52 }
0x1c3d   : > { %11035 = vmatprep.subr.bf16.mxu0 %v11936_v53 }
0x1c40   : > { %11036 = vmatpush3.bf16.msra.mxu0 %v11752_v33 }
0x1c41   : > { %11037 = vmatprep.subr.bf16.mxu0 %v11936_v53 }
0x1c44   : > { %11038 = vmatpush3.bf16.msra.mxu0 %v11753_v56 }
0x1c45   : > { %11067 = vmatprep.subr.bf16.mxu0 %v11936_v53 }
0x1c98   : > { %v8097_v6 = vpop.permute.xlu1 %8096 }
0x1d0a   : > { %v10994_v1 = vpop.f32.mrb[88].mxu0 }
0x1d0b   : > { %v7671_v14 = vadd.f32 %v10994_v1, %v9767_v44  ;;  %v7646_v10 = vpop.f32.mrb[89].mxu0 }
0x1d0c   : > { %v7669_v50 = vadd.f32 %v9767_v44, %v7646_v10  ;;  %v10995_v5 = vpop.f32.mrb[90].mxu0 }
0x1d0d   : > { %v7679_v27 = vmul.f32 0.2, %v7671_v14  ;;  %v7672_v17 = vadd.f32 %v10995_v5, %v9767_v44  ;;  %v7649_v35 = vpop.f32.mrb[91].mxu0  ;;  %vm7675_vm2 = vcmp.ge.f32.partialorder %v7671_v14, 0.0 }
0x1d0e   : > { %v7677_v22 = vmul.f32 0.2, %v7669_v50  ;;  %v7670_v28 = vadd.f32 %v9767_v44, %v7649_v35  ;;  %vm7673_vm3 = vcmp.ge.f32.partialorder %v7669_v50, 0.0 }
0x1d0f   : > { %vm7676_vm15 = vcmp.ge.f32.partialorder %v7672_v17, 0.0  ;;  %v7680_v16 = vmul.f32 0.2, %v7672_v17  ;;  %v7683_v39 = vsel %vm7675_vm2, %v7671_v14, %v7679_v27 }
0x1d10   : > { %vm7674_vm9 = vcmp.ge.f32.partialorder %v7670_v28, 0.0  ;;  %v7678_v4 = vmul.f32 0.2, %v7670_v28  ;;  %v7681_v25 = vsel %vm7673_vm3, %v7669_v50, %v7677_v22 }
0x1d11   : > { %v7684_v51 = vsel %vm7676_vm15, %v7672_v17, %v7680_v16 }
0x1d12   : > { %v7682_v38 = vsel %vm7674_vm9, %v7670_v28, %v7678_v4  ;;  %v11291_v18 = vpack.c.bf16 %v7684_v51, %v7683_v39  ;;  %v7771_v39 = vld [vmem:[%s13496_s8 + $0x18] sm:$0xff]  ;;  %s13887_s8 = sld [smem:[#allocation19_spill]] }
0x1d13   : > { %v11287_v45 = vpack.c.bf16 %v7682_v38, %v7681_v25  ;;  %8500 = vrot.lane.b32.xlu1 %v7771_v39, %s13885_s1  ;;  %v11754_v38 = vld [vmem:[%s13886_s3 + $0x20] sm:$0xff]   ;;  %s972_s1 = sand.u32 1, %s11892_s16  }
0x1d14   : > { %s9280_s9 = scalar_lea.sflag [#allocation3], %s972_s1 }
0x1d15   : > { %11288 = vmatprep.subr.bf16.mxu1 %v11287_v45 }
0x1d16   : > { %11290 = vmatpush3.bf16.msra.mxu1 %v11287_v45  ;;  %v11757_v45 = vld [vmem:[%s13886_s3] sm:$0xff]  }
0x1d17   : > { %11292 = vmatprep.subr.bf16.mxu1 %v11291_v18  ;;  %8532 = vperm.xlu1 %11718, %v13512_v20   ;;  %v11755_v20 = vld [vmem:[%s13886_s3 + $0x28] sm:$0xff]  }
0x1d1a   : > { %11294 = vmatpush3.bf16.msra.mxu1 %v11291_v18  ;;  %v11756_v18 = vld [vmem:[%s13886_s3 + $0x30] sm:$0xff]  }
0x1d1b   : > { %11295 = vmatprep.subr.bf16.mxu1 %v11934_v11 }
0x1d1d   : > { %11005 = vmatmul.mubr.msk.f32.vlgmr.msra.gmra.mrb[92].mxu1 %vm6022_vm14, %v7686_v37  ;;  %v11758_v37 = vld [vmem:[%s13886_s3 + $0x38] sm:$0xff]  }
0x1d1e   : > { %11011 = vmatprep.mubr.msk.f32.mxu1 %vm11935_vm1, %v11936_v53 }
0x1df0   : > { %v11006_v43 = vpop.f32.mrb[92].mxu1 }
0x1df1   : > { %v7759_v29 = vpop.f32.mrb[93].mxu1 }
0x1df2   : > { %v11296_v32 = vpack.c.bf16 %v11006_v43, %v7759_v29 }
0x1df4   : > { %11297 = vmatpush3.bf16.msra.mxu1 %v11296_v32  ;;  %v11763_v32 = vld [vmem:[%s13886_s3 + $0x18] sm:$0xff]  }
0x1df7   : > { %11012 = vmatmul.mubr.msk.f32.vlgmr.msra.gmra.mrb[94].mxu1 %vm4217_vm10, %v13592_v60 }
0x1df8   : > { %11016 = vmatprep.mubr.msk.f32.mxu1 %vm3809_vm6, %v13597_v30 }
0x1eca   : > { %v7846_v3 = vpop.f32.mrb[94].mxu1 }
0x1ecb   : > { %11014 = vmatprep.subr.msk.mxu1 %vm1268_vm0, %v7846_v3  ;;  %v11013_v40 = vpop.f32.mrb[95].mxu1 }
0x1ecc   : > { %11015 = vmatpush3.msk.msra.mxu1 %vm1268_vm0, %v7846_v3 }
0x1ecd   : > { %11017 = vmatmul.mubr.msk.f32.vlgmr.msra.gmra.mrb[96].mxu1 %vm3809_vm6, %v13602_v49  ;;  %11298 = vmatprep.subr.bf16.mxu1 %v11934_v11 }
0x1ece   : > { %11023 = vmatprep.mubr.msk.f32.mxu1 %vm11935_vm1, %v11936_v53 }
0x1fa0   : > { %v11018_v48 = vpop.f32.mrb[96].mxu1 }
0x1fa1   : > { %v7935_v12 = vsub.f32 %v11006_v43, %v11018_v48  ;;  %v7925_v36 = vpop.f32.mrb[97].mxu1  ;;  %v11759_v43 = vld [vmem:[%s13886_s3 + $0x8] sm:$0xff]  }
0x1fa2   : > { %v7934_v46 = vsub.f32 %v7759_v29, %v7925_v36  ;;  %v11761_v29 = vld [vmem:[%s13886_s3 + $0x10] sm:$0xff]  }
0x1fa3   : > { %v7937_v23 = vmul.f32 %v7935_v12, %v7935_v12 }
0x1fa4   : > { %v7936_v15 = vmul.f32 %v7934_v46, %v7934_v46 }
0x1fa6   : > { %v11299_v42 = vpack.c.bf16 %v7937_v23, %v7936_v15 }
0x1fa8   : > { %11300 = vmatpush3.bf16.msra.mxu1 %v11299_v42 }
0x1fab   : > { %11024 = vmatmul.mubr.msk.f32.vlgmr.msra.gmra.mrb[98].mxu1 %vm4217_vm10, %v13592_v60 }
0x1fac   : > { %11028 = vmatprep.mubr.msk.f32.mxu1 %vm3809_vm6, %v13597_v30 }
0x207e   : > { %v8004_v62 = vpop.f32.mrb[98].mxu1 }
0x207f   : > { %11026 = vmatprep.subr.msk.mxu1 %vm1268_vm0, %v8004_v62  ;;  %v11025_v24 = vpop.f32.mrb[99].mxu1 }
0x2080   : > { %11027 = vmatpush3.msk.msra.mxu1 %vm1268_vm0, %v8004_v62 }
0x2081   : > { %11029 = vmatmul.mubr.msk.f32.vlgmr.msra.gmra.mrb[100].mxu1 %vm3809_vm6, %v13602_v49  ;;  %11301 = vmatprep.subr.bf16.mxu1 %v11934_v11 }
0x2082   : > { %11047 = vmatprep.mubr.msk.f32.mxu1 %vm11935_vm1, %v11936_v53 }
0x2154   : > { %v11030_v21 = vpop.f32.mrb[100].mxu1 }
0x2155   : > { %v8083_v54 = vadd.f32 1e-05, %v11030_v21  ;;  %v8077_v63 = vpop.f32.mrb[101].mxu1  ;;  %v11762_v21 = vld [vmem:[%s13886_s3 + $0x48] sm:$0xff]  }
0x2156   : > { %v8078_v26 = vadd.f32 1e-05, %v8077_v63 }
0x2157   : > { %11830 = vrsqrt.f32 %v8083_v54 }
0x2158   : > { %11832 = vrsqrt.f32 %v8078_v26  ;;  %v11764_v26 = vld [vmem:[%s13886_s3 + $0x50] sm:$0xff]  }
0x2161   : > { %v11831_v61 = vpop.eup %11830 }
0x2162   : > { %v11833_v8 = vpop.eup %11832  ;;  %v8089_v19 = vmul.f32 %v11831_v61, %v7935_v12 }
0x2163   : > { %v8088_v9 = vmul.f32 %v11833_v8, %v7934_v46  ;;  %v8501_v46 = vpop.permute.xlu1 %8500 }
0x2164   : > { %v8091_v41 = vmul.f32 %v8089_v19, %v7770_v47  ;;  %v8499_v47 = vpop.permute.xlu0 %8498 }
0x2165   : > { %v8090_v2 = vmul.f32 %v8088_v9, %v13501_v58 }
0x2166   : > { %v8101_v7 = vadd.f32 %v8097_v6, %v8091_v41  ;;  %v11765_v6 = vld [vmem:[%s13886_s3 + $0x58] sm:$0xff]   ;;  %s9422_s3 = sshll.u32 %s972_s1, 1 }
0x2167   : > { %v8100_v57 = vadd.f32 %v8095_v59, %v8090_v2  ;;  %v13696_v41 = vpop.permute.xlu1 %8532  ;;  %s974_s5 = scalar_lea.vmem [#allocation2], %s9422_s3  ;;  %s11842_s3 = sshll.u32 %s11941_s0, 4  ;;  %s11843_s3 = int_to_ptr.vmem [resolvable:$false] %s11842_s3 }
0x2168   : > { %vm8185_vm14 = vcmp.ge.f32.partialorder %v8101_v7, 0.0  ;;  %v8187_v31 = vmul.f32 0.2, %v8101_v7  ;;  %v13685_v61 = vpop.permute.xlu0 %8523  ;;  %s9293_s6 = sshll.u32 %s974_s5, 4  ;;  %s13768_s6 = int_to_ptr.vmem [resolvable:$true] %s9293_s6 }
0x2169   : > { %v8103_v44 = vpack.c.bf16 %v8101_v7, %v8100_v57  ;;  %vm8184_vm11 = vcmp.ge.f32.partialorder %v8100_v57, 0.0  ;;  %v8186_v1 = vmul.f32 0.2, %v8100_v57  ;;  %s11838_s11 = scalar_lea.vmem %s13768_s6, 32  ;;  %p11845_p3 = scmp.lt.s32.totalorder %s13768_s6, %s11843_s3 }
0x216a   : > { %v8189_v14 = vsel %vm8185_vm14, %v8101_v7, %v8187_v31  ;;  %v11766_v7 = vld [vmem:[%s13887_s8 + $0x20] sm:$0xff]   ;;  %v11768_v31 = vld [vmem:[%s13887_s8 + $0x30] sm:$0xff]   ;;  %p11839_p0 = scmp.ne.s32.totalorder %s13768_s6, %s11838_s11 }
0x216b   : > { %11040 = vmatmul.mubr.msk.bf16.vlgmr.msra.gmra.mrb[92].mxu0 %vm3735_vm4, %v8103_v44  ;;  %v8188_v10 = vsel %vm8184_vm11, %v8100_v57, %v8186_v1  ;;  %v11767_v57 = vld [vmem:[%s13887_s8 + $0x28] sm:$0xff]   ;;  %v11769_v44 = vld [vmem:[%s13887_s8 + $0x38] sm:$0xff]   ;;  %v11778_v1 = vld [vmem:[%s12085_s20] sm:$0xff]  }
0x216c   : > { %v11302_v50 = vpack.c.bf16 %v8189_v14, %v8188_v10  ;;  %11075 = vmatprep.mubr.msk.bf16.mxu0 %vm11935_vm1, %v11936_v53  ;;  %11068 = vmatpush3.bf16.msra.mxu0 %v11754_v38  ;;  %p11840_p1 = pnand %p11839_p0, %p12140_p5 }
0x216d   : > { %11069 = vmatprep.subr.bf16.mxu0 %v11936_v53 }
0x216e   : > { %11303 = vmatpush3.bf16.msra.mxu1 %v11302_v50  ;;  %p11841_p2 = pneg %p11840_p1 }
0x2170   : > { %11070 = vmatpush3.bf16.msra.mxu0 %v11755_v20 }
0x2171   : > { %11048 = vmatmul.mubr.msk.f32.vlgmr.msra.gmra.mrb[102].mxu1 %vm4217_vm10, %v13592_v60  ;;  %11071 = vmatprep.subr.bf16.mxu0 %v11936_v53 }
0x2172   : > { %11052 = vmatprep.mubr.msk.f32.mxu1 %vm3809_vm6, %v13597_v30 }
0x2174   : > { %11072 = vmatpush3.bf16.msra.mxu0 %v11756_v18 }
0x2175   : > { %11073 = vmatprep.subr.bf16.mxu0 %v11936_v53 }
0x2178   : > { %11074 = vmatpush3.bf16.msra.mxu0 %v11758_v37 }
0x2179   : > { %11091 = vmatprep.subr.bf16.mxu0 %v11936_v53 }
0x2244   : > { %v8256_v58 = vpop.f32.mrb[102].mxu1 }
0x2245   : > { %11050 = vmatprep.subr.msk.mxu1 %vm1268_vm0, %v8256_v58  ;;  %v11049_v5 = vpop.f32.mrb[103].mxu1 }
0x2246   : > { %11051 = vmatpush3.msk.msra.mxu1 %vm1268_vm0, %v8256_v58 }
0x2247   : > { %11053 = vmatmul.mubr.msk.f32.vlgmr.msra.gmra.mrb[104].mxu1 %vm3809_vm6, %v13602_v49  ;;  %11304 = vmatprep.subr.bf16.mxu1 %v11934_v11 }
0x2248   : > { %11059 = vmatprep.mubr.msk.f32.mxu1 %vm11935_vm1, %v11936_v53 }
0x231a   : > { %v11054_v27 = vpop.f32.mrb[104].mxu1 }
0x231b   : > { %v8339_v17 = vsub.f32 %v8189_v14, %v11054_v27  ;;  %v8329_v35 = vpop.f32.mrb[105].mxu1  ;;  %v11779_v14 = vld [vmem:[%s12085_s20 + $0x8] sm:$0xff]  }
0x231c   : > { %v8338_v22 = vsub.f32 %v8188_v10, %v8329_v35 }
0x231d   : > { %v8341_v28 = vmul.f32 %v8339_v17, %v8339_v17 }
0x231e   : > { %v8340_v16 = vmul.f32 %v8338_v22, %v8338_v22 }
0x2320   : > { %v11305_v4 = vpack.c.bf16 %v8341_v28, %v8340_v16 }
0x2322   : > { %11306 = vmatpush3.bf16.msra.mxu1 %v11305_v4  ;;  %v9828_v4 = vld [vmem:[%s12050_s27 + $0xe] ss:$0 sm:$0xff] }
0x2325   : > { %11060 = vmatmul.mubr.msk.f32.vlgmr.msra.gmra.mrb[106].mxu1 %vm4217_vm10, %v13592_v60 }
0x2326   : > { %11064 = vmatprep.mubr.msk.f32.mxu1 %vm3809_vm6, %v13597_v30 }
0x23f8   : > { %v8408_v51 = vpop.f32.mrb[106].mxu1 }
0x23f9   : > { %11062 = vmatprep.subr.msk.mxu1 %vm1268_vm0, %v8408_v51  ;;  %v11061_v25 = vpop.f32.mrb[107].mxu1 }
0x23fa   : > { %11063 = vmatpush3.msk.msra.mxu1 %vm1268_vm0, %v8408_v51 }
0x23fb   : > { %11065 = vmatmul.mubr.msk.f32.vlgmr.msra.gmra.mrb[108].mxu1 %vm3809_vm6, %v13602_v49  ;;  %11079 = vmatprep.subr.bf16.mxu1 %v11936_v53 }
0x23fc   : > { %11087 = vmatprep.mubr.msk.bf16.mxu1 %vm11935_vm1, %v11936_v53  ;;  %11080 = vmatpush3.bf16.msra.mxu1 %v11757_v45 }
0x23fd   : > { %11081 = vmatprep.subr.bf16.mxu1 %v11936_v53 }
0x2400   : > { %11082 = vmatpush3.bf16.msra.mxu1 %v11759_v43 }
0x2401   : > { %11083 = vmatprep.subr.bf16.mxu1 %v11936_v53 }
0x2404   : > { %11084 = vmatpush3.bf16.msra.mxu1 %v11761_v29 }
0x2405   : > { %11085 = vmatprep.subr.bf16.mxu1 %v11936_v53 }
0x2408   : > { %11086 = vmatpush3.bf16.msra.mxu1 %v11763_v32 }
0x2409   : > { %11139 = vmatprep.subr.bf16.mxu1 %v11936_v53 }
0x24ce   : > { %v11066_v30 = vpop.f32.mrb[108].mxu1 }
0x24cf   : > { %v8487_v3 = vadd.f32 1e-05, %v11066_v30  ;;  %v8481_v49 = vpop.f32.mrb[109].mxu1 }
0x24d0   : > { %v8482_v40 = vadd.f32 1e-05, %v8481_v49 }
0x24d1   : > { %11834 = vrsqrt.f32 %v8487_v3  ;;  %v11770_v3 = vld [vmem:[%s13887_s8] sm:$0xff]  }
0x24d2   : > { %11836 = vrsqrt.f32 %v8482_v40 }
0x24db   : > { %v11835_v48 = vpop.eup %11834 }
0x24dc   : > { %v11837_v12 = vpop.eup %11836  ;;  %v8493_v36 = vmul.f32 %v11835_v48, %v8339_v17  ;;  %v11771_v48 = vld [vmem:[%s13887_s8 + $0x8] sm:$0xff]  }
0x24dd   : > { %v8492_v23 = vmul.f32 %v11837_v12, %v8338_v22 }
0x24de   : > { %v8495_v15 = vmul.f32 %v8493_v36, %v7771_v39 }
0x24df   : > { %v8494_v42 = vmul.f32 %v8492_v23, %v13506_v34 }
0x24e0   : > { %v8505_v62 = vadd.f32 %v8501_v46, %v8495_v15  ;;  %v11772_v46 = vld [vmem:[%s13887_s8 + $0x10] sm:$0xff]   ;;  %v11773_v15 = vld [vmem:[%s13887_s8 + $0x18] sm:$0xff]  }
0x24e1   : > { %v8504_v24 = vadd.f32 %v8499_v47, %v8494_v42  ;;  %v11774_v47 = vld [vmem:[%s13887_s8 + $0x40] sm:$0xff]  }
0x24e3   : > { %v8511_v52 = vpack.c.bf16 %v8505_v62, %v8504_v24  ;;  %v11775_v24 = vld [vmem:[%s13887_s8 + $0x48] sm:$0xff]  }
0x24e5   : > { %v8516_v33 = vshll.u32 %v8511_v52, 16  ;;  %11076 = vmatmul.mubr.msk.bf16.vlgmr.msra.gmra.mrb[96].mxu0 %vm3735_vm4, %v8511_v52  ;;  %v8513_v56 = vshrl.u32 %v8511_v52, 16 }
0x24e6   : > { %11092 = vmatpush3.bf16.msra.mxu0 %v11760_v0  ;;  %11099 = vmatprep.mubr.msk.bf16.mxu0 %vm11935_vm1, %v11936_v53  ;;  %v11776_v0 = vld [vmem:[%s13887_s8 + $0x50] sm:$0xff]  }
0x24e7   : > { %11093 = vmatprep.subr.bf16.mxu0 %v11936_v53  ;;  %v8515_v54 = vrot.slane %v8513_v56, 7  ;;  %v8527_v34 = vrot.slane %v8516_v33, 1 }
0x24e9   : > { %v8518_v63 = vor.u32 %v8516_v33, %v8515_v54  ;;  %v8528_v19 = vor.u32 %v8527_v34, %v8513_v56  ;;  %v11777_v33 = vld [vmem:[%s13887_s8 + $0x58] sm:$0xff]   ;;  %v11780_v54 = vld [vmem:[%s12085_s20 + $0x10] sm:$0xff]   ;;  %s13766_s8 = scalar_lea.hbm %s12100_s24, %s9871_s4 }
0x24ea   : > { %11094 = vmatpush3.bf16.msra.mxu0 %v11762_v21  ;;  %v11781_v34 = vld [vmem:[%s12085_s20 + $0x18] sm:$0xff]  }
0x24eb   : > { %v8520_v8 = vsel %vm12328_vm5, 0, %v8518_v63  ;;  %11095 = vmatprep.subr.bf16.mxu0 %v11936_v53  ;;  %v8530_v2 = vsel %vm12400_vm7, %v8528_v19, 0  ;;  %v9116_v63 = vld [vmem:[%s12095_s30] sm:$0xff] }
0x24ec   : > { %v8526_v9 = vmul.bf16 %v13685_v61, %v8520_v8  ;;  %v8535_v59 = vmul.bf16 %v13696_v41, %v8530_v2  ;;  %v9781_v8 = vld [vmem:[%s12050_s27 + $0xd] ss:$0 sm:$0xff] }
0x24ed   : > { %v11380_v19 = vadd.f32 %v9860_v13, %v9781_v8 }
0x24ee   : > { %11096 = vmatpush3.bf16.msra.mxu0 %v11764_v26  ;;  %11088 = vmatmul.mubr.msk.bf16.vlgmr.msra.gmra.mrb[112].mxu1 %vm3735_vm4, %v8526_v9  ;;  %v9117_v26 = vld [vmem:[%s12095_s30 + $0x8] sm:$0xff] }
0x24ef   : > { %11097 = vmatprep.subr.bf16.mxu0 %v11936_v53  ;;  %11147 = vmatprep.mubr.msk.bf16.mxu1 %vm11935_vm1, %v11936_v53 }
0x24f0   : > { %11140 = vmatpush3.bf16.msra.mxu1 %v11778_v1 }
0x24f1   : > { %11141 = vmatprep.subr.bf16.mxu1 %v11936_v53 }
0x24f2   : > { %11098 = vmatpush3.bf16.msra.mxu0 %v11765_v6 }
0x24f3   : > { %11103 = vmatprep.subr.bf16.mxu0 %v11936_v53 }
0x24f4   : > { %11142 = vmatpush3.bf16.msra.mxu1 %v11779_v14  ;;  %v9113_v14 = vld [vmem:[%s13858_s12 + $0x8] sm:$0xff] }
0x24f5   : > { %11100 = vmatmul.mubr.msk.bf16.vlgmr.msra.gmra.mrb[100].mxu0 %vm3735_vm4, %v8535_v59  ;;  %11143 = vmatprep.subr.bf16.mxu1 %v11936_v53 }
0x24f6   : > { %11111 = vmatprep.mubr.msk.bf16.mxu0 %vm11935_vm1, %v11936_v53  ;;  %11104 = vmatpush3.bf16.msra.mxu0 %v11766_v7 }
0x24f7   : > { %11105 = vmatprep.subr.bf16.mxu0 %v11936_v53 }
0x24f8   : > { %11144 = vmatpush3.bf16.msra.mxu1 %v11780_v54 }
0x24f9   : > { %11145 = vmatprep.subr.bf16.mxu1 %v11936_v53 }
0x24fa   : > { %11106 = vmatpush3.bf16.msra.mxu0 %v11767_v57 }
0x24fb   : > { %11107 = vmatprep.subr.bf16.mxu0 %v11936_v53 }
0x24fc   : > { %11146 = vmatpush3.bf16.msra.mxu1 %v11781_v34 }
0x24fe   : > { %11108 = vmatpush3.bf16.msra.mxu0 %v11768_v31  ;;  %v9118_v31 = vld [vmem:[%s12095_s30 + $0x10] sm:$0xff] }
0x24ff   : > { %11109 = vmatprep.subr.bf16.mxu0 %v11936_v53 }
0x2502   : > { %11110 = vmatpush3.bf16.msra.mxu0 %v11769_v44  ;;  %v9112_v44 = vld [vmem:[%s13858_s12] sm:$0xff]  ;;  %s11844_s12 = scalar_lea.vmem %s11843_s3, 64 }
0x2503   : > { %11115 = vmatprep.subr.bf16.mxu0 %v11936_v53  ;;  %p11846_p4 = scmp.lt.s32.totalorder %s11844_s12, %s11838_s11 }
0x2505   : > { %p11847_p7 = por %p11846_p4, %p11845_p3 }
0x2507   : > { %p11848_p8 = pnand %p11847_p7, %p11841_p2 }
0x25b8   : > { %v8613_v10 = vpop.f32.mrb[96].mxu0 }
0x25b9   : > { %v11077_v50 = vpop.f32.mrb[97].mxu0 }
0x25ba   : > { %v8616_v58 = vpop.f32.mrb[98].mxu0 }
0x25bb   : > { %v11078_v5 = vpop.f32.mrb[99].mxu0 }
0x25c1   : > { %v8681_v27 = vpop.f32.mrb[112].mxu1 }
0x25c2   : > { %v8682_v17 = vadd.f32 %v8681_v27, %v8613_v10  ;;  %v11089_v35 = vpop.f32.mrb[113].mxu1 }
0x25c3   : > { %v8684_v22 = vpop.f32.mrb[114].mxu1 }
0x25c4   : > { %v8685_v28 = vadd.f32 %v8684_v22, %v8616_v58  ;;  %v11090_v16 = vpop.f32.mrb[115].mxu1 }
0x25c8   : > { %v8758_v39 = vpop.f32.mrb[100].mxu0 }
0x25c9   : > { %v8765_v51 = vadd.f32 %v8758_v39, %v8682_v17  ;;  %v11101_v25 = vpop.f32.mrb[101].mxu0 }
0x25ca   : > { %v8761_v38 = vpop.f32.mrb[102].mxu0 }
0x25cb   : > { %v8771_v20 = vadd.f32 %v9828_v4, %v8765_v51  ;;  %v8766_v18 = vadd.f32 %v8761_v38, %v8685_v28  ;;  %v11102_v45 = vpop.f32.mrb[103].mxu0  ;;  %v9869_v28 = vld [vmem:[%s12050_s27 + $0x10] ss:$0 sm:$0xff] }
0x25cd   : > { %v8775_v37 = vmul.f32 0.2, %v8771_v20  ;;  %v8772_v43 = vadd.f32 %v9828_v4, %v8766_v18  ;;  %vm8773_vm0 = vcmp.ge.f32.partialorder %v8771_v20, 0.0 }
0x25cf   : > { %vm8774_vm6 = vcmp.ge.f32.partialorder %v8772_v43, 0.0  ;;  %v8776_v29 = vmul.f32 0.2, %v8772_v43  ;;  %v8777_v32 = vsel %vm8773_vm0, %v8771_v20, %v8775_v37 }
0x25d1   : > { %v8778_v30 = vsel %vm8774_vm6, %v8772_v43, %v8776_v29 }
0x25d2   : > { %v8780_v49 = vpack.c.bf16 %v8778_v30, %v8777_v32 }
0x25d4   : > { %v8782_v40 = vshrl.u32 %v8780_v49, 16  ;;  %11112 = vmatmul.mubr.msk.bf16.vlgmr.msra.gmra.mrb[92].mxu0 %vm3735_vm4, %v8780_v49  ;;  %v8785_v36 = vshll.u32 %v8780_v49, 16 }
0x25d5   : > { %11116 = vmatpush3.bf16.msra.mxu0 %v11770_v3  ;;  %11123 = vmatprep.mubr.msk.bf16.mxu0 %vm11935_vm1, %v11936_v53 }
0x25d6   : > { %11117 = vmatprep.subr.bf16.mxu0 %v11936_v53  ;;  %v8784_v12 = vrot.slane %v8782_v40, 7  ;;  %v8791_v55 = vrot.slane %v8785_v36, 1 }
0x25d8   : > { %v8787_v23 = vor.u32 %v8785_v36, %v8784_v12  ;;  %v8792_v52 = vor.u32 %v8791_v55, %v8782_v40 }
0x25d9   : > { %11118 = vmatpush3.bf16.msra.mxu0 %v11771_v48 }
0x25da   : > { %11119 = vmatprep.subr.bf16.mxu0 %v11936_v53  ;;  %v8789_v42 = vsel %vm12328_vm5, 0, %v8787_v23  ;;  %v8794_v56 = vsel %vm12400_vm7, %v8792_v52, 0  ;;  %vm9119_vm5 = vcmask 195584  }
0x25db   : > { %v8790_v62 = vmul.bf16 %v8789_v42, %v13685_v61  ;;  %v8795_v21 = vmul.bf16 %v8794_v56, %v13696_v41  ;;  %v11307_v61 = vpack.c.bf16 %v9117_v26, %v9116_v63 }
0x25dd   : > { %11120 = vmatpush3.bf16.msra.mxu0 %v11772_v46  ;;  %11308 = vmatprep.subr.bf16.mxu1 %v11307_v61 }
0x25de   : > { %11121 = vmatprep.subr.bf16.mxu0 %v11936_v53 }
0x25e1   : > { %11122 = vmatpush3.bf16.msra.mxu0 %v11773_v15 }
0x25e2   : > { %11127 = vmatprep.subr.bf16.mxu0 %v11936_v53 }
0x25e4   : > { %11124 = vmatmul.mubr.msk.bf16.vlgmr.msra.gmra.mrb[92].mxu0 %vm3735_vm4, %v8790_v62 }
0x25e5   : > { %11128 = vmatpush3.bf16.msra.mxu0 %v11774_v47  ;;  %11135 = vmatprep.mubr.msk.bf16.mxu0 %vm11935_vm1, %v11936_v53 }
0x25e6   : > { %11129 = vmatprep.subr.bf16.mxu0 %v11936_v53 }
0x25e9   : > { %11130 = vmatpush3.bf16.msra.mxu0 %v11775_v24 }
0x25ea   : > { %11131 = vmatprep.subr.bf16.mxu0 %v11936_v53 }
0x25ed   : > { %11132 = vmatpush3.bf16.msra.mxu0 %v11776_v0 }
0x25ee   : > { %11133 = vmatprep.subr.bf16.mxu0 %v11936_v53 }
0x25f1   : > { %11134 = vmatpush3.bf16.msra.mxu0 %v11777_v33 }
0x25f4   : > { %11136 = vmatmul.mubr.msk.bf16.vlgmr.msra.gmra.mrb[92].mxu0 %vm3735_vm4, %v8795_v21 }
0x26c7   : > { %v9018_v9 = vpop.f32.mrb[92].mxu0 }
0x26c8   : > { %v11137_v6 = vpop.f32.mrb[93].mxu0  ;;  %v11381_v2 = vadd.f32 %v11380_v19, %v9018_v9 }
0x26c9   : > { %v9021_v41 = vpop.f32.mrb[94].mxu0 }
0x26ca   : > { %v11383_v59 = vadd.f32 %v11380_v19, %v9021_v41  ;;  %v11138_v7 = vpop.f32.mrb[95].mxu0 }
0x26cc   : > { %v9035_v57 = vpack.c.bf16 %v11383_v59, %v11381_v2 }
0x26ce   : > { %11148 = vmatmul.mubr.msk.bf16.vlgmr.msra.gmra.mrb[116].mxu1 %vm3735_vm4, %v9035_v57 }
0x26cf   : > { %11310 = vmatpush3.bf16.msra.mxu1 %v11307_v61 }
0x26d0   : > { %11155 = vmatprep.subr.mxu1 %v9118_v31 }
0x26d3   : > { %11156 = vmatpush3.msra.mxu1 %v9118_v31 }
0x26d4   : > { %11311 = vmatprep.subr.bf16.mxu1 %v11934_v11 }
0x27a1   : > { %v9105_v1 = vpop.f32.mrb[116].mxu1 }
0x27a2   : > { %v9114_v10 = vmul.f32 %v9112_v44, %v9105_v1  ;;  %v11149_v50 = vpop.f32.mrb[117].mxu1 }
0x27a3   : > { %v9108_v58 = vpop.f32.mrb[118].mxu1 }
0x27a4   : > { %v9115_v5 = vmul.f32 %v9113_v14, %v9108_v58  ;;  %v11150_v27 = vpop.f32.mrb[119].mxu1  ;;  %11157 = vmatprep.mubr.msk.f32.mxu1 %vm9119_vm5, %v9114_v10 }
0x27a6   : > { %11158 = vmatmul.mubr.msk.f32.vlgmr.msra.gmra.mrb[110].mxu1 %vm9119_vm5, %v9115_v5 }
0x27a7   : > { %11164 = vmatprep.mubr.msk.f32.mxu1 %vm11935_vm1, %v11936_v53 }
0x2879   : > { %v11159_v17 = vpop.f32.mrb[110].mxu1 }
0x287a   : > { %v9192_v11 = vpop.f32.mrb[111].mxu1 }
0x287b   : > { %v11312_v35 = vpack.c.bf16 %v11159_v17, %v9192_v11 }
0x287d   : > { %11313 = vmatpush3.bf16.msra.mxu1 %v11312_v35 }
0x2880   : > { %11165 = vmatmul.mubr.msk.f32.vlgmr.msra.gmra.mrb[120].mxu1 %vm4217_vm10, %v13592_v60 }
0x2953   : > { %v9267_v22 = vpop.f32.mrb[120].mxu1 }
0x2954   : > { %v9271_v16 = vmul.f32 8.0, %v9267_v22  ;;  %v11166_v4 = vpop.f32.mrb[121].mxu1 }
0x2956   : > { %v9277_v39 = vadd.f32 %v9869_v28, %v9271_v16 }
0x2958   : > { %9278 = vst [vmem:[%s974_s5] sm:$0x3] %v9277_v39 }
0x2959   : > { %11851 = shalt.err (!%p11848_p8)
}
0x295a   : > { %s11852_s4 = scalar_lea.hbm %s13766_s8, 32  ;;  %s11856_s5 = scalar_lea.hbm %s12100_s24, 64 }
0x295b   : > { %p11853_p9 = scmp.ne.s32.totalorder %s13766_s8, %s11852_s4  ;;  %p11857_p12 = scmp.lt.u32.totalorder %s13766_s8, %s12100_s24 }
0x295c   : > { %p11858_p13 = scmp.lt.u32.totalorder %s11856_s5, %s11852_s4  ;;  %p11860_p1 = scmp.lt.u32.totalorder %s11852_s4, %s13766_s8 }
0x295d   : > { %p11854_p10 = pnand %p11853_p9, %p12140_p5 }
0x295e   : > { %p11859_p0 = por %p11858_p13, %p11857_p12 }
0x295f   : > { %p11855_p11 = pneg %p11854_p10 }
0x2960   : > { %p11861_p3 = por %p11860_p1, %p11859_p0 }
0x2962   : > { %p11862_p2 = pnand %p11861_p3, %p11855_p11 }
0x2964   : > { %11865 = shalt.err (!%p11862_p2)
}
0x2965   : > { %11630 = dma.vmem_to_hbm [thread:$0]  (%p12140_p5), %s13768_s6, 32, %s13766_s8, %s9280_s9  }
0x2966 PF: > { %p11636_p4 = scmp.ge.s32.totalorder %s11900_s22, 2  ;;  %s9305_s12 = sand.u32 1, %s11888_s15  }
0x2967   : > { %s9306_s11 = scalar_lea.sflag [#allocation3], %s9305_s12 }
0x2968   : > { %p11633_p7 = pnand %p11636_p4, %p12144_p6 }
0x296a   : > { %11883 = dma.done.wait (!%p11633_p7), %s9306_s11, 32  }
0x296b   : > { %11885 = vsyncadd (!%p11633_p7), %s9306_s11, 4294967264  ;;  %p71_p8 = scmp.ge.s32.totalorder %s12127_s26, 4   ;;  %s13888_s15 = smov %s11892_s16 }
0x296c   : > { %s13889_s16 = smov %s11896_s18  ;;  %s13890_s18 = smov %s12138_s2 }
0x296d   : > { %s13891_s22 = smov %s12127_s26  ;;  %73 = sbr.rel (!%p71_p8) target bundleno = 59 (0x3b), region = 245 }
0x2974   :  { %9311 = vsyncpa [#allocation3], 1 }
0x2975   :  { %9313 = vsyncpa [#allocation3 + $0x1], 1 }

</bundles_post_ra>
